<compile_context>
chip_gen: v6e
topology: v6e:2x2x1
jax: 0.10.0
libtpu: 0.0.40
codegen_flags: <defaults>
</compile_context>

<pallas_src>
import jax
import jax.numpy as jnp
from jax.experimental import pallas as pl
from jax.experimental.pallas import tpu as pltpu

# Module constants (from Rnn.py)
BATCH = 25
SEQ = 28           # length_sentence
INPUT = 28         # input_size
HIDDEN = 100       # hidden_size

# Padded (TPU-friendly) sizes
BATCH_PAD = 32     # full sublane groups, unmasked stores
INPUT_PAD = 32     # sublane-aligned contraction dim for the input projection
HIDDEN_PAD = 128   # lane-dense hidden dim


def rnn_kernel(x_ref, h0_ref, wih_ref, whh_ref, bias_ref, out_ref, xproj_ref):
    """Whole RNN in one invocation (time-major layout).

    x_ref:     (SEQ, BATCH_PAD, INPUT_PAD)   padded input, time-major
    h0_ref:    (BATCH_PAD, HIDDEN_PAD)
    wih_ref:   (INPUT_PAD, HIDDEN_PAD)       W_ih^T, zero padded
    whh_ref:   (HIDDEN_PAD, HIDDEN_PAD)      W_hh^T, zero padded
    bias_ref:  (1, HIDDEN_PAD)               b_ih + b_hh, zero padded
    out_ref:   (SEQ, BATCH_PAD, HIDDEN_PAD)  hidden states, time-major
    xproj_ref: (SEQ, BATCH_PAD, HIDDEN_PAD)  VMEM scratch for x @ W_ih^T + b
    """
    # ---- Preamble: input projection for every timestep.  Independent of the
    # recurrent chain, so the MXU chews through these before (or under) step 0.
    wih = wih_ref[...]                                         # (32, 128)
    bias = jnp.broadcast_to(bias_ref[...], (BATCH_PAD, HIDDEN_PAD))  # hoisted
    for t in range(SEQ):
        xproj_ref[t] = (
            jnp.dot(x_ref[t], wih, preferred_element_type=jnp.float32) + bias
        )

    # ---- Recurrence: fully unrolled serial chain.  Per step: one lane-dense
    # (32,128)x(128,128) MXU matmul + add + tanh, contiguous vreg load/store.
    whh = whh_ref[...]                                         # (128, 128), loaded once
    h = h0_ref[...]                                            # (32, 128)
    for t in range(SEQ):
        h = jnp.tanh(
            xproj_ref[t]
            + jnp.dot(h, whh, preferred_element_type=jnp.float32)
        )
        out_ref[t] = h


def rnn_forward(x, hidden_state, w_ih, w_hh, b_ih, b_hh):
    """x: (BATCH, SEQ*INPUT) or reshapeable; hidden_state: (1, BATCH, HIDDEN)."""
    x = x.reshape(BATCH, SEQ, INPUT).astype(jnp.float32)
    h0 = hidden_state.reshape(BATCH, HIDDEN).astype(jnp.float32)

    # Zero-pad batch/input/hidden dims.  Padded hidden lanes stay exactly zero
    # through the recurrence (zero W_ih/W_hh rows & cols, zero bias/h0 padding,
    # tanh(0)=0); padded batch rows never mix with real rows (matmuls contract
    # over input/hidden only).  Everything is sliced back after the call.
    x_tm = jnp.zeros((SEQ, BATCH_PAD, INPUT_PAD), jnp.float32).at[
        :, :BATCH, :INPUT].set(jnp.transpose(x, (1, 0, 2)))          # time-major
    h0p = jnp.zeros((BATCH_PAD, HIDDEN_PAD), jnp.float32).at[
        :BATCH, :HIDDEN].set(h0)
    wih_p = jnp.zeros((INPUT_PAD, HIDDEN_PAD), jnp.float32).at[
        :INPUT, :HIDDEN].set(jnp.transpose(w_ih).astype(jnp.float32))
    whh_p = jnp.zeros((HIDDEN_PAD, HIDDEN_PAD), jnp.float32).at[
        :HIDDEN, :HIDDEN].set(jnp.transpose(w_hh).astype(jnp.float32))
    bias_p = jnp.zeros((1, HIDDEN_PAD), jnp.float32).at[
        0, :HIDDEN].set((b_ih + b_hh).astype(jnp.float32))

    out_tm = pl.pallas_call(
        rnn_kernel,
        out_shape=jax.ShapeDtypeStruct((SEQ, BATCH_PAD, HIDDEN_PAD), jnp.float32),
        grid=(1,),   # single invocation; whole working set (<1.5 MiB) fits VMEM
        in_specs=[
            pl.BlockSpec((SEQ, BATCH_PAD, INPUT_PAD), lambda i: (0, 0, 0)),  # x
            pl.BlockSpec((BATCH_PAD, HIDDEN_PAD), lambda i: (0, 0)),         # h0
            pl.BlockSpec((INPUT_PAD, HIDDEN_PAD), lambda i: (0, 0)),         # W_ih^T
            pl.BlockSpec((HIDDEN_PAD, HIDDEN_PAD), lambda i: (0, 0)),        # W_hh^T
            pl.BlockSpec((1, HIDDEN_PAD), lambda i: (0, 0)),                 # bias
        ],
        out_specs=pl.BlockSpec((SEQ, BATCH_PAD, HIDDEN_PAD), lambda i: (0, 0, 0)),
        scratch_shapes=[pltpu.VMEM((SEQ, BATCH_PAD, HIDDEN_PAD), jnp.float32)],
        compiler_params=pltpu.CompilerParams(
            dimension_semantics=("arbitrary",),
        ),
    )(x_tm, h0p, wih_p, whh_p, bias_p)

    out_real = out_tm[:, :BATCH, :HIDDEN]          # (SEQ, BATCH, HIDDEN)
    out = jnp.transpose(out_real, (1, 0, 2))       # (BATCH, SEQ, HIDDEN)
    h_n = out_real[SEQ - 1][None]                  # (1, BATCH, HIDDEN) == last step
    return out, h_n


def rnn_reference(x, hidden_state, w_ih, w_hh, b_ih, b_hh):
    """Pure-JAX reference (lax.scan) for correctness checking."""
    x = x.reshape(BATCH, SEQ, INPUT).astype(jnp.float32)
    h0 = hidden_state.reshape(BATCH, HIDDEN).astype(jnp.float32)
    bias = (b_ih + b_hh).astype(jnp.float32)

    def step(h, x_t):
        h_new = jnp.tanh(x_t @ w_ih.T + h @ w_hh.T + bias)
        return h_new, h_new

    h_n, out_tm = jax.lax.scan(step, h0, jnp.transpose(x, (1, 0, 2)))
    return jnp.transpose(out_tm, (1, 0, 2)), h_n.reshape(1, BATCH, HIDDEN)


if __name__ == "__main__":
    key = jax.random.PRNGKey(0)
    k_x, k_h, k_wih, k_whh, k_bih, k_bhh = jax.random.split(key, 6)

    # Deterministic parameter init, PyTorch-style uniform(-1/sqrt(H), 1/sqrt(H)).
    bound = 1.0 / (HIDDEN ** 0.5)
    w_ih = jax.random.uniform(k_wih, (HIDDEN, INPUT), jnp.float32, -bound, bound)
    w_hh = jax.random.uniform(k_whh, (HIDDEN, HIDDEN), jnp.float32, -bound, bound)
    b_ih = jax.random.uniform(k_bih, (HIDDEN,), jnp.float32, -bound, bound)
    b_hh = jax.random.uniform(k_bhh, (HIDDEN,), jnp.float32, -bound, bound)

    # Example input: MNIST-row-style (BATCH, SEQ*INPUT); forward reshapes it.
    x = jax.random.normal(k_x, (BATCH, SEQ * INPUT), jnp.float32)
    hidden_state = jax.random.normal(k_h, (1, BATCH, HIDDEN), jnp.float32)

    fwd = jax.jit(rnn_forward)
    out, h_n = jax.block_until_ready(
        fwd(x, hidden_state, w_ih, w_hh, b_ih, b_hh))

    out_ref, h_n_ref = rnn_reference(x, hidden_state, w_ih, w_hh, b_ih, b_hh)
    assert out.shape == (BATCH, SEQ, HIDDEN)
    assert h_n.shape == (1, BATCH, HIDDEN)
    assert jnp.allclose(out, out_ref, atol=1e-4, rtol=1e-4)
    assert jnp.allclose(h_n, h_n_ref, atol=1e-4, rtol=1e-4)

    print("KERNEL_OK")
</pallas_src>

<mosaic_0001>
module attributes {stable_mosaic.version = 11 : i64} {
  func.func @rnn_kernel(%arg0: i32, %arg1: memref<28x32x32xf32, #tpu.memory_space<vmem>>, %arg2: memref<32x128xf32, #tpu.memory_space<vmem>>, %arg3: memref<32x128xf32, #tpu.memory_space<vmem>>, %arg4: memref<128x128xf32, #tpu.memory_space<vmem>>, %arg5: memref<1x128xf32, #tpu.memory_space<vmem>>, %arg6: memref<28x32x128xf32, #tpu.memory_space<vmem>>, %arg7: memref<28x32x128xf32, #tpu.memory_space<vmem>>) attributes {dimension_semantics = [#tpu.dimension_semantics<arbitrary>], iteration_bounds = array<i64: 1>, scalar_prefetch = 0 : i64, scratch_operands = 1 : i64, tpu.core_type = #tpu.core_type<tc>, window_params = [{pipeline_mode = #tpu.pipeline_mode<synchronous>, transform_indices = @transform_0, window_bounds = array<i64: 28, 32, 32>}, {pipeline_mode = #tpu.pipeline_mode<synchronous>, transform_indices = @transform_1, window_bounds = array<i64: 32, 128>}, {pipeline_mode = #tpu.pipeline_mode<synchronous>, transform_indices = @transform_2, window_bounds = array<i64: 32, 128>}, {pipeline_mode = #tpu.pipeline_mode<synchronous>, transform_indices = @transform_3, window_bounds = array<i64: 128, 128>}, {pipeline_mode = #tpu.pipeline_mode<synchronous>, transform_indices = @transform_4, window_bounds = array<i64: 1, 128>}, {pipeline_mode = #tpu.pipeline_mode<synchronous>, transform_indices = @transform_5, window_bounds = array<i64: 28, 32, 128>}]} {
    %c0 = arith.constant 0 : index
    %c0_0 = arith.constant 0 : index
    %0 = vector.load %arg3[%c0, %c0_0] : memref<32x128xf32, #tpu.memory_space<vmem>>, vector<32x128xf32>
    %c0_1 = arith.constant 0 : index
    %c0_2 = arith.constant 0 : index
    %1 = vector.load %arg5[%c0_1, %c0_2] : memref<1x128xf32, #tpu.memory_space<vmem>>, vector<1x128xf32>
    %2 = vector.shape_cast %1 : vector<1x128xf32> to vector<1x128xf32>
    %3 = vector.broadcast %2 : vector<1x128xf32> to vector<32x128xf32>
    %c0_3 = arith.constant 0 : index
    %c0_4 = arith.constant 0 : index
    %c0_5 = arith.constant 0 : index
    %4 = vector.load %arg1[%c0_3, %c0_4, %c0_5] : memref<28x32x32xf32, #tpu.memory_space<vmem>>, vector<1x32x32xf32>
    %5 = vector.shape_cast %4 : vector<1x32x32xf32> to vector<32x32xf32>
    %cst = arith.constant dense<0.000000e+00> : vector<32x128xf32>
    %6 = tpu.matmul %5, %0, %cst {dimension_numbers = #tpu.dot_dimension_numbers<[1], [0], [0], [1], [0, 0, 1, 1], [], []>} : vector<32x32xf32>, vector<32x128xf32>, vector<32x128xf32> -> vector<32x128xf32>
    %7 = arith.addf %6, %3 : vector<32x128xf32>
    %c0_6 = arith.constant 0 : index
    %c0_7 = arith.constant 0 : index
    %c0_8 = arith.constant 0 : index
    %8 = vector.load %arg7[%c0_6, %c0_7, %c0_8] : memref<28x32x128xf32, #tpu.memory_space<vmem>>, vector<1x32x128xf32>
    %9 = vector.shape_cast %8 : vector<1x32x128xf32> to vector<32x128xf32>
    %10 = vector.shape_cast %7 : vector<32x128xf32> to vector<1x32x128xf32>
    tpu.vector_store %arg7[%c0_6, %c0_7, %c0_8], %10 {strides = array<i32>} : memref<28x32x128xf32, #tpu.memory_space<vmem>>, vector<1x32x128xf32>,
    %c1 = arith.constant 1 : index
    %c0_9 = arith.constant 0 : index
    %c0_10 = arith.constant 0 : index
    %11 = vector.load %arg1[%c1, %c0_9, %c0_10] : memref<28x32x32xf32, #tpu.memory_space<vmem>>, vector<1x32x32xf32>
    %12 = vector.shape_cast %11 : vector<1x32x32xf32> to vector<32x32xf32>
    %cst_11 = arith.constant dense<0.000000e+00> : vector<32x128xf32>
    %13 = tpu.matmul %12, %0, %cst_11 {dimension_numbers = #tpu.dot_dimension_numbers<[1], [0], [0], [1], [0, 0, 1, 1], [], []>} : vector<32x32xf32>, vector<32x128xf32>, vector<32x128xf32> -> vector<32x128xf32>
    %14 = arith.addf %13, %3 : vector<32x128xf32>
    %c1_12 = arith.constant 1 : index
    %c0_13 = arith.constant 0 : index
    %c0_14 = arith.constant 0 : index
    %15 = vector.load %arg7[%c1_12, %c0_13, %c0_14] : memref<28x32x128xf32, #tpu.memory_space<vmem>>, vector<1x32x128xf32>
    %16 = vector.shape_cast %15 : vector<1x32x128xf32> to vector<32x128xf32>
    %17 = vector.shape_cast %14 : vector<32x128xf32> to vector<1x32x128xf32>
    tpu.vector_store %arg7[%c1_12, %c0_13, %c0_14], %17 {strides = array<i32>} : memref<28x32x128xf32, #tpu.memory_space<vmem>>, vector<1x32x128xf32>,
    %c2 = arith.constant 2 : index
    %c0_15 = arith.constant 0 : index
    %c0_16 = arith.constant 0 : index
    %18 = vector.load %arg1[%c2, %c0_15, %c0_16] : memref<28x32x32xf32, #tpu.memory_space<vmem>>, vector<1x32x32xf32>
    %19 = vector.shape_cast %18 : vector<1x32x32xf32> to vector<32x32xf32>
    %cst_17 = arith.constant dense<0.000000e+00> : vector<32x128xf32>
    %20 = tpu.matmul %19, %0, %cst_17 {dimension_numbers = #tpu.dot_dimension_numbers<[1], [0], [0], [1], [0, 0, 1, 1], [], []>} : vector<32x32xf32>, vector<32x128xf32>, vector<32x128xf32> -> vector<32x128xf32>
    %21 = arith.addf %20, %3 : vector<32x128xf32>
    %c2_18 = arith.constant 2 : index
    %c0_19 = arith.constant 0 : index
    %c0_20 = arith.constant 0 : index
    %22 = vector.load %arg7[%c2_18, %c0_19, %c0_20] : memref<28x32x128xf32, #tpu.memory_space<vmem>>, vector<1x32x128xf32>
    %23 = vector.shape_cast %22 : vector<1x32x128xf32> to vector<32x128xf32>
    %24 = vector.shape_cast %21 : vector<32x128xf32> to vector<1x32x128xf32>
    tpu.vector_store %arg7[%c2_18, %c0_19, %c0_20], %24 {strides = array<i32>} : memref<28x32x128xf32, #tpu.memory_space<vmem>>, vector<1x32x128xf32>,
    %c3 = arith.constant 3 : index
    %c0_21 = arith.constant 0 : index
    %c0_22 = arith.constant 0 : index
    %25 = vector.load %arg1[%c3, %c0_21, %c0_22] : memref<28x32x32xf32, #tpu.memory_space<vmem>>, vector<1x32x32xf32>
    %26 = vector.shape_cast %25 : vector<1x32x32xf32> to vector<32x32xf32>
    %cst_23 = arith.constant dense<0.000000e+00> : vector<32x128xf32>
    %27 = tpu.matmul %26, %0, %cst_23 {dimension_numbers = #tpu.dot_dimension_numbers<[1], [0], [0], [1], [0, 0, 1, 1], [], []>} : vector<32x32xf32>, vector<32x128xf32>, vector<32x128xf32> -> vector<32x128xf32>
    %28 = arith.addf %27, %3 : vector<32x128xf32>
    %c3_24 = arith.constant 3 : index
    %c0_25 = arith.constant 0 : index
    %c0_26 = arith.constant 0 : index
    %29 = vector.load %arg7[%c3_24, %c0_25, %c0_26] : memref<28x32x128xf32, #tpu.memory_space<vmem>>, vector<1x32x128xf32>
    %30 = vector.shape_cast %29 : vector<1x32x128xf32> to vector<32x128xf32>
    %31 = vector.shape_cast %28 : vector<32x128xf32> to vector<1x32x128xf32>
    tpu.vector_store %arg7[%c3_24, %c0_25, %c0_26], %31 {strides = array<i32>} : memref<28x32x128xf32, #tpu.memory_space<vmem>>, vector<1x32x128xf32>,
    %c4 = arith.constant 4 : index
    %c0_27 = arith.constant 0 : index
    %c0_28 = arith.constant 0 : index
    %32 = vector.load %arg1[%c4, %c0_27, %c0_28] : memref<28x32x32xf32, #tpu.memory_space<vmem>>, vector<1x32x32xf32>
    %33 = vector.shape_cast %32 : vector<1x32x32xf32> to vector<32x32xf32>
    %cst_29 = arith.constant dense<0.000000e+00> : vector<32x128xf32>
    %34 = tpu.matmul %33, %0, %cst_29 {dimension_numbers = #tpu.dot_dimension_numbers<[1], [0], [0], [1], [0, 0, 1, 1], [], []>} : vector<32x32xf32>, vector<32x128xf32>, vector<32x128xf32> -> vector<32x128xf32>
    %35 = arith.addf %34, %3 : vector<32x128xf32>
    %c4_30 = arith.constant 4 : index
    %c0_31 = arith.constant 0 : index
    %c0_32 = arith.constant 0 : index
    %36 = vector.load %arg7[%c4_30, %c0_31, %c0_32] : memref<28x32x128xf32, #tpu.memory_space<vmem>>, vector<1x32x128xf32>
    %37 = vector.shape_cast %36 : vector<1x32x128xf32> to vector<32x128xf32>
    %38 = vector.shape_cast %35 : vector<32x128xf32> to vector<1x32x128xf32>
    tpu.vector_store %arg7[%c4_30, %c0_31, %c0_32], %38 {strides = array<i32>} : memref<28x32x128xf32, #tpu.memory_space<vmem>>, vector<1x32x128xf32>,
    %c5 = arith.constant 5 : index
    %c0_33 = arith.constant 0 : index
    %c0_34 = arith.constant 0 : index
    %39 = vector.load %arg1[%c5, %c0_33, %c0_34] : memref<28x32x32xf32, #tpu.memory_space<vmem>>, vector<1x32x32xf32>
    %40 = vector.shape_cast %39 : vector<1x32x32xf32> to vector<32x32xf32>
    %cst_35 = arith.constant dense<0.000000e+00> : vector<32x128xf32>
    %41 = tpu.matmul %40, %0, %cst_35 {dimension_numbers = #tpu.dot_dimension_numbers<[1], [0], [0], [1], [0, 0, 1, 1], [], []>} : vector<32x32xf32>, vector<32x128xf32>, vector<32x128xf32> -> vector<32x128xf32>
    %42 = arith.addf %41, %3 : vector<32x128xf32>
    %c5_36 = arith.constant 5 : index
    %c0_37 = arith.constant 0 : index
    %c0_38 = arith.constant 0 : index
    %43 = vector.load %arg7[%c5_36, %c0_37, %c0_38] : memref<28x32x128xf32, #tpu.memory_space<vmem>>, vector<1x32x128xf32>
    %44 = vector.shape_cast %43 : vector<1x32x128xf32> to vector<32x128xf32>
    %45 = vector.shape_cast %42 : vector<32x128xf32> to vector<1x32x128xf32>
    tpu.vector_store %arg7[%c5_36, %c0_37, %c0_38], %45 {strides = array<i32>} : memref<28x32x128xf32, #tpu.memory_space<vmem>>, vector<1x32x128xf32>,
    %c6 = arith.constant 6 : index
    %c0_39 = arith.constant 0 : index
    %c0_40 = arith.constant 0 : index
    %46 = vector.load %arg1[%c6, %c0_39, %c0_40] : memref<28x32x32xf32, #tpu.memory_space<vmem>>, vector<1x32x32xf32>
    %47 = vector.shape_cast %46 : vector<1x32x32xf32> to vector<32x32xf32>
    %cst_41 = arith.constant dense<0.000000e+00> : vector<32x128xf32>
    %48 = tpu.matmul %47, %0, %cst_41 {dimension_numbers = #tpu.dot_dimension_numbers<[1], [0], [0], [1], [0, 0, 1, 1], [], []>} : vector<32x32xf32>, vector<32x128xf32>, vector<32x128xf32> -> vector<32x128xf32>
    %49 = arith.addf %48, %3 : vector<32x128xf32>
    %c6_42 = arith.constant 6 : index
    %c0_43 = arith.constant 0 : index
    %c0_44 = arith.constant 0 : index
    %50 = vector.load %arg7[%c6_42, %c0_43, %c0_44] : memref<28x32x128xf32, #tpu.memory_space<vmem>>, vector<1x32x128xf32>
    %51 = vector.shape_cast %50 : vector<1x32x128xf32> to vector<32x128xf32>
    %52 = vector.shape_cast %49 : vector<32x128xf32> to vector<1x32x128xf32>
    tpu.vector_store %arg7[%c6_42, %c0_43, %c0_44], %52 {strides = array<i32>} : memref<28x32x128xf32, #tpu.memory_space<vmem>>, vector<1x32x128xf32>,
    %c7 = arith.constant 7 : index
    %c0_45 = arith.constant 0 : index
    %c0_46 = arith.constant 0 : index
    %53 = vector.load %arg1[%c7, %c0_45, %c0_46] : memref<28x32x32xf32, #tpu.memory_space<vmem>>, vector<1x32x32xf32>
    %54 = vector.shape_cast %53 : vector<1x32x32xf32> to vector<32x32xf32>
    %cst_47 = arith.constant dense<0.000000e+00> : vector<32x128xf32>
    %55 = tpu.matmul %54, %0, %cst_47 {dimension_numbers = #tpu.dot_dimension_numbers<[1], [0], [0], [1], [0, 0, 1, 1], [], []>} : vector<32x32xf32>, vector<32x128xf32>, vector<32x128xf32> -> vector<32x128xf32>
    %56 = arith.addf %55, %3 : vector<32x128xf32>
    %c7_48 = arith.constant 7 : index
    %c0_49 = arith.constant 0 : index
    %c0_50 = arith.constant 0 : index
    %57 = vector.load %arg7[%c7_48, %c0_49, %c0_50] : memref<28x32x128xf32, #tpu.memory_space<vmem>>, vector<1x32x128xf32>
    %58 = vector.shape_cast %57 : vector<1x32x128xf32> to vector<32x128xf32>
    %59 = vector.shape_cast %56 : vector<32x128xf32> to vector<1x32x128xf32>
    tpu.vector_store %arg7[%c7_48, %c0_49, %c0_50], %59 {strides = array<i32>} : memref<28x32x128xf32, #tpu.memory_space<vmem>>, vector<1x32x128xf32>,
    %c8 = arith.constant 8 : index
    %c0_51 = arith.constant 0 : index
    %c0_52 = arith.constant 0 : index
    %60 = vector.load %arg1[%c8, %c0_51, %c0_52] : memref<28x32x32xf32, #tpu.memory_space<vmem>>, vector<1x32x32xf32>
    %61 = vector.shape_cast %60 : vector<1x32x32xf32> to vector<32x32xf32>
    %cst_53 = arith.constant dense<0.000000e+00> : vector<32x128xf32>
    %62 = tpu.matmul %61, %0, %cst_53 {dimension_numbers = #tpu.dot_dimension_numbers<[1], [0], [0], [1], [0, 0, 1, 1], [], []>} : vector<32x32xf32>, vector<32x128xf32>, vector<32x128xf32> -> vector<32x128xf32>
    %63 = arith.addf %62, %3 : vector<32x128xf32>
    %c8_54 = arith.constant 8 : index
    %c0_55 = arith.constant 0 : index
    %c0_56 = arith.constant 0 : index
    %64 = vector.load %arg7[%c8_54, %c0_55, %c0_56] : memref<28x32x128xf32, #tpu.memory_space<vmem>>, vector<1x32x128xf32>
    %65 = vector.shape_cast %64 : vector<1x32x128xf32> to vector<32x128xf32>
    %66 = vector.shape_cast %63 : vector<32x128xf32> to vector<1x32x128xf32>
    tpu.vector_store %arg7[%c8_54, %c0_55, %c0_56], %66 {strides = array<i32>} : memref<28x32x128xf32, #tpu.memory_space<vmem>>, vector<1x32x128xf32>,
    %c9 = arith.constant 9 : index
    %c0_57 = arith.constant 0 : index
    %c0_58 = arith.constant 0 : index
    %67 = vector.load %arg1[%c9, %c0_57, %c0_58] : memref<28x32x32xf32, #tpu.memory_space<vmem>>, vector<1x32x32xf32>
    %68 = vector.shape_cast %67 : vector<1x32x32xf32> to vector<32x32xf32>
    %cst_59 = arith.constant dense<0.000000e+00> : vector<32x128xf32>
    %69 = tpu.matmul %68, %0, %cst_59 {dimension_numbers = #tpu.dot_dimension_numbers<[1], [0], [0], [1], [0, 0, 1, 1], [], []>} : vector<32x32xf32>, vector<32x128xf32>, vector<32x128xf32> -> vector<32x128xf32>
    %70 = arith.addf %69, %3 : vector<32x128xf32>
    %c9_60 = arith.constant 9 : index
    %c0_61 = arith.constant 0 : index
    %c0_62 = arith.constant 0 : index
    %71 = vector.load %arg7[%c9_60, %c0_61, %c0_62] : memref<28x32x128xf32, #tpu.memory_space<vmem>>, vector<1x32x128xf32>
    %72 = vector.shape_cast %71 : vector<1x32x128xf32> to vector<32x128xf32>
    %73 = vector.shape_cast %70 : vector<32x128xf32> to vector<1x32x128xf32>
    tpu.vector_store %arg7[%c9_60, %c0_61, %c0_62], %73 {strides = array<i32>} : memref<28x32x128xf32, #tpu.memory_space<vmem>>, vector<1x32x128xf32>,
    %c10 = arith.constant 10 : index
    %c0_63 = arith.constant 0 : index
    %c0_64 = arith.constant 0 : index
    %74 = vector.load %arg1[%c10, %c0_63, %c0_64] : memref<28x32x32xf32, #tpu.memory_space<vmem>>, vector<1x32x32xf32>
    %75 = vector.shape_cast %74 : vector<1x32x32xf32> to vector<32x32xf32>
    %cst_65 = arith.constant dense<0.000000e+00> : vector<32x128xf32>
    %76 = tpu.matmul %75, %0, %cst_65 {dimension_numbers = #tpu.dot_dimension_numbers<[1], [0], [0], [1], [0, 0, 1, 1], [], []>} : vector<32x32xf32>, vector<32x128xf32>, vector<32x128xf32> -> vector<32x128xf32>
    %77 = arith.addf %76, %3 : vector<32x128xf32>
    %c10_66 = arith.constant 10 : index
    %c0_67 = arith.constant 0 : index
    %c0_68 = arith.constant 0 : index
    %78 = vector.load %arg7[%c10_66, %c0_67, %c0_68] : memref<28x32x128xf32, #tpu.memory_space<vmem>>, vector<1x32x128xf32>
    %79 = vector.shape_cast %78 : vector<1x32x128xf32> to vector<32x128xf32>
    %80 = vector.shape_cast %77 : vector<32x128xf32> to vector<1x32x128xf32>
    tpu.vector_store %arg7[%c10_66, %c0_67, %c0_68], %80 {strides = array<i32>} : memref<28x32x128xf32, #tpu.memory_space<vmem>>, vector<1x32x128xf32>,
    %c11 = arith.constant 11 : index
    %c0_69 = arith.constant 0 : index
    %c0_70 = arith.constant 0 : index
    %81 = vector.load %arg1[%c11, %c0_69, %c0_70] : memref<28x32x32xf32, #tpu.memory_space<vmem>>, vector<1x32x32xf32>
    %82 = vector.shape_cast %81 : vector<1x32x32xf32> to vector<32x32xf32>
    %cst_71 = arith.constant dense<0.000000e+00> : vector<32x128xf32>
    %83 = tpu.matmul %82, %0, %cst_71 {dimension_numbers = #tpu.dot_dimension_numbers<[1], [0], [0], [1], [0, 0, 1, 1], [], []>} : vector<32x32xf32>, vector<32x128xf32>, vector<32x128xf32> -> vector<32x128xf32>
    %84 = arith.addf %83, %3 : vector<32x128xf32>
    %c11_72 = arith.constant 11 : index
    %c0_73 = arith.constant 0 : index
    %c0_74 = arith.constant 0 : index
    %85 = vector.load %arg7[%c11_72, %c0_73, %c0_74] : memref<28x32x128xf32, #tpu.memory_space<vmem>>, vector<1x32x128xf32>
    %86 = vector.shape_cast %85 : vector<1x32x128xf32> to vector<32x128xf32>
    %87 = vector.shape_cast %84 : vector<32x128xf32> to vector<1x32x128xf32>
    tpu.vector_store %arg7[%c11_72, %c0_73, %c0_74], %87 {strides = array<i32>} : memref<28x32x128xf32, #tpu.memory_space<vmem>>, vector<1x32x128xf32>,
    %c12 = arith.constant 12 : index
    %c0_75 = arith.constant 0 : index
    %c0_76 = arith.constant 0 : index
    %88 = vector.load %arg1[%c12, %c0_75, %c0_76] : memref<28x32x32xf32, #tpu.memory_space<vmem>>, vector<1x32x32xf32>
    %89 = vector.shape_cast %88 : vector<1x32x32xf32> to vector<32x32xf32>
    %cst_77 = arith.constant dense<0.000000e+00> : vector<32x128xf32>
    %90 = tpu.matmul %89, %0, %cst_77 {dimension_numbers = #tpu.dot_dimension_numbers<[1], [0], [0], [1], [0, 0, 1, 1], [], []>} : vector<32x32xf32>, vector<32x128xf32>, vector<32x128xf32> -> vector<32x128xf32>
    %91 = arith.addf %90, %3 : vector<32x128xf32>
    %c12_78 = arith.constant 12 : index
    %c0_79 = arith.constant 0 : index
    %c0_80 = arith.constant 0 : index
    %92 = vector.load %arg7[%c12_78, %c0_79, %c0_80] : memref<28x32x128xf32, #tpu.memory_space<vmem>>, vector<1x32x128xf32>
    %93 = vector.shape_cast %92 : vector<1x32x128xf32> to vector<32x128xf32>
    %94 = vector.shape_cast %91 : vector<32x128xf32> to vector<1x32x128xf32>
    tpu.vector_store %arg7[%c12_78, %c0_79, %c0_80], %94 {strides = array<i32>} : memref<28x32x128xf32, #tpu.memory_space<vmem>>, vector<1x32x128xf32>,
    %c13 = arith.constant 13 : index
    %c0_81 = arith.constant 0 : index
    %c0_82 = arith.constant 0 : index
    %95 = vector.load %arg1[%c13, %c0_81, %c0_82] : memref<28x32x32xf32, #tpu.memory_space<vmem>>, vector<1x32x32xf32>
    %96 = vector.shape_cast %95 : vector<1x32x32xf32> to vector<32x32xf32>
    %cst_83 = arith.constant dense<0.000000e+00> : vector<32x128xf32>
    %97 = tpu.matmul %96, %0, %cst_83 {dimension_numbers = #tpu.dot_dimension_numbers<[1], [0], [0], [1], [0, 0, 1, 1], [], []>} : vector<32x32xf32>, vector<32x128xf32>, vector<32x128xf32> -> vector<32x128xf32>
    %98 = arith.addf %97, %3 : vector<32x128xf32>
    %c13_84 = arith.constant 13 : index
    %c0_85 = arith.constant 0 : index
    %c0_86 = arith.constant 0 : index
    %99 = vector.load %arg7[%c13_84, %c0_85, %c0_86] : memref<28x32x128xf32, #tpu.memory_space<vmem>>, vector<1x32x128xf32>
    %100 = vector.shape_cast %99 : vector<1x32x128xf32> to vector<32x128xf32>
    %101 = vector.shape_cast %98 : vector<32x128xf32> to vector<1x32x128xf32>
    tpu.vector_store %arg7[%c13_84, %c0_85, %c0_86], %101 {strides = array<i32>} : memref<28x32x128xf32, #tpu.memory_space<vmem>>, vector<1x32x128xf32>,
    %c14 = arith.constant 14 : index
    %c0_87 = arith.constant 0 : index
    %c0_88 = arith.constant 0 : index
    %102 = vector.load %arg1[%c14, %c0_87, %c0_88] : memref<28x32x32xf32, #tpu.memory_space<vmem>>, vector<1x32x32xf32>
    %103 = vector.shape_cast %102 : vector<1x32x32xf32> to vector<32x32xf32>
    %cst_89 = arith.constant dense<0.000000e+00> : vector<32x128xf32>
    %104 = tpu.matmul %103, %0, %cst_89 {dimension_numbers = #tpu.dot_dimension_numbers<[1], [0], [0], [1], [0, 0, 1, 1], [], []>} : vector<32x32xf32>, vector<32x128xf32>, vector<32x128xf32> -> vector<32x128xf32>
    %105 = arith.addf %104, %3 : vector<32x128xf32>
    %c14_90 = arith.constant 14 : index
    %c0_91 = arith.constant 0 : index
    %c0_92 = arith.constant 0 : index
    %106 = vector.load %arg7[%c14_90, %c0_91, %c0_92] : memref<28x32x128xf32, #tpu.memory_space<vmem>>, vector<1x32x128xf32>
    %107 = vector.shape_cast %106 : vector<1x32x128xf32> to vector<32x128xf32>
    %108 = vector.shape_cast %105 : vector<32x128xf32> to vector<1x32x128xf32>
    tpu.vector_store %arg7[%c14_90, %c0_91, %c0_92], %108 {strides = array<i32>} : memref<28x32x128xf32, #tpu.memory_space<vmem>>, vector<1x32x128xf32>,
    %c15 = arith.constant 15 : index
    %c0_93 = arith.constant 0 : index
    %c0_94 = arith.constant 0 : index
    %109 = vector.load %arg1[%c15, %c0_93, %c0_94] : memref<28x32x32xf32, #tpu.memory_space<vmem>>, vector<1x32x32xf32>
    %110 = vector.shape_cast %109 : vector<1x32x32xf32> to vector<32x32xf32>
    %cst_95 = arith.constant dense<0.000000e+00> : vector<32x128xf32>
    %111 = tpu.matmul %110, %0, %cst_95 {dimension_numbers = #tpu.dot_dimension_numbers<[1], [0], [0], [1], [0, 0, 1, 1], [], []>} : vector<32x32xf32>, vector<32x128xf32>, vector<32x128xf32> -> vector<32x128xf32>
    %112 = arith.addf %111, %3 : vector<32x128xf32>
    %c15_96 = arith.constant 15 : index
    %c0_97 = arith.constant 0 : index
    %c0_98 = arith.constant 0 : index
    %113 = vector.load %arg7[%c15_96, %c0_97, %c0_98] : memref<28x32x128xf32, #tpu.memory_space<vmem>>, vector<1x32x128xf32>
    %114 = vector.shape_cast %113 : vector<1x32x128xf32> to vector<32x128xf32>
    %115 = vector.shape_cast %112 : vector<32x128xf32> to vector<1x32x128xf32>
    tpu.vector_store %arg7[%c15_96, %c0_97, %c0_98], %115 {strides = array<i32>} : memref<28x32x128xf32, #tpu.memory_space<vmem>>, vector<1x32x128xf32>,
    %c16 = arith.constant 16 : index
    %c0_99 = arith.constant 0 : index
    %c0_100 = arith.constant 0 : index
    %116 = vector.load %arg1[%c16, %c0_99, %c0_100] : memref<28x32x32xf32, #tpu.memory_space<vmem>>, vector<1x32x32xf32>
    %117 = vector.shape_cast %116 : vector<1x32x32xf32> to vector<32x32xf32>
    %cst_101 = arith.constant dense<0.000000e+00> : vector<32x128xf32>
    %118 = tpu.matmul %117, %0, %cst_101 {dimension_numbers = #tpu.dot_dimension_numbers<[1], [0], [0], [1], [0, 0, 1, 1], [], []>} : vector<32x32xf32>, vector<32x128xf32>, vector<32x128xf32> -> vector<32x128xf32>
    %119 = arith.addf %118, %3 : vector<32x128xf32>
    %c16_102 = arith.constant 16 : index
    %c0_103 = arith.constant 0 : index
    %c0_104 = arith.constant 0 : index
    %120 = vector.load %arg7[%c16_102, %c0_103, %c0_104] : memref<28x32x128xf32, #tpu.memory_space<vmem>>, vector<1x32x128xf32>
    %121 = vector.shape_cast %120 : vector<1x32x128xf32> to vector<32x128xf32>
    %122 = vector.shape_cast %119 : vector<32x128xf32> to vector<1x32x128xf32>
    tpu.vector_store %arg7[%c16_102, %c0_103, %c0_104], %122 {strides = array<i32>} : memref<28x32x128xf32, #tpu.memory_space<vmem>>, vector<1x32x128xf32>,
    %c17 = arith.constant 17 : index
    %c0_105 = arith.constant 0 : index
    %c0_106 = arith.constant 0 : index
    %123 = vector.load %arg1[%c17, %c0_105, %c0_106] : memref<28x32x32xf32, #tpu.memory_space<vmem>>, vector<1x32x32xf32>
    %124 = vector.shape_cast %123 : vector<1x32x32xf32> to vector<32x32xf32>
    %cst_107 = arith.constant dense<0.000000e+00> : vector<32x128xf32>
    %125 = tpu.matmul %124, %0, %cst_107 {dimension_numbers = #tpu.dot_dimension_numbers<[1], [0], [0], [1], [0, 0, 1, 1], [], []>} : vector<32x32xf32>, vector<32x128xf32>, vector<32x128xf32> -> vector<32x128xf32>
    %126 = arith.addf %125, %3 : vector<32x128xf32>
    %c17_108 = arith.constant 17 : index
    %c0_109 = arith.constant 0 : index
    %c0_110 = arith.constant 0 : index
    %127 = vector.load %arg7[%c17_108, %c0_109, %c0_110] : memref<28x32x128xf32, #tpu.memory_space<vmem>>, vector<1x32x128xf32>
    %128 = vector.shape_cast %127 : vector<1x32x128xf32> to vector<32x128xf32>
    %129 = vector.shape_cast %126 : vector<32x128xf32> to vector<1x32x128xf32>
    tpu.vector_store %arg7[%c17_108, %c0_109, %c0_110], %129 {strides = array<i32>} : memref<28x32x128xf32, #tpu.memory_space<vmem>>, vector<1x32x128xf32>,
    %c18 = arith.constant 18 : index
    %c0_111 = arith.constant 0 : index
    %c0_112 = arith.constant 0 : index
    %130 = vector.load %arg1[%c18, %c0_111, %c0_112] : memref<28x32x32xf32, #tpu.memory_space<vmem>>, vector<1x32x32xf32>
    %131 = vector.shape_cast %130 : vector<1x32x32xf32> to vector<32x32xf32>
    %cst_113 = arith.constant dense<0.000000e+00> : vector<32x128xf32>
    %132 = tpu.matmul %131, %0, %cst_113 {dimension_numbers = #tpu.dot_dimension_numbers<[1], [0], [0], [1], [0, 0, 1, 1], [], []>} : vector<32x32xf32>, vector<32x128xf32>, vector<32x128xf32> -> vector<32x128xf32>
    %133 = arith.addf %132, %3 : vector<32x128xf32>
    %c18_114 = arith.constant 18 : index
    %c0_115 = arith.constant 0 : index
    %c0_116 = arith.constant 0 : index
    %134 = vector.load %arg7[%c18_114, %c0_115, %c0_116] : memref<28x32x128xf32, #tpu.memory_space<vmem>>, vector<1x32x128xf32>
    %135 = vector.shape_cast %134 : vector<1x32x128xf32> to vector<32x128xf32>
    %136 = vector.shape_cast %133 : vector<32x128xf32> to vector<1x32x128xf32>
    tpu.vector_store %arg7[%c18_114, %c0_115, %c0_116], %136 {strides = array<i32>} : memref<28x32x128xf32, #tpu.memory_space<vmem>>, vector<1x32x128xf32>,
    %c19 = arith.constant 19 : index
    %c0_117 = arith.constant 0 : index
    %c0_118 = arith.constant 0 : index
    %137 = vector.load %arg1[%c19, %c0_117, %c0_118] : memref<28x32x32xf32, #tpu.memory_space<vmem>>, vector<1x32x32xf32>
    %138 = vector.shape_cast %137 : vector<1x32x32xf32> to vector<32x32xf32>
    %cst_119 = arith.constant dense<0.000000e+00> : vector<32x128xf32>
    %139 = tpu.matmul %138, %0, %cst_119 {dimension_numbers = #tpu.dot_dimension_numbers<[1], [0], [0], [1], [0, 0, 1, 1], [], []>} : vector<32x32xf32>, vector<32x128xf32>, vector<32x128xf32> -> vector<32x128xf32>
    %140 = arith.addf %139, %3 : vector<32x128xf32>
    %c19_120 = arith.constant 19 : index
    %c0_121 = arith.constant 0 : index
    %c0_122 = arith.constant 0 : index
    %141 = vector.load %arg7[%c19_120, %c0_121, %c0_122] : memref<28x32x128xf32, #tpu.memory_space<vmem>>, vector<1x32x128xf32>
    %142 = vector.shape_cast %141 : vector<1x32x128xf32> to vector<32x128xf32>
    %143 = vector.shape_cast %140 : vector<32x128xf32> to vector<1x32x128xf32>
    tpu.vector_store %arg7[%c19_120, %c0_121, %c0_122], %143 {strides = array<i32>} : memref<28x32x128xf32, #tpu.memory_space<vmem>>, vector<1x32x128xf32>,
    %c20 = arith.constant 20 : index
    %c0_123 = arith.constant 0 : index
    %c0_124 = arith.constant 0 : index
    %144 = vector.load %arg1[%c20, %c0_123, %c0_124] : memref<28x32x32xf32, #tpu.memory_space<vmem>>, vector<1x32x32xf32>
    %145 = vector.shape_cast %144 : vector<1x32x32xf32> to vector<32x32xf32>
    %cst_125 = arith.constant dense<0.000000e+00> : vector<32x128xf32>
    %146 = tpu.matmul %145, %0, %cst_125 {dimension_numbers = #tpu.dot_dimension_numbers<[1], [0], [0], [1], [0, 0, 1, 1], [], []>} : vector<32x32xf32>, vector<32x128xf32>, vector<32x128xf32> -> vector<32x128xf32>
    %147 = arith.addf %146, %3 : vector<32x128xf32>
    %c20_126 = arith.constant 20 : index
    %c0_127 = arith.constant 0 : index
    %c0_128 = arith.constant 0 : index
    %148 = vector.load %arg7[%c20_126, %c0_127, %c0_128] : memref<28x32x128xf32, #tpu.memory_space<vmem>>, vector<1x32x128xf32>
    %149 = vector.shape_cast %148 : vector<1x32x128xf32> to vector<32x128xf32>
    %150 = vector.shape_cast %147 : vector<32x128xf32> to vector<1x32x128xf32>
    tpu.vector_store %arg7[%c20_126, %c0_127, %c0_128], %150 {strides = array<i32>} : memref<28x32x128xf32, #tpu.memory_space<vmem>>, vector<1x32x128xf32>,
    %c21 = arith.constant 21 : index
    %c0_129 = arith.constant 0 : index
    %c0_130 = arith.constant 0 : index
    %151 = vector.load %arg1[%c21, %c0_129, %c0_130] : memref<28x32x32xf32, #tpu.memory_space<vmem>>, vector<1x32x32xf32>
    %152 = vector.shape_cast %151 : vector<1x32x32xf32> to vector<32x32xf32>
    %cst_131 = arith.constant dense<0.000000e+00> : vector<32x128xf32>
    %153 = tpu.matmul %152, %0, %cst_131 {dimension_numbers = #tpu.dot_dimension_numbers<[1], [0], [0], [1], [0, 0, 1, 1], [], []>} : vector<32x32xf32>, vector<32x128xf32>, vector<32x128xf32> -> vector<32x128xf32>
    %154 = arith.addf %153, %3 : vector<32x128xf32>
    %c21_132 = arith.constant 21 : index
    %c0_133 = arith.constant 0 : index
    %c0_134 = arith.constant 0 : index
    %155 = vector.load %arg7[%c21_132, %c0_133, %c0_134] : memref<28x32x128xf32, #tpu.memory_space<vmem>>, vector<1x32x128xf32>
    %156 = vector.shape_cast %155 : vector<1x32x128xf32> to vector<32x128xf32>
    %157 = vector.shape_cast %154 : vector<32x128xf32> to vector<1x32x128xf32>
    tpu.vector_store %arg7[%c21_132, %c0_133, %c0_134], %157 {strides = array<i32>} : memref<28x32x128xf32, #tpu.memory_space<vmem>>, vector<1x32x128xf32>,
    %c22 = arith.constant 22 : index
    %c0_135 = arith.constant 0 : index
    %c0_136 = arith.constant 0 : index
    %158 = vector.load %arg1[%c22, %c0_135, %c0_136] : memref<28x32x32xf32, #tpu.memory_space<vmem>>, vector<1x32x32xf32>
    %159 = vector.shape_cast %158 : vector<1x32x32xf32> to vector<32x32xf32>
    %cst_137 = arith.constant dense<0.000000e+00> : vector<32x128xf32>
    %160 = tpu.matmul %159, %0, %cst_137 {dimension_numbers = #tpu.dot_dimension_numbers<[1], [0], [0], [1], [0, 0, 1, 1], [], []>} : vector<32x32xf32>, vector<32x128xf32>, vector<32x128xf32> -> vector<32x128xf32>
    %161 = arith.addf %160, %3 : vector<32x128xf32>
    %c22_138 = arith.constant 22 : index
    %c0_139 = arith.constant 0 : index
    %c0_140 = arith.constant 0 : index
    %162 = vector.load %arg7[%c22_138, %c0_139, %c0_140] : memref<28x32x128xf32, #tpu.memory_space<vmem>>, vector<1x32x128xf32>
    %163 = vector.shape_cast %162 : vector<1x32x128xf32> to vector<32x128xf32>
    %164 = vector.shape_cast %161 : vector<32x128xf32> to vector<1x32x128xf32>
    tpu.vector_store %arg7[%c22_138, %c0_139, %c0_140], %164 {strides = array<i32>} : memref<28x32x128xf32, #tpu.memory_space<vmem>>, vector<1x32x128xf32>,
    %c23 = arith.constant 23 : index
    %c0_141 = arith.constant 0 : index
    %c0_142 = arith.constant 0 : index
    %165 = vector.load %arg1[%c23, %c0_141, %c0_142] : memref<28x32x32xf32, #tpu.memory_space<vmem>>, vector<1x32x32xf32>
    %166 = vector.shape_cast %165 : vector<1x32x32xf32> to vector<32x32xf32>
    %cst_143 = arith.constant dense<0.000000e+00> : vector<32x128xf32>
    %167 = tpu.matmul %166, %0, %cst_143 {dimension_numbers = #tpu.dot_dimension_numbers<[1], [0], [0], [1], [0, 0, 1, 1], [], []>} : vector<32x32xf32>, vector<32x128xf32>, vector<32x128xf32> -> vector<32x128xf32>
    %168 = arith.addf %167, %3 : vector<32x128xf32>
    %c23_144 = arith.constant 23 : index
    %c0_145 = arith.constant 0 : index
    %c0_146 = arith.constant 0 : index
    %169 = vector.load %arg7[%c23_144, %c0_145, %c0_146] : memref<28x32x128xf32, #tpu.memory_space<vmem>>, vector<1x32x128xf32>
    %170 = vector.shape_cast %169 : vector<1x32x128xf32> to vector<32x128xf32>
    %171 = vector.shape_cast %168 : vector<32x128xf32> to vector<1x32x128xf32>
    tpu.vector_store %arg7[%c23_144, %c0_145, %c0_146], %171 {strides = array<i32>} : memref<28x32x128xf32, #tpu.memory_space<vmem>>, vector<1x32x128xf32>,
    %c24 = arith.constant 24 : index
    %c0_147 = arith.constant 0 : index
    %c0_148 = arith.constant 0 : index
    %172 = vector.load %arg1[%c24, %c0_147, %c0_148] : memref<28x32x32xf32, #tpu.memory_space<vmem>>, vector<1x32x32xf32>
    %173 = vector.shape_cast %172 : vector<1x32x32xf32> to vector<32x32xf32>
    %cst_149 = arith.constant dense<0.000000e+00> : vector<32x128xf32>
    %174 = tpu.matmul %173, %0, %cst_149 {dimension_numbers = #tpu.dot_dimension_numbers<[1], [0], [0], [1], [0, 0, 1, 1], [], []>} : vector<32x32xf32>, vector<32x128xf32>, vector<32x128xf32> -> vector<32x128xf32>
    %175 = arith.addf %174, %3 : vector<32x128xf32>
    %c24_150 = arith.constant 24 : index
    %c0_151 = arith.constant 0 : index
    %c0_152 = arith.constant 0 : index
    %176 = vector.load %arg7[%c24_150, %c0_151, %c0_152] : memref<28x32x128xf32, #tpu.memory_space<vmem>>, vector<1x32x128xf32>
    %177 = vector.shape_cast %176 : vector<1x32x128xf32> to vector<32x128xf32>
    %178 = vector.shape_cast %175 : vector<32x128xf32> to vector<1x32x128xf32>
    tpu.vector_store %arg7[%c24_150, %c0_151, %c0_152], %178 {strides = array<i32>} : memref<28x32x128xf32, #tpu.memory_space<vmem>>, vector<1x32x128xf32>,
    %c25 = arith.constant 25 : index
    %c0_153 = arith.constant 0 : index
    %c0_154 = arith.constant 0 : index
    %179 = vector.load %arg1[%c25, %c0_153, %c0_154] : memref<28x32x32xf32, #tpu.memory_space<vmem>>, vector<1x32x32xf32>
    %180 = vector.shape_cast %179 : vector<1x32x32xf32> to vector<32x32xf32>
    %cst_155 = arith.constant dense<0.000000e+00> : vector<32x128xf32>
    %181 = tpu.matmul %180, %0, %cst_155 {dimension_numbers = #tpu.dot_dimension_numbers<[1], [0], [0], [1], [0, 0, 1, 1], [], []>} : vector<32x32xf32>, vector<32x128xf32>, vector<32x128xf32> -> vector<32x128xf32>
    %182 = arith.addf %181, %3 : vector<32x128xf32>
    %c25_156 = arith.constant 25 : index
    %c0_157 = arith.constant 0 : index
    %c0_158 = arith.constant 0 : index
    %183 = vector.load %arg7[%c25_156, %c0_157, %c0_158] : memref<28x32x128xf32, #tpu.memory_space<vmem>>, vector<1x32x128xf32>
    %184 = vector.shape_cast %183 : vector<1x32x128xf32> to vector<32x128xf32>
    %185 = vector.shape_cast %182 : vector<32x128xf32> to vector<1x32x128xf32>
    tpu.vector_store %arg7[%c25_156, %c0_157, %c0_158], %185 {strides = array<i32>} : memref<28x32x128xf32, #tpu.memory_space<vmem>>, vector<1x32x128xf32>,
    %c26 = arith.constant 26 : index
    %c0_159 = arith.constant 0 : index
    %c0_160 = arith.constant 0 : index
    %186 = vector.load %arg1[%c26, %c0_159, %c0_160] : memref<28x32x32xf32, #tpu.memory_space<vmem>>, vector<1x32x32xf32>
    %187 = vector.shape_cast %186 : vector<1x32x32xf32> to vector<32x32xf32>
    %cst_161 = arith.constant dense<0.000000e+00> : vector<32x128xf32>
    %188 = tpu.matmul %187, %0, %cst_161 {dimension_numbers = #tpu.dot_dimension_numbers<[1], [0], [0], [1], [0, 0, 1, 1], [], []>} : vector<32x32xf32>, vector<32x128xf32>, vector<32x128xf32> -> vector<32x128xf32>
    %189 = arith.addf %188, %3 : vector<32x128xf32>
    %c26_162 = arith.constant 26 : index
    %c0_163 = arith.constant 0 : index
    %c0_164 = arith.constant 0 : index
    %190 = vector.load %arg7[%c26_162, %c0_163, %c0_164] : memref<28x32x128xf32, #tpu.memory_space<vmem>>, vector<1x32x128xf32>
    %191 = vector.shape_cast %190 : vector<1x32x128xf32> to vector<32x128xf32>
    %192 = vector.shape_cast %189 : vector<32x128xf32> to vector<1x32x128xf32>
    tpu.vector_store %arg7[%c26_162, %c0_163, %c0_164], %192 {strides = array<i32>} : memref<28x32x128xf32, #tpu.memory_space<vmem>>, vector<1x32x128xf32>,
    %c27 = arith.constant 27 : index
    %c0_165 = arith.constant 0 : index
    %c0_166 = arith.constant 0 : index
    %193 = vector.load %arg1[%c27, %c0_165, %c0_166] : memref<28x32x32xf32, #tpu.memory_space<vmem>>, vector<1x32x32xf32>
    %194 = vector.shape_cast %193 : vector<1x32x32xf32> to vector<32x32xf32>
    %cst_167 = arith.constant dense<0.000000e+00> : vector<32x128xf32>
    %195 = tpu.matmul %194, %0, %cst_167 {dimension_numbers = #tpu.dot_dimension_numbers<[1], [0], [0], [1], [0, 0, 1, 1], [], []>} : vector<32x32xf32>, vector<32x128xf32>, vector<32x128xf32> -> vector<32x128xf32>
    %196 = arith.addf %195, %3 : vector<32x128xf32>
    %c27_168 = arith.constant 27 : index
    %c0_169 = arith.constant 0 : index
    %c0_170 = arith.constant 0 : index
    %197 = vector.load %arg7[%c27_168, %c0_169, %c0_170] : memref<28x32x128xf32, #tpu.memory_space<vmem>>, vector<1x32x128xf32>
    %198 = vector.shape_cast %197 : vector<1x32x128xf32> to vector<32x128xf32>
    %199 = vector.shape_cast %196 : vector<32x128xf32> to vector<1x32x128xf32>
    tpu.vector_store %arg7[%c27_168, %c0_169, %c0_170], %199 {strides = array<i32>} : memref<28x32x128xf32, #tpu.memory_space<vmem>>, vector<1x32x128xf32>,
    %c0_171 = arith.constant 0 : index
    %c0_172 = arith.constant 0 : index
    %200 = vector.load %arg4[%c0_171, %c0_172] : memref<128x128xf32, #tpu.memory_space<vmem>>, vector<128x128xf32>
    %c0_173 = arith.constant 0 : index
    %c0_174 = arith.constant 0 : index
    %201 = vector.load %arg2[%c0_173, %c0_174] : memref<32x128xf32, #tpu.memory_space<vmem>>, vector<32x128xf32>
    %c0_175 = arith.constant 0 : index
    %c0_176 = arith.constant 0 : index
    %c0_177 = arith.constant 0 : index
    %202 = vector.load %arg7[%c0_175, %c0_176, %c0_177] : memref<28x32x128xf32, #tpu.memory_space<vmem>>, vector<1x32x128xf32>
    %203 = vector.shape_cast %202 : vector<1x32x128xf32> to vector<32x128xf32>
    %cst_178 = arith.constant dense<0.000000e+00> : vector<32x128xf32>
    %204 = tpu.matmul %201, %200, %cst_178 {dimension_numbers = #tpu.dot_dimension_numbers<[1], [0], [0], [1], [0, 0, 1, 1], [], []>} : vector<32x128xf32>, vector<128x128xf32>, vector<32x128xf32> -> vector<32x128xf32>
    %205 = arith.addf %203, %204 : vector<32x128xf32>
    %206 = math.tanh %205 : vector<32x128xf32>
    %c0_179 = arith.constant 0 : index
    %c0_180 = arith.constant 0 : index
    %c0_181 = arith.constant 0 : index
    %207 = vector.load %arg6[%c0_179, %c0_180, %c0_181] : memref<28x32x128xf32, #tpu.memory_space<vmem>>, vector<1x32x128xf32>
    %208 = vector.shape_cast %207 : vector<1x32x128xf32> to vector<32x128xf32>
    %209 = vector.shape_cast %206 : vector<32x128xf32> to vector<1x32x128xf32>
    tpu.vector_store %arg6[%c0_179, %c0_180, %c0_181], %209 {strides = array<i32>} : memref<28x32x128xf32, #tpu.memory_space<vmem>>, vector<1x32x128xf32>,
    %c1_182 = arith.constant 1 : index
    %c0_183 = arith.constant 0 : index
    %c0_184 = arith.constant 0 : index
    %210 = vector.load %arg7[%c1_182, %c0_183, %c0_184] : memref<28x32x128xf32, #tpu.memory_space<vmem>>, vector<1x32x128xf32>
    %211 = vector.shape_cast %210 : vector<1x32x128xf32> to vector<32x128xf32>
    %cst_185 = arith.constant dense<0.000000e+00> : vector<32x128xf32>
    %212 = tpu.matmul %206, %200, %cst_185 {dimension_numbers = #tpu.dot_dimension_numbers<[1], [0], [0], [1], [0, 0, 1, 1], [], []>} : vector<32x128xf32>, vector<128x128xf32>, vector<32x128xf32> -> vector<32x128xf32>
    %213 = arith.addf %211, %212 : vector<32x128xf32>
    %214 = math.tanh %213 : vector<32x128xf32>
    %c1_186 = arith.constant 1 : index
    %c0_187 = arith.constant 0 : index
    %c0_188 = arith.constant 0 : index
    %215 = vector.load %arg6[%c1_186, %c0_187, %c0_188] : memref<28x32x128xf32, #tpu.memory_space<vmem>>, vector<1x32x128xf32>
    %216 = vector.shape_cast %215 : vector<1x32x128xf32> to vector<32x128xf32>
    %217 = vector.shape_cast %214 : vector<32x128xf32> to vector<1x32x128xf32>
    tpu.vector_store %arg6[%c1_186, %c0_187, %c0_188], %217 {strides = array<i32>} : memref<28x32x128xf32, #tpu.memory_space<vmem>>, vector<1x32x128xf32>,
    %c2_189 = arith.constant 2 : index
    %c0_190 = arith.constant 0 : index
    %c0_191 = arith.constant 0 : index
    %218 = vector.load %arg7[%c2_189, %c0_190, %c0_191] : memref<28x32x128xf32, #tpu.memory_space<vmem>>, vector<1x32x128xf32>
    %219 = vector.shape_cast %218 : vector<1x32x128xf32> to vector<32x128xf32>
    %cst_192 = arith.constant dense<0.000000e+00> : vector<32x128xf32>
    %220 = tpu.matmul %214, %200, %cst_192 {dimension_numbers = #tpu.dot_dimension_numbers<[1], [0], [0], [1], [0, 0, 1, 1], [], []>} : vector<32x128xf32>, vector<128x128xf32>, vector<32x128xf32> -> vector<32x128xf32>
    %221 = arith.addf %219, %220 : vector<32x128xf32>
    %222 = math.tanh %221 : vector<32x128xf32>
    %c2_193 = arith.constant 2 : index
    %c0_194 = arith.constant 0 : index
    %c0_195 = arith.constant 0 : index
    %223 = vector.load %arg6[%c2_193, %c0_194, %c0_195] : memref<28x32x128xf32, #tpu.memory_space<vmem>>, vector<1x32x128xf32>
    %224 = vector.shape_cast %223 : vector<1x32x128xf32> to vector<32x128xf32>
    %225 = vector.shape_cast %222 : vector<32x128xf32> to vector<1x32x128xf32>
    tpu.vector_store %arg6[%c2_193, %c0_194, %c0_195], %225 {strides = array<i32>} : memref<28x32x128xf32, #tpu.memory_space<vmem>>, vector<1x32x128xf32>,
    %c3_196 = arith.constant 3 : index
    %c0_197 = arith.constant 0 : index
    %c0_198 = arith.constant 0 : index
    %226 = vector.load %arg7[%c3_196, %c0_197, %c0_198] : memref<28x32x128xf32, #tpu.memory_space<vmem>>, vector<1x32x128xf32>
    %227 = vector.shape_cast %226 : vector<1x32x128xf32> to vector<32x128xf32>
    %cst_199 = arith.constant dense<0.000000e+00> : vector<32x128xf32>
    %228 = tpu.matmul %222, %200, %cst_199 {dimension_numbers = #tpu.dot_dimension_numbers<[1], [0], [0], [1], [0, 0, 1, 1], [], []>} : vector<32x128xf32>, vector<128x128xf32>, vector<32x128xf32> -> vector<32x128xf32>
    %229 = arith.addf %227, %228 : vector<32x128xf32>
    %230 = math.tanh %229 : vector<32x128xf32>
    %c3_200 = arith.constant 3 : index
    %c0_201 = arith.constant 0 : index
    %c0_202 = arith.constant 0 : index
    %231 = vector.load %arg6[%c3_200, %c0_201, %c0_202] : memref<28x32x128xf32, #tpu.memory_space<vmem>>, vector<1x32x128xf32>
    %232 = vector.shape_cast %231 : vector<1x32x128xf32> to vector<32x128xf32>
    %233 = vector.shape_cast %230 : vector<32x128xf32> to vector<1x32x128xf32>
    tpu.vector_store %arg6[%c3_200, %c0_201, %c0_202], %233 {strides = array<i32>} : memref<28x32x128xf32, #tpu.memory_space<vmem>>, vector<1x32x128xf32>,
    %c4_203 = arith.constant 4 : index
    %c0_204 = arith.constant 0 : index
    %c0_205 = arith.constant 0 : index
    %234 = vector.load %arg7[%c4_203, %c0_204, %c0_205] : memref<28x32x128xf32, #tpu.memory_space<vmem>>, vector<1x32x128xf32>
    %235 = vector.shape_cast %234 : vector<1x32x128xf32> to vector<32x128xf32>
    %cst_206 = arith.constant dense<0.000000e+00> : vector<32x128xf32>
    %236 = tpu.matmul %230, %200, %cst_206 {dimension_numbers = #tpu.dot_dimension_numbers<[1], [0], [0], [1], [0, 0, 1, 1], [], []>} : vector<32x128xf32>, vector<128x128xf32>, vector<32x128xf32> -> vector<32x128xf32>
    %237 = arith.addf %235, %236 : vector<32x128xf32>
    %238 = math.tanh %237 : vector<32x128xf32>
    %c4_207 = arith.constant 4 : index
    %c0_208 = arith.constant 0 : index
    %c0_209 = arith.constant 0 : index
    %239 = vector.load %arg6[%c4_207, %c0_208, %c0_209] : memref<28x32x128xf32, #tpu.memory_space<vmem>>, vector<1x32x128xf32>
    %240 = vector.shape_cast %239 : vector<1x32x128xf32> to vector<32x128xf32>
    %241 = vector.shape_cast %238 : vector<32x128xf32> to vector<1x32x128xf32>
    tpu.vector_store %arg6[%c4_207, %c0_208, %c0_209], %241 {strides = array<i32>} : memref<28x32x128xf32, #tpu.memory_space<vmem>>, vector<1x32x128xf32>,
    %c5_210 = arith.constant 5 : index
    %c0_211 = arith.constant 0 : index
    %c0_212 = arith.constant 0 : index
    %242 = vector.load %arg7[%c5_210, %c0_211, %c0_212] : memref<28x32x128xf32, #tpu.memory_space<vmem>>, vector<1x32x128xf32>
    %243 = vector.shape_cast %242 : vector<1x32x128xf32> to vector<32x128xf32>
    %cst_213 = arith.constant dense<0.000000e+00> : vector<32x128xf32>
    %244 = tpu.matmul %238, %200, %cst_213 {dimension_numbers = #tpu.dot_dimension_numbers<[1], [0], [0], [1], [0, 0, 1, 1], [], []>} : vector<32x128xf32>, vector<128x128xf32>, vector<32x128xf32> -> vector<32x128xf32>
    %245 = arith.addf %243, %244 : vector<32x128xf32>
    %246 = math.tanh %245 : vector<32x128xf32>
    %c5_214 = arith.constant 5 : index
    %c0_215 = arith.constant 0 : index
    %c0_216 = arith.constant 0 : index
    %247 = vector.load %arg6[%c5_214, %c0_215, %c0_216] : memref<28x32x128xf32, #tpu.memory_space<vmem>>, vector<1x32x128xf32>
    %248 = vector.shape_cast %247 : vector<1x32x128xf32> to vector<32x128xf32>
    %249 = vector.shape_cast %246 : vector<32x128xf32> to vector<1x32x128xf32>
    tpu.vector_store %arg6[%c5_214, %c0_215, %c0_216], %249 {strides = array<i32>} : memref<28x32x128xf32, #tpu.memory_space<vmem>>, vector<1x32x128xf32>,
    %c6_217 = arith.constant 6 : index
    %c0_218 = arith.constant 0 : index
    %c0_219 = arith.constant 0 : index
    %250 = vector.load %arg7[%c6_217, %c0_218, %c0_219] : memref<28x32x128xf32, #tpu.memory_space<vmem>>, vector<1x32x128xf32>
    %251 = vector.shape_cast %250 : vector<1x32x128xf32> to vector<32x128xf32>
    %cst_220 = arith.constant dense<0.000000e+00> : vector<32x128xf32>
    %252 = tpu.matmul %246, %200, %cst_220 {dimension_numbers = #tpu.dot_dimension_numbers<[1], [0], [0], [1], [0, 0, 1, 1], [], []>} : vector<32x128xf32>, vector<128x128xf32>, vector<32x128xf32> -> vector<32x128xf32>
    %253 = arith.addf %251, %252 : vector<32x128xf32>
    %254 = math.tanh %253 : vector<32x128xf32>
    %c6_221 = arith.constant 6 : index
    %c0_222 = arith.constant 0 : index
    %c0_223 = arith.constant 0 : index
    %255 = vector.load %arg6[%c6_221, %c0_222, %c0_223] : memref<28x32x128xf32, #tpu.memory_space<vmem>>, vector<1x32x128xf32>
    %256 = vector.shape_cast %255 : vector<1x32x128xf32> to vector<32x128xf32>
    %257 = vector.shape_cast %254 : vector<32x128xf32> to vector<1x32x128xf32>
    tpu.vector_store %arg6[%c6_221, %c0_222, %c0_223], %257 {strides = array<i32>} : memref<28x32x128xf32, #tpu.memory_space<vmem>>, vector<1x32x128xf32>,
    %c7_224 = arith.constant 7 : index
    %c0_225 = arith.constant 0 : index
    %c0_226 = arith.constant 0 : index
    %258 = vector.load %arg7[%c7_224, %c0_225, %c0_226] : memref<28x32x128xf32, #tpu.memory_space<vmem>>, vector<1x32x128xf32>
    %259 = vector.shape_cast %258 : vector<1x32x128xf32> to vector<32x128xf32>
    %cst_227 = arith.constant dense<0.000000e+00> : vector<32x128xf32>
    %260 = tpu.matmul %254, %200, %cst_227 {dimension_numbers = #tpu.dot_dimension_numbers<[1], [0], [0], [1], [0, 0, 1, 1], [], []>} : vector<32x128xf32>, vector<128x128xf32>, vector<32x128xf32> -> vector<32x128xf32>
    %261 = arith.addf %259, %260 : vector<32x128xf32>
    %262 = math.tanh %261 : vector<32x128xf32>
    %c7_228 = arith.constant 7 : index
    %c0_229 = arith.constant 0 : index
    %c0_230 = arith.constant 0 : index
    %263 = vector.load %arg6[%c7_228, %c0_229, %c0_230] : memref<28x32x128xf32, #tpu.memory_space<vmem>>, vector<1x32x128xf32>
    %264 = vector.shape_cast %263 : vector<1x32x128xf32> to vector<32x128xf32>
    %265 = vector.shape_cast %262 : vector<32x128xf32> to vector<1x32x128xf32>
    tpu.vector_store %arg6[%c7_228, %c0_229, %c0_230], %265 {strides = array<i32>} : memref<28x32x128xf32, #tpu.memory_space<vmem>>, vector<1x32x128xf32>,
    %c8_231 = arith.constant 8 : index
    %c0_232 = arith.constant 0 : index
    %c0_233 = arith.constant 0 : index
    %266 = vector.load %arg7[%c8_231, %c0_232, %c0_233] : memref<28x32x128xf32, #tpu.memory_space<vmem>>, vector<1x32x128xf32>
    %267 = vector.shape_cast %266 : vector<1x32x128xf32> to vector<32x128xf32>
    %cst_234 = arith.constant dense<0.000000e+00> : vector<32x128xf32>
    %268 = tpu.matmul %262, %200, %cst_234 {dimension_numbers = #tpu.dot_dimension_numbers<[1], [0], [0], [1], [0, 0, 1, 1], [], []>} : vector<32x128xf32>, vector<128x128xf32>, vector<32x128xf32> -> vector<32x128xf32>
    %269 = arith.addf %267, %268 : vector<32x128xf32>
    %270 = math.tanh %269 : vector<32x128xf32>
    %c8_235 = arith.constant 8 : index
    %c0_236 = arith.constant 0 : index
    %c0_237 = arith.constant 0 : index
    %271 = vector.load %arg6[%c8_235, %c0_236, %c0_237] : memref<28x32x128xf32, #tpu.memory_space<vmem>>, vector<1x32x128xf32>
    %272 = vector.shape_cast %271 : vector<1x32x128xf32> to vector<32x128xf32>
    %273 = vector.shape_cast %270 : vector<32x128xf32> to vector<1x32x128xf32>
    tpu.vector_store %arg6[%c8_235, %c0_236, %c0_237], %273 {strides = array<i32>} : memref<28x32x128xf32, #tpu.memory_space<vmem>>, vector<1x32x128xf32>,
    %c9_238 = arith.constant 9 : index
    %c0_239 = arith.constant 0 : index
    %c0_240 = arith.constant 0 : index
    %274 = vector.load %arg7[%c9_238, %c0_239, %c0_240] : memref<28x32x128xf32, #tpu.memory_space<vmem>>, vector<1x32x128xf32>
    %275 = vector.shape_cast %274 : vector<1x32x128xf32> to vector<32x128xf32>
    %cst_241 = arith.constant dense<0.000000e+00> : vector<32x128xf32>
    %276 = tpu.matmul %270, %200, %cst_241 {dimension_numbers = #tpu.dot_dimension_numbers<[1], [0], [0], [1], [0, 0, 1, 1], [], []>} : vector<32x128xf32>, vector<128x128xf32>, vector<32x128xf32> -> vector<32x128xf32>
    %277 = arith.addf %275, %276 : vector<32x128xf32>
    %278 = math.tanh %277 : vector<32x128xf32>
    %c9_242 = arith.constant 9 : index
    %c0_243 = arith.constant 0 : index
    %c0_244 = arith.constant 0 : index
    %279 = vector.load %arg6[%c9_242, %c0_243, %c0_244] : memref<28x32x128xf32, #tpu.memory_space<vmem>>, vector<1x32x128xf32>
    %280 = vector.shape_cast %279 : vector<1x32x128xf32> to vector<32x128xf32>
    %281 = vector.shape_cast %278 : vector<32x128xf32> to vector<1x32x128xf32>
    tpu.vector_store %arg6[%c9_242, %c0_243, %c0_244], %281 {strides = array<i32>} : memref<28x32x128xf32, #tpu.memory_space<vmem>>, vector<1x32x128xf32>,
    %c10_245 = arith.constant 10 : index
    %c0_246 = arith.constant 0 : index
    %c0_247 = arith.constant 0 : index
    %282 = vector.load %arg7[%c10_245, %c0_246, %c0_247] : memref<28x32x128xf32, #tpu.memory_space<vmem>>, vector<1x32x128xf32>
    %283 = vector.shape_cast %282 : vector<1x32x128xf32> to vector<32x128xf32>
    %cst_248 = arith.constant dense<0.000000e+00> : vector<32x128xf32>
    %284 = tpu.matmul %278, %200, %cst_248 {dimension_numbers = #tpu.dot_dimension_numbers<[1], [0], [0], [1], [0, 0, 1, 1], [], []>} : vector<32x128xf32>, vector<128x128xf32>, vector<32x128xf32> -> vector<32x128xf32>
    %285 = arith.addf %283, %284 : vector<32x128xf32>
    %286 = math.tanh %285 : vector<32x128xf32>
    %c10_249 = arith.constant 10 : index
    %c0_250 = arith.constant 0 : index
    %c0_251 = arith.constant 0 : index
    %287 = vector.load %arg6[%c10_249, %c0_250, %c0_251] : memref<28x32x128xf32, #tpu.memory_space<vmem>>, vector<1x32x128xf32>
    %288 = vector.shape_cast %287 : vector<1x32x128xf32> to vector<32x128xf32>
    %289 = vector.shape_cast %286 : vector<32x128xf32> to vector<1x32x128xf32>
    tpu.vector_store %arg6[%c10_249, %c0_250, %c0_251], %289 {strides = array<i32>} : memref<28x32x128xf32, #tpu.memory_space<vmem>>, vector<1x32x128xf32>,
    %c11_252 = arith.constant 11 : index
    %c0_253 = arith.constant 0 : index
    %c0_254 = arith.constant 0 : index
    %290 = vector.load %arg7[%c11_252, %c0_253, %c0_254] : memref<28x32x128xf32, #tpu.memory_space<vmem>>, vector<1x32x128xf32>
    %291 = vector.shape_cast %290 : vector<1x32x128xf32> to vector<32x128xf32>
    %cst_255 = arith.constant dense<0.000000e+00> : vector<32x128xf32>
    %292 = tpu.matmul %286, %200, %cst_255 {dimension_numbers = #tpu.dot_dimension_numbers<[1], [0], [0], [1], [0, 0, 1, 1], [], []>} : vector<32x128xf32>, vector<128x128xf32>, vector<32x128xf32> -> vector<32x128xf32>
    %293 = arith.addf %291, %292 : vector<32x128xf32>
    %294 = math.tanh %293 : vector<32x128xf32>
    %c11_256 = arith.constant 11 : index
    %c0_257 = arith.constant 0 : index
    %c0_258 = arith.constant 0 : index
    %295 = vector.load %arg6[%c11_256, %c0_257, %c0_258] : memref<28x32x128xf32, #tpu.memory_space<vmem>>, vector<1x32x128xf32>
    %296 = vector.shape_cast %295 : vector<1x32x128xf32> to vector<32x128xf32>
    %297 = vector.shape_cast %294 : vector<32x128xf32> to vector<1x32x128xf32>
    tpu.vector_store %arg6[%c11_256, %c0_257, %c0_258], %297 {strides = array<i32>} : memref<28x32x128xf32, #tpu.memory_space<vmem>>, vector<1x32x128xf32>,
    %c12_259 = arith.constant 12 : index
    %c0_260 = arith.constant 0 : index
    %c0_261 = arith.constant 0 : index
    %298 = vector.load %arg7[%c12_259, %c0_260, %c0_261] : memref<28x32x128xf32, #tpu.memory_space<vmem>>, vector<1x32x128xf32>
    %299 = vector.shape_cast %298 : vector<1x32x128xf32> to vector<32x128xf32>
    %cst_262 = arith.constant dense<0.000000e+00> : vector<32x128xf32>
    %300 = tpu.matmul %294, %200, %cst_262 {dimension_numbers = #tpu.dot_dimension_numbers<[1], [0], [0], [1], [0, 0, 1, 1], [], []>} : vector<32x128xf32>, vector<128x128xf32>, vector<32x128xf32> -> vector<32x128xf32>
    %301 = arith.addf %299, %300 : vector<32x128xf32>
    %302 = math.tanh %301 : vector<32x128xf32>
    %c12_263 = arith.constant 12 : index
    %c0_264 = arith.constant 0 : index
    %c0_265 = arith.constant 0 : index
    %303 = vector.load %arg6[%c12_263, %c0_264, %c0_265] : memref<28x32x128xf32, #tpu.memory_space<vmem>>, vector<1x32x128xf32>
    %304 = vector.shape_cast %303 : vector<1x32x128xf32> to vector<32x128xf32>
    %305 = vector.shape_cast %302 : vector<32x128xf32> to vector<1x32x128xf32>
    tpu.vector_store %arg6[%c12_263, %c0_264, %c0_265], %305 {strides = array<i32>} : memref<28x32x128xf32, #tpu.memory_space<vmem>>, vector<1x32x128xf32>,
    %c13_266 = arith.constant 13 : index
    %c0_267 = arith.constant 0 : index
    %c0_268 = arith.constant 0 : index
    %306 = vector.load %arg7[%c13_266, %c0_267, %c0_268] : memref<28x32x128xf32, #tpu.memory_space<vmem>>, vector<1x32x128xf32>
    %307 = vector.shape_cast %306 : vector<1x32x128xf32> to vector<32x128xf32>
    %cst_269 = arith.constant dense<0.000000e+00> : vector<32x128xf32>
    %308 = tpu.matmul %302, %200, %cst_269 {dimension_numbers = #tpu.dot_dimension_numbers<[1], [0], [0], [1], [0, 0, 1, 1], [], []>} : vector<32x128xf32>, vector<128x128xf32>, vector<32x128xf32> -> vector<32x128xf32>
    %309 = arith.addf %307, %308 : vector<32x128xf32>
    %310 = math.tanh %309 : vector<32x128xf32>
    %c13_270 = arith.constant 13 : index
    %c0_271 = arith.constant 0 : index
    %c0_272 = arith.constant 0 : index
    %311 = vector.load %arg6[%c13_270, %c0_271, %c0_272] : memref<28x32x128xf32, #tpu.memory_space<vmem>>, vector<1x32x128xf32>
    %312 = vector.shape_cast %311 : vector<1x32x128xf32> to vector<32x128xf32>
    %313 = vector.shape_cast %310 : vector<32x128xf32> to vector<1x32x128xf32>
    tpu.vector_store %arg6[%c13_270, %c0_271, %c0_272], %313 {strides = array<i32>} : memref<28x32x128xf32, #tpu.memory_space<vmem>>, vector<1x32x128xf32>,
    %c14_273 = arith.constant 14 : index
    %c0_274 = arith.constant 0 : index
    %c0_275 = arith.constant 0 : index
    %314 = vector.load %arg7[%c14_273, %c0_274, %c0_275] : memref<28x32x128xf32, #tpu.memory_space<vmem>>, vector<1x32x128xf32>
    %315 = vector.shape_cast %314 : vector<1x32x128xf32> to vector<32x128xf32>
    %cst_276 = arith.constant dense<0.000000e+00> : vector<32x128xf32>
    %316 = tpu.matmul %310, %200, %cst_276 {dimension_numbers = #tpu.dot_dimension_numbers<[1], [0], [0], [1], [0, 0, 1, 1], [], []>} : vector<32x128xf32>, vector<128x128xf32>, vector<32x128xf32> -> vector<32x128xf32>
    %317 = arith.addf %315, %316 : vector<32x128xf32>
    %318 = math.tanh %317 : vector<32x128xf32>
    %c14_277 = arith.constant 14 : index
    %c0_278 = arith.constant 0 : index
    %c0_279 = arith.constant 0 : index
    %319 = vector.load %arg6[%c14_277, %c0_278, %c0_279] : memref<28x32x128xf32, #tpu.memory_space<vmem>>, vector<1x32x128xf32>
    %320 = vector.shape_cast %319 : vector<1x32x128xf32> to vector<32x128xf32>
    %321 = vector.shape_cast %318 : vector<32x128xf32> to vector<1x32x128xf32>
    tpu.vector_store %arg6[%c14_277, %c0_278, %c0_279], %321 {strides = array<i32>} : memref<28x32x128xf32, #tpu.memory_space<vmem>>, vector<1x32x128xf32>,
    %c15_280 = arith.constant 15 : index
    %c0_281 = arith.constant 0 : index
    %c0_282 = arith.constant 0 : index
    %322 = vector.load %arg7[%c15_280, %c0_281, %c0_282] : memref<28x32x128xf32, #tpu.memory_space<vmem>>, vector<1x32x128xf32>
    %323 = vector.shape_cast %322 : vector<1x32x128xf32> to vector<32x128xf32>
    %cst_283 = arith.constant dense<0.000000e+00> : vector<32x128xf32>
    %324 = tpu.matmul %318, %200, %cst_283 {dimension_numbers = #tpu.dot_dimension_numbers<[1], [0], [0], [1], [0, 0, 1, 1], [], []>} : vector<32x128xf32>, vector<128x128xf32>, vector<32x128xf32> -> vector<32x128xf32>
    %325 = arith.addf %323, %324 : vector<32x128xf32>
    %326 = math.tanh %325 : vector<32x128xf32>
    %c15_284 = arith.constant 15 : index
    %c0_285 = arith.constant 0 : index
    %c0_286 = arith.constant 0 : index
    %327 = vector.load %arg6[%c15_284, %c0_285, %c0_286] : memref<28x32x128xf32, #tpu.memory_space<vmem>>, vector<1x32x128xf32>
    %328 = vector.shape_cast %327 : vector<1x32x128xf32> to vector<32x128xf32>
    %329 = vector.shape_cast %326 : vector<32x128xf32> to vector<1x32x128xf32>
    tpu.vector_store %arg6[%c15_284, %c0_285, %c0_286], %329 {strides = array<i32>} : memref<28x32x128xf32, #tpu.memory_space<vmem>>, vector<1x32x128xf32>,
    %c16_287 = arith.constant 16 : index
    %c0_288 = arith.constant 0 : index
    %c0_289 = arith.constant 0 : index
    %330 = vector.load %arg7[%c16_287, %c0_288, %c0_289] : memref<28x32x128xf32, #tpu.memory_space<vmem>>, vector<1x32x128xf32>
    %331 = vector.shape_cast %330 : vector<1x32x128xf32> to vector<32x128xf32>
    %cst_290 = arith.constant dense<0.000000e+00> : vector<32x128xf32>
    %332 = tpu.matmul %326, %200, %cst_290 {dimension_numbers = #tpu.dot_dimension_numbers<[1], [0], [0], [1], [0, 0, 1, 1], [], []>} : vector<32x128xf32>, vector<128x128xf32>, vector<32x128xf32> -> vector<32x128xf32>
    %333 = arith.addf %331, %332 : vector<32x128xf32>
    %334 = math.tanh %333 : vector<32x128xf32>
    %c16_291 = arith.constant 16 : index
    %c0_292 = arith.constant 0 : index
    %c0_293 = arith.constant 0 : index
    %335 = vector.load %arg6[%c16_291, %c0_292, %c0_293] : memref<28x32x128xf32, #tpu.memory_space<vmem>>, vector<1x32x128xf32>
    %336 = vector.shape_cast %335 : vector<1x32x128xf32> to vector<32x128xf32>
    %337 = vector.shape_cast %334 : vector<32x128xf32> to vector<1x32x128xf32>
    tpu.vector_store %arg6[%c16_291, %c0_292, %c0_293], %337 {strides = array<i32>} : memref<28x32x128xf32, #tpu.memory_space<vmem>>, vector<1x32x128xf32>,
    %c17_294 = arith.constant 17 : index
    %c0_295 = arith.constant 0 : index
    %c0_296 = arith.constant 0 : index
    %338 = vector.load %arg7[%c17_294, %c0_295, %c0_296] : memref<28x32x128xf32, #tpu.memory_space<vmem>>, vector<1x32x128xf32>
    %339 = vector.shape_cast %338 : vector<1x32x128xf32> to vector<32x128xf32>
    %cst_297 = arith.constant dense<0.000000e+00> : vector<32x128xf32>
    %340 = tpu.matmul %334, %200, %cst_297 {dimension_numbers = #tpu.dot_dimension_numbers<[1], [0], [0], [1], [0, 0, 1, 1], [], []>} : vector<32x128xf32>, vector<128x128xf32>, vector<32x128xf32> -> vector<32x128xf32>
    %341 = arith.addf %339, %340 : vector<32x128xf32>
    %342 = math.tanh %341 : vector<32x128xf32>
    %c17_298 = arith.constant 17 : index
    %c0_299 = arith.constant 0 : index
    %c0_300 = arith.constant 0 : index
    %343 = vector.load %arg6[%c17_298, %c0_299, %c0_300] : memref<28x32x128xf32, #tpu.memory_space<vmem>>, vector<1x32x128xf32>
    %344 = vector.shape_cast %343 : vector<1x32x128xf32> to vector<32x128xf32>
    %345 = vector.shape_cast %342 : vector<32x128xf32> to vector<1x32x128xf32>
    tpu.vector_store %arg6[%c17_298, %c0_299, %c0_300], %345 {strides = array<i32>} : memref<28x32x128xf32, #tpu.memory_space<vmem>>, vector<1x32x128xf32>,
    %c18_301 = arith.constant 18 : index
    %c0_302 = arith.constant 0 : index
    %c0_303 = arith.constant 0 : index
    %346 = vector.load %arg7[%c18_301, %c0_302, %c0_303] : memref<28x32x128xf32, #tpu.memory_space<vmem>>, vector<1x32x128xf32>
    %347 = vector.shape_cast %346 : vector<1x32x128xf32> to vector<32x128xf32>
    %cst_304 = arith.constant dense<0.000000e+00> : vector<32x128xf32>
    %348 = tpu.matmul %342, %200, %cst_304 {dimension_numbers = #tpu.dot_dimension_numbers<[1], [0], [0], [1], [0, 0, 1, 1], [], []>} : vector<32x128xf32>, vector<128x128xf32>, vector<32x128xf32> -> vector<32x128xf32>
    %349 = arith.addf %347, %348 : vector<32x128xf32>
    %350 = math.tanh %349 : vector<32x128xf32>
    %c18_305 = arith.constant 18 : index
    %c0_306 = arith.constant 0 : index
    %c0_307 = arith.constant 0 : index
    %351 = vector.load %arg6[%c18_305, %c0_306, %c0_307] : memref<28x32x128xf32, #tpu.memory_space<vmem>>, vector<1x32x128xf32>
    %352 = vector.shape_cast %351 : vector<1x32x128xf32> to vector<32x128xf32>
    %353 = vector.shape_cast %350 : vector<32x128xf32> to vector<1x32x128xf32>
    tpu.vector_store %arg6[%c18_305, %c0_306, %c0_307], %353 {strides = array<i32>} : memref<28x32x128xf32, #tpu.memory_space<vmem>>, vector<1x32x128xf32>,
    %c19_308 = arith.constant 19 : index
    %c0_309 = arith.constant 0 : index
    %c0_310 = arith.constant 0 : index
    %354 = vector.load %arg7[%c19_308, %c0_309, %c0_310] : memref<28x32x128xf32, #tpu.memory_space<vmem>>, vector<1x32x128xf32>
    %355 = vector.shape_cast %354 : vector<1x32x128xf32> to vector<32x128xf32>
    %cst_311 = arith.constant dense<0.000000e+00> : vector<32x128xf32>
    %356 = tpu.matmul %350, %200, %cst_311 {dimension_numbers = #tpu.dot_dimension_numbers<[1], [0], [0], [1], [0, 0, 1, 1], [], []>} : vector<32x128xf32>, vector<128x128xf32>, vector<32x128xf32> -> vector<32x128xf32>
    %357 = arith.addf %355, %356 : vector<32x128xf32>
    %358 = math.tanh %357 : vector<32x128xf32>
    %c19_312 = arith.constant 19 : index
    %c0_313 = arith.constant 0 : index
    %c0_314 = arith.constant 0 : index
    %359 = vector.load %arg6[%c19_312, %c0_313, %c0_314] : memref<28x32x128xf32, #tpu.memory_space<vmem>>, vector<1x32x128xf32>
    %360 = vector.shape_cast %359 : vector<1x32x128xf32> to vector<32x128xf32>
    %361 = vector.shape_cast %358 : vector<32x128xf32> to vector<1x32x128xf32>
    tpu.vector_store %arg6[%c19_312, %c0_313, %c0_314], %361 {strides = array<i32>} : memref<28x32x128xf32, #tpu.memory_space<vmem>>, vector<1x32x128xf32>,
    %c20_315 = arith.constant 20 : index
    %c0_316 = arith.constant 0 : index
    %c0_317 = arith.constant 0 : index
    %362 = vector.load %arg7[%c20_315, %c0_316, %c0_317] : memref<28x32x128xf32, #tpu.memory_space<vmem>>, vector<1x32x128xf32>
    %363 = vector.shape_cast %362 : vector<1x32x128xf32> to vector<32x128xf32>
    %cst_318 = arith.constant dense<0.000000e+00> : vector<32x128xf32>
    %364 = tpu.matmul %358, %200, %cst_318 {dimension_numbers = #tpu.dot_dimension_numbers<[1], [0], [0], [1], [0, 0, 1, 1], [], []>} : vector<32x128xf32>, vector<128x128xf32>, vector<32x128xf32> -> vector<32x128xf32>
    %365 = arith.addf %363, %364 : vector<32x128xf32>
    %366 = math.tanh %365 : vector<32x128xf32>
    %c20_319 = arith.constant 20 : index
    %c0_320 = arith.constant 0 : index
    %c0_321 = arith.constant 0 : index
    %367 = vector.load %arg6[%c20_319, %c0_320, %c0_321] : memref<28x32x128xf32, #tpu.memory_space<vmem>>, vector<1x32x128xf32>
    %368 = vector.shape_cast %367 : vector<1x32x128xf32> to vector<32x128xf32>
    %369 = vector.shape_cast %366 : vector<32x128xf32> to vector<1x32x128xf32>
    tpu.vector_store %arg6[%c20_319, %c0_320, %c0_321], %369 {strides = array<i32>} : memref<28x32x128xf32, #tpu.memory_space<vmem>>, vector<1x32x128xf32>,
    %c21_322 = arith.constant 21 : index
    %c0_323 = arith.constant 0 : index
    %c0_324 = arith.constant 0 : index
    %370 = vector.load %arg7[%c21_322, %c0_323, %c0_324] : memref<28x32x128xf32, #tpu.memory_space<vmem>>, vector<1x32x128xf32>
    %371 = vector.shape_cast %370 : vector<1x32x128xf32> to vector<32x128xf32>
    %cst_325 = arith.constant dense<0.000000e+00> : vector<32x128xf32>
    %372 = tpu.matmul %366, %200, %cst_325 {dimension_numbers = #tpu.dot_dimension_numbers<[1], [0], [0], [1], [0, 0, 1, 1], [], []>} : vector<32x128xf32>, vector<128x128xf32>, vector<32x128xf32> -> vector<32x128xf32>
    %373 = arith.addf %371, %372 : vector<32x128xf32>
    %374 = math.tanh %373 : vector<32x128xf32>
    %c21_326 = arith.constant 21 : index
    %c0_327 = arith.constant 0 : index
    %c0_328 = arith.constant 0 : index
    %375 = vector.load %arg6[%c21_326, %c0_327, %c0_328] : memref<28x32x128xf32, #tpu.memory_space<vmem>>, vector<1x32x128xf32>
    %376 = vector.shape_cast %375 : vector<1x32x128xf32> to vector<32x128xf32>
    %377 = vector.shape_cast %374 : vector<32x128xf32> to vector<1x32x128xf32>
    tpu.vector_store %arg6[%c21_326, %c0_327, %c0_328], %377 {strides = array<i32>} : memref<28x32x128xf32, #tpu.memory_space<vmem>>, vector<1x32x128xf32>,
    %c22_329 = arith.constant 22 : index
    %c0_330 = arith.constant 0 : index
    %c0_331 = arith.constant 0 : index
    %378 = vector.load %arg7[%c22_329, %c0_330, %c0_331] : memref<28x32x128xf32, #tpu.memory_space<vmem>>, vector<1x32x128xf32>
    %379 = vector.shape_cast %378 : vector<1x32x128xf32> to vector<32x128xf32>
    %cst_332 = arith.constant dense<0.000000e+00> : vector<32x128xf32>
    %380 = tpu.matmul %374, %200, %cst_332 {dimension_numbers = #tpu.dot_dimension_numbers<[1], [0], [0], [1], [0, 0, 1, 1], [], []>} : vector<32x128xf32>, vector<128x128xf32>, vector<32x128xf32> -> vector<32x128xf32>
    %381 = arith.addf %379, %380 : vector<32x128xf32>
    %382 = math.tanh %381 : vector<32x128xf32>
    %c22_333 = arith.constant 22 : index
    %c0_334 = arith.constant 0 : index
    %c0_335 = arith.constant 0 : index
    %383 = vector.load %arg6[%c22_333, %c0_334, %c0_335] : memref<28x32x128xf32, #tpu.memory_space<vmem>>, vector<1x32x128xf32>
    %384 = vector.shape_cast %383 : vector<1x32x128xf32> to vector<32x128xf32>
    %385 = vector.shape_cast %382 : vector<32x128xf32> to vector<1x32x128xf32>
    tpu.vector_store %arg6[%c22_333, %c0_334, %c0_335], %385 {strides = array<i32>} : memref<28x32x128xf32, #tpu.memory_space<vmem>>, vector<1x32x128xf32>,
    %c23_336 = arith.constant 23 : index
    %c0_337 = arith.constant 0 : index
    %c0_338 = arith.constant 0 : index
    %386 = vector.load %arg7[%c23_336, %c0_337, %c0_338] : memref<28x32x128xf32, #tpu.memory_space<vmem>>, vector<1x32x128xf32>
    %387 = vector.shape_cast %386 : vector<1x32x128xf32> to vector<32x128xf32>
    %cst_339 = arith.constant dense<0.000000e+00> : vector<32x128xf32>
    %388 = tpu.matmul %382, %200, %cst_339 {dimension_numbers = #tpu.dot_dimension_numbers<[1], [0], [0], [1], [0, 0, 1, 1], [], []>} : vector<32x128xf32>, vector<128x128xf32>, vector<32x128xf32> -> vector<32x128xf32>
    %389 = arith.addf %387, %388 : vector<32x128xf32>
    %390 = math.tanh %389 : vector<32x128xf32>
    %c23_340 = arith.constant 23 : index
    %c0_341 = arith.constant 0 : index
    %c0_342 = arith.constant 0 : index
    %391 = vector.load %arg6[%c23_340, %c0_341, %c0_342] : memref<28x32x128xf32, #tpu.memory_space<vmem>>, vector<1x32x128xf32>
    %392 = vector.shape_cast %391 : vector<1x32x128xf32> to vector<32x128xf32>
    %393 = vector.shape_cast %390 : vector<32x128xf32> to vector<1x32x128xf32>
    tpu.vector_store %arg6[%c23_340, %c0_341, %c0_342], %393 {strides = array<i32>} : memref<28x32x128xf32, #tpu.memory_space<vmem>>, vector<1x32x128xf32>,
    %c24_343 = arith.constant 24 : index
    %c0_344 = arith.constant 0 : index
    %c0_345 = arith.constant 0 : index
    %394 = vector.load %arg7[%c24_343, %c0_344, %c0_345] : memref<28x32x128xf32, #tpu.memory_space<vmem>>, vector<1x32x128xf32>
    %395 = vector.shape_cast %394 : vector<1x32x128xf32> to vector<32x128xf32>
    %cst_346 = arith.constant dense<0.000000e+00> : vector<32x128xf32>
    %396 = tpu.matmul %390, %200, %cst_346 {dimension_numbers = #tpu.dot_dimension_numbers<[1], [0], [0], [1], [0, 0, 1, 1], [], []>} : vector<32x128xf32>, vector<128x128xf32>, vector<32x128xf32> -> vector<32x128xf32>
    %397 = arith.addf %395, %396 : vector<32x128xf32>
    %398 = math.tanh %397 : vector<32x128xf32>
    %c24_347 = arith.constant 24 : index
    %c0_348 = arith.constant 0 : index
    %c0_349 = arith.constant 0 : index
    %399 = vector.load %arg6[%c24_347, %c0_348, %c0_349] : memref<28x32x128xf32, #tpu.memory_space<vmem>>, vector<1x32x128xf32>
    %400 = vector.shape_cast %399 : vector<1x32x128xf32> to vector<32x128xf32>
    %401 = vector.shape_cast %398 : vector<32x128xf32> to vector<1x32x128xf32>
    tpu.vector_store %arg6[%c24_347, %c0_348, %c0_349], %401 {strides = array<i32>} : memref<28x32x128xf32, #tpu.memory_space<vmem>>, vector<1x32x128xf32>,
    %c25_350 = arith.constant 25 : index
    %c0_351 = arith.constant 0 : index
    %c0_352 = arith.constant 0 : index
    %402 = vector.load %arg7[%c25_350, %c0_351, %c0_352] : memref<28x32x128xf32, #tpu.memory_space<vmem>>, vector<1x32x128xf32>
    %403 = vector.shape_cast %402 : vector<1x32x128xf32> to vector<32x128xf32>
    %cst_353 = arith.constant dense<0.000000e+00> : vector<32x128xf32>
    %404 = tpu.matmul %398, %200, %cst_353 {dimension_numbers = #tpu.dot_dimension_numbers<[1], [0], [0], [1], [0, 0, 1, 1], [], []>} : vector<32x128xf32>, vector<128x128xf32>, vector<32x128xf32> -> vector<32x128xf32>
    %405 = arith.addf %403, %404 : vector<32x128xf32>
    %406 = math.tanh %405 : vector<32x128xf32>
    %c25_354 = arith.constant 25 : index
    %c0_355 = arith.constant 0 : index
    %c0_356 = arith.constant 0 : index
    %407 = vector.load %arg6[%c25_354, %c0_355, %c0_356] : memref<28x32x128xf32, #tpu.memory_space<vmem>>, vector<1x32x128xf32>
    %408 = vector.shape_cast %407 : vector<1x32x128xf32> to vector<32x128xf32>
    %409 = vector.shape_cast %406 : vector<32x128xf32> to vector<1x32x128xf32>
    tpu.vector_store %arg6[%c25_354, %c0_355, %c0_356], %409 {strides = array<i32>} : memref<28x32x128xf32, #tpu.memory_space<vmem>>, vector<1x32x128xf32>,
    %c26_357 = arith.constant 26 : index
    %c0_358 = arith.constant 0 : index
    %c0_359 = arith.constant 0 : index
    %410 = vector.load %arg7[%c26_357, %c0_358, %c0_359] : memref<28x32x128xf32, #tpu.memory_space<vmem>>, vector<1x32x128xf32>
    %411 = vector.shape_cast %410 : vector<1x32x128xf32> to vector<32x128xf32>
    %cst_360 = arith.constant dense<0.000000e+00> : vector<32x128xf32>
    %412 = tpu.matmul %406, %200, %cst_360 {dimension_numbers = #tpu.dot_dimension_numbers<[1], [0], [0], [1], [0, 0, 1, 1], [], []>} : vector<32x128xf32>, vector<128x128xf32>, vector<32x128xf32> -> vector<32x128xf32>
    %413 = arith.addf %411, %412 : vector<32x128xf32>
    %414 = math.tanh %413 : vector<32x128xf32>
    %c26_361 = arith.constant 26 : index
    %c0_362 = arith.constant 0 : index
    %c0_363 = arith.constant 0 : index
    %415 = vector.load %arg6[%c26_361, %c0_362, %c0_363] : memref<28x32x128xf32, #tpu.memory_space<vmem>>, vector<1x32x128xf32>
    %416 = vector.shape_cast %415 : vector<1x32x128xf32> to vector<32x128xf32>
    %417 = vector.shape_cast %414 : vector<32x128xf32> to vector<1x32x128xf32>
    tpu.vector_store %arg6[%c26_361, %c0_362, %c0_363], %417 {strides = array<i32>} : memref<28x32x128xf32, #tpu.memory_space<vmem>>, vector<1x32x128xf32>,
    %c27_364 = arith.constant 27 : index
    %c0_365 = arith.constant 0 : index
    %c0_366 = arith.constant 0 : index
    %418 = vector.load %arg7[%c27_364, %c0_365, %c0_366] : memref<28x32x128xf32, #tpu.memory_space<vmem>>, vector<1x32x128xf32>
    %419 = vector.shape_cast %418 : vector<1x32x128xf32> to vector<32x128xf32>
    %cst_367 = arith.constant dense<0.000000e+00> : vector<32x128xf32>
    %420 = tpu.matmul %414, %200, %cst_367 {dimension_numbers = #tpu.dot_dimension_numbers<[1], [0], [0], [1], [0, 0, 1, 1], [], []>} : vector<32x128xf32>, vector<128x128xf32>, vector<32x128xf32> -> vector<32x128xf32>
    %421 = arith.addf %419, %420 : vector<32x128xf32>
    %422 = math.tanh %421 : vector<32x128xf32>
    %c27_368 = arith.constant 27 : index
    %c0_369 = arith.constant 0 : index
    %c0_370 = arith.constant 0 : index
    %423 = vector.load %arg6[%c27_368, %c0_369, %c0_370] : memref<28x32x128xf32, #tpu.memory_space<vmem>>, vector<1x32x128xf32>
    %424 = vector.shape_cast %423 : vector<1x32x128xf32> to vector<32x128xf32>
    %425 = vector.shape_cast %422 : vector<32x128xf32> to vector<1x32x128xf32>
    tpu.vector_store %arg6[%c27_368, %c0_369, %c0_370], %425 {strides = array<i32>} : memref<28x32x128xf32, #tpu.memory_space<vmem>>, vector<1x32x128xf32>,
    return
  }
  func.func @transform_0(%arg0: i32) -> (i32, i32, i32) {
    %c0_i32 = arith.constant 0 : i32
    %c0_i32_0 = arith.constant 0 : i32
    %c0_i32_1 = arith.constant 0 : i32
    %c0_i32_2 = arith.constant 0 : i32
    return %c0_i32, %c0_i32_0, %c0_i32_1 : i32, i32, i32
  }
  func.func @transform_1(%arg0: i32) -> (i32, i32) {
    %c0_i32 = arith.constant 0 : i32
    %c0_i32_0 = arith.constant 0 : i32
    %c0_i32_1 = arith.constant 0 : i32
    return %c0_i32, %c0_i32_0 : i32, i32
  }
  func.func @transform_2(%arg0: i32) -> (i32, i32) {
    %c0_i32 = arith.constant 0 : i32
    %c0_i32_0 = arith.constant 0 : i32
    %c0_i32_1 = arith.constant 0 : i32
    return %c0_i32, %c0_i32_0 : i32, i32
  }
  func.func @transform_3(%arg0: i32) -> (i32, i32) {
    %c0_i32 = arith.constant 0 : i32
    %c0_i32_0 = arith.constant 0 : i32
    %c0_i32_1 = arith.constant 0 : i32
    return %c0_i32, %c0_i32_0 : i32, i32
  }
  func.func @transform_4(%arg0: i32) -> (i32, i32) {
    %c0_i32 = arith.constant 0 : i32
    %c0_i32_0 = arith.constant 0 : i32
    %c0_i32_1 = arith.constant 0 : i32
    return %c0_i32, %c0_i32_0 : i32, i32
  }
  func.func @transform_5(%arg0: i32) -> (i32, i32, i32) {
    %c0_i32 = arith.constant 0 : i32
    %c0_i32_0 = arith.constant 0 : i32
    %c0_i32_1 = arith.constant 0 : i32
    %c0_i32_2 = arith.constant 0 : i32
    return %c0_i32, %c0_i32_0, %c0_i32_1 : i32, i32, i32
  }
}

</mosaic_0001>

<bundles_post_ra>
// kernel: rnn_forward.1
= control target key start
LH: loop header
LB: loop body
LE: loop exit
PB: predicated region body
PF: predicated region fallthrough
CT: control target
= control target key end

     0   :  { %vm35_vm0 = vcmask 261120   ;;  %s11498_s2 = inlined_call_operand.vmem [shape: f32[32,128], index: 2, kind: input, shape index: {}]   ;;  %s11499_s0 = inlined_call_operand.vmem [shape: f32[28,32,32], index: 0, kind: input, shape index: {}]   ;;  %s11500_s3 = inlined_call_operand.vmem [shape: f32[128,128], index: 3, kind: input, shape index: {}]   ;;  %s11501_s1 = inlined_call_operand.vmem [shape: f32[32,128], index: 1, kind: input, shape index: {}]   ;;  %s11502_s4 = inlined_call_operand.vmem [shape: f32[1,128], index: 4, kind: input, shape index: {}]   ;;  %s11503_s5 = inlined_call_operand.vmem [shape: f32[28,32,128], index: 5, kind: output, shape index: {}]  }
   0x1   :  { %v8786_v0 = vld [vmem:[%s11498_s2 + $0x18] sm:$0xff]  ;;  %v8791_v1 = vld [vmem:[%s11498_s2 + $0x10] sm:$0xff]  ;;  %v31_v2 = vld [vmem:[%s11499_s0] sm:$0xff] }
   0x2   :  { %7018 = vmatprep.subr.mxu0 %v8786_v0  ;;  %7032 = vmatprep.subr.mxu1 %v8786_v0  ;;  %v8802_v3 = vld [vmem:[%s11498_s2 + $0x8] sm:$0xff]  ;;  %v8811_v4 = vld [vmem:[%s11498_s2] sm:$0xff]  ;;  %v33_v6 = vld [vmem:[%s11499_s0 + $0x10] sm:$0xff] }
   0x3   :  { %7019 = vmatpush3.msra.mxu0 %v8786_v0  ;;  %7026 = vmatprep.mubr.msk.f32.mxu0 %vm35_vm0, %v31_v2  ;;  %v32_v5 = vld [vmem:[%s11499_s0 + $0x8] sm:$0xff]  ;;  %v34_v7 = vld [vmem:[%s11499_s0 + $0x18] sm:$0xff]  ;;  %v5918_v8 = vld [vmem:[%s11499_s0 + $0x40] sm:$0xff] }
   0x4   :  { %7020 = vmatprep.subr.mxu0 %v8791_v1  ;;  %7033 = vmatpush3.msra.mxu1 %v8786_v0  ;;  %v5919_v9 = vld [vmem:[%s11499_s0 + $0x48] sm:$0xff]  ;;  %v5920_v10 = vld [vmem:[%s11499_s0 + $0x50] sm:$0xff]  ;;  %v5921_v11 = vld [vmem:[%s11499_s0 + $0x58] sm:$0xff] }
   0x5   :  { %7021 = vmatpush3.msra.mxu0 %v8791_v1  ;;  %7034 = vmatprep.subr.mxu1 %v8791_v1  ;;  %v5934_v12 = vld [vmem:[%s11499_s0 + $0x80] sm:$0xff]  ;;  %v5935_v13 = vld [vmem:[%s11499_s0 + $0x88] sm:$0xff]  ;;  %v5936_v14 = vld [vmem:[%s11499_s0 + $0x90] sm:$0xff] }
   0x6   :  { %7022 = vmatprep.subr.mxu0 %v8802_v3  ;;  %7035 = vmatpush3.msra.mxu1 %v8791_v1  ;;  %v5937_v15 = vld [vmem:[%s11499_s0 + $0x98] sm:$0xff]  ;;  %v5950_v16 = vld [vmem:[%s11499_s0 + $0xc0] sm:$0xff]  ;;  %v5951_v17 = vld [vmem:[%s11499_s0 + $0xc8] sm:$0xff] }
   0x7   :  { %7023 = vmatpush3.msra.mxu0 %v8802_v3  ;;  %7036 = vmatprep.subr.mxu1 %v8802_v3  ;;  %v5952_v18 = vld [vmem:[%s11499_s0 + $0xd0] sm:$0xff]  ;;  %v5953_v19 = vld [vmem:[%s11499_s0 + $0xd8] sm:$0xff]  ;;  %v5966_v20 = vld [vmem:[%s11499_s0 + $0x100] sm:$0xff] }
   0x8   :  { %7024 = vmatprep.subr.mxu0 %v8811_v4  ;;  %7037 = vmatpush3.msra.mxu1 %v8802_v3  ;;  %v5967_v21 = vld [vmem:[%s11499_s0 + $0x108] sm:$0xff]  ;;  %v5968_v22 = vld [vmem:[%s11499_s0 + $0x110] sm:$0xff]  ;;  %v5969_v23 = vld [vmem:[%s11499_s0 + $0x118] sm:$0xff] }
   0x9   :  { %7025 = vmatpush3.msra.mxu0 %v8811_v4  ;;  %7038 = vmatprep.subr.mxu1 %v8811_v4  ;;  %v5982_v24 = vld [vmem:[%s11499_s0 + $0x140] sm:$0xff]  ;;  %v5983_v25 = vld [vmem:[%s11499_s0 + $0x148] sm:$0xff]  ;;  %v5984_v26 = vld [vmem:[%s11499_s0 + $0x150] sm:$0xff] }
   0xa   :  { %7027 = vmatmul.mubr.msk.f32.vlgmr.msra.gmra.mxu0 %vm35_vm0, %v32_v5  ;;  %7046 = vmatprep.subr.mxu0 %v8786_v0  ;;  %v5985_v27 = vld [vmem:[%s11499_s0 + $0x158] sm:$0xff]  ;;  %v5998_v28 = vld [vmem:[%s11499_s0 + $0x180] sm:$0xff]  ;;  %v5999_v29 = vld [vmem:[%s11499_s0 + $0x188] sm:$0xff] }
   0xb   :  { %7047 = vmatpush3.msra.mxu0 %v8786_v0  ;;  %7029 = vmatprep.mubr.msk.f32.mxu0 %vm35_vm0, %v33_v6  ;;  %v6000_v30 = vld [vmem:[%s11499_s0 + $0x190] sm:$0xff]  ;;  %v6001_v31 = vld [vmem:[%s11499_s0 + $0x198] sm:$0xff]  ;;  %v6014_v32 = vld [vmem:[%s11499_s0 + $0x1c0] sm:$0xff] }
   0xc   :  { %7048 = vmatprep.subr.mxu0 %v8791_v1  ;;  %7039 = vmatpush3.msra.mxu1 %v8811_v4  ;;  %v6015_v33 = vld [vmem:[%s11499_s0 + $0x1c8] sm:$0xff]  ;;  %v6016_v34 = vld [vmem:[%s11499_s0 + $0x1d0] sm:$0xff]  ;;  %v6017_v35 = vld [vmem:[%s11499_s0 + $0x1d8] sm:$0xff] }
   0xd   :  { %7049 = vmatpush3.msra.mxu0 %v8791_v1  ;;  %7060 = vmatprep.subr.mxu1 %v8786_v0  ;;  %v6030_v36 = vld [vmem:[%s11499_s0 + $0x200] sm:$0xff]  ;;  %v6031_v37 = vld [vmem:[%s11499_s0 + $0x208] sm:$0xff]  ;;  %v6032_v38 = vld [vmem:[%s11499_s0 + $0x210] sm:$0xff] }
   0xe   :  { %7030 = vmatmul.mubr.msk.f32.gmra.mxu0 %vm35_vm0, %v34_v7  ;;  %7050 = vmatprep.subr.mxu0 %v8802_v3  ;;  %v6033_v39 = vld [vmem:[%s11499_s0 + $0x218] sm:$0xff]  ;;  %v6046_v40 = vld [vmem:[%s11499_s0 + $0x240] sm:$0xff]  ;;  %v6047_v41 = vld [vmem:[%s11499_s0 + $0x248] sm:$0xff] }
   0xf   :  { %7051 = vmatpush3.msra.mxu0 %v8802_v3  ;;  %7054 = vmatprep.mubr.msk.f32.mxu0 %vm35_vm0, %v5918_v8  ;;  %v6048_v42 = vld [vmem:[%s11499_s0 + $0x250] sm:$0xff]  ;;  %v6049_v43 = vld [vmem:[%s11499_s0 + $0x258] sm:$0xff]  ;;  %v6062_v44 = vld [vmem:[%s11499_s0 + $0x280] sm:$0xff] }
  0x10   :  { %7052 = vmatprep.subr.mxu0 %v8811_v4  ;;  %v6063_v45 = vld [vmem:[%s11499_s0 + $0x288] sm:$0xff]  ;;  %v6064_v46 = vld [vmem:[%s11499_s0 + $0x290] sm:$0xff]  ;;  %v6065_v47 = vld [vmem:[%s11499_s0 + $0x298] sm:$0xff] }
  0x11   :  { %7053 = vmatpush3.msra.mxu0 %v8811_v4  ;;  %v5910_v48 = vld [vmem:[%s11499_s0 + $0x20] sm:$0xff]  ;;  %v5911_v50 = vld [vmem:[%s11499_s0 + $0x28] sm:$0xff]  ;;  %v6080_v52 = vld [vmem:[%s11499_s0 + $0x2d0] sm:$0xff] }
  0x12   :  { %7055 = vmatmul.mubr.msk.f32.vlgmr.msra.gmra.mxu0 %vm35_vm0, %v5919_v9  ;;  %7074 = vmatprep.subr.mxu0 %v8786_v0  ;;  %v6078_v49 = vld [vmem:[%s11499_s0 + $0x2c0] sm:$0xff]  ;;  %v6079_v51 = vld [vmem:[%s11499_s0 + $0x2c8] sm:$0xff]  ;;  %v5912_v53 = vld [vmem:[%s11499_s0 + $0x30] sm:$0xff] }
  0x13   :  { %7075 = vmatpush3.msra.mxu0 %v8786_v0  ;;  %7057 = vmatprep.mubr.msk.f32.mxu0 %vm35_vm0, %v5920_v10  ;;  %v6081_v54 = vld [vmem:[%s11499_s0 + $0x2d8] sm:$0xff]  ;;  %v6094_v55 = vld [vmem:[%s11499_s0 + $0x300] sm:$0xff]  ;;  %v6095_v57 = vld [vmem:[%s11499_s0 + $0x308] sm:$0xff] }
  0x14   :  { %7076 = vmatprep.subr.mxu0 %v8791_v1  ;;  %7040 = vmatprep.mubr.msk.f32.mxu1 %vm35_vm0, %v5910_v48  ;;  %v5913_v56 = vld [vmem:[%s11499_s0 + $0x38] sm:$0xff]  ;;  %v6096_v58 = vld [vmem:[%s11499_s0 + $0x310] sm:$0xff]  ;;  %v6110_v60 = vld [vmem:[%s11499_s0 + $0x340] sm:$0xff] }
  0x15   :  { %7077 = vmatpush3.msra.mxu0 %v8791_v1  ;;  %7041 = vmatmul.mubr.msk.f32.vlgmr.msra.gmra.mxu1 %vm35_vm0, %v5911_v50  ;;  %v6097_v59 = vld [vmem:[%s11499_s0 + $0x318] sm:$0xff]  ;;  %v5926_v61 = vld [vmem:[%s11499_s0 + $0x60] sm:$0xff]  ;;  %v6111_v62 = vld [vmem:[%s11499_s0 + $0x348] sm:$0xff] }
  0x16   :  { %7058 = vmatmul.mubr.msk.f32.gmra.mxu0 %vm35_vm0, %v5921_v11  ;;  %7078 = vmatprep.subr.mxu0 %v8802_v3  ;;  %v9165_v63 = vld [vmem:[%s11500_s3 + $0x78] sm:$0xff]  ;;  %v6112_v2 = vld [vmem:[%s11499_s0 + $0x350] sm:$0xff]  ;;  %v5927_v6 = vld [vmem:[%s11499_s0 + $0x68] sm:$0xff] }
  0x17   :  { %7079 = vmatpush3.msra.mxu0 %v8802_v3  ;;  %7082 = vmatprep.mubr.msk.f32.mxu0 %vm35_vm0, %v5934_v12  ;;  %v9176_v5 = vld [vmem:[%s11500_s3 + $0x70] sm:$0xff]  ;;  %v9188_v7 = vld [vmem:[%s11500_s3 + $0x68] sm:$0xff]  ;;  %v6113_v8 = vld [vmem:[%s11499_s0 + $0x358] sm:$0xff] }
  0x18   :  { %7080 = vmatprep.subr.mxu0 %v8811_v4  ;;  %7061 = vmatpush3.msra.mxu1 %v8786_v0  ;;  %v3042_v9 = vld [vmem:[%s11501_s1] sm:$0xff]  ;;  %v9212_v11 = vld [vmem:[%s11500_s3 + $0x58] sm:$0xff]  ;;  %v5928_v12 = vld [vmem:[%s11499_s0 + $0x70] sm:$0xff] }
  0x19   :  { %7081 = vmatpush3.msra.mxu0 %v8811_v4  ;;  %7062 = vmatprep.subr.mxu1 %v8791_v1  ;;  %v9203_v10 = vld [vmem:[%s11500_s3 + $0x60] sm:$0xff]  ;;  %v6024_v50 = vld [vmem:[%s11499_s0 + $0x1f0] sm:$0xff] }
  0x1a   :  { %7083 = vmatmul.mubr.msk.f32.vlgmr.msra.gmra.mxu0 %vm35_vm0, %v5935_v13  ;;  %7102 = vmatprep.subr.mxu0 %v8786_v0  ;;  %v9223_v13 = vld [vmem:[%s11500_s3 + $0x50] sm:$0xff]  ;;  %v6022_v48 = vld [vmem:[%s11499_s0 + $0x1e0] sm:$0xff] }
  0x1b   :  { %7103 = vmatpush3.msra.mxu0 %v8786_v0  ;;  %7085 = vmatprep.mubr.msk.f32.mxu0 %vm35_vm0, %v5936_v14  ;;  %v5929_v14 = vld [vmem:[%s11499_s0 + $0x78] sm:$0xff] }
  0x1c   :  { %7104 = vmatprep.subr.mxu0 %v8791_v1  ;;  %7043 = vmatprep.mubr.msk.f32.mxu1 %vm35_vm0, %v5912_v53  ;;  %v6039_v53 = vld [vmem:[%s11499_s0 + $0x228] sm:$0xff] }
  0x1d   :  { %7105 = vmatpush3.msra.mxu0 %v8791_v1  ;;  %7063 = vmatpush3.msra.mxu1 %v8791_v1 }
  0x1e   :  { %7086 = vmatmul.mubr.msk.f32.gmra.mxu0 %vm35_vm0, %v5937_v15  ;;  %7106 = vmatprep.subr.mxu0 %v8802_v3  ;;  %v9235_v15 = vld [vmem:[%s11500_s3 + $0x48] sm:$0xff] }
  0x1f   :  { %7107 = vmatpush3.msra.mxu0 %v8802_v3  ;;  %7110 = vmatprep.mubr.msk.f32.mxu0 %vm35_vm0, %v5950_v16  ;;  %v9244_v16 = vld [vmem:[%s11500_s3 + $0x40] sm:$0xff] }
  0x20   :  { %7108 = vmatprep.subr.mxu0 %v8811_v4  ;;  %7044 = vmatmul.mubr.msk.f32.gmra.mxu1 %vm35_vm0, %v5913_v56  ;;  %v6054_v56 = vld [vmem:[%s11499_s0 + $0x260] sm:$0xff] }
  0x21   :  { %7109 = vmatpush3.msra.mxu0 %v8811_v4  ;;  %7064 = vmatprep.subr.mxu1 %v8802_v3 }
  0x22   :  { %7111 = vmatmul.mubr.msk.f32.vlgmr.msra.gmra.mxu0 %vm35_vm0, %v5951_v17  ;;  %7130 = vmatprep.subr.mxu0 %v8786_v0  ;;  %v5942_v17 = vld [vmem:[%s11499_s0 + $0xa0] sm:$0xff] }
  0x23   :  { %7131 = vmatpush3.msra.mxu0 %v8786_v0  ;;  %7113 = vmatprep.mubr.msk.f32.mxu0 %vm35_vm0, %v5952_v18  ;;  %v9256_v18 = vld [vmem:[%s11500_s3 + $0x38] sm:$0xff] }
  0x24   :  { %7132 = vmatprep.subr.mxu0 %v8791_v1  ;;  %7065 = vmatpush3.msra.mxu1 %v8802_v3 }
  0x25   :  { %7133 = vmatpush3.msra.mxu0 %v8791_v1  ;;  %7066 = vmatprep.subr.mxu1 %v8811_v4 }
  0x26   :  { %7114 = vmatmul.mubr.msk.f32.gmra.mxu0 %vm35_vm0, %v5953_v19  ;;  %7134 = vmatprep.subr.mxu0 %v8802_v3  ;;  %v5943_v19 = vld [vmem:[%s11499_s0 + $0xa8] sm:$0xff] }
  0x27   :  { %7135 = vmatpush3.msra.mxu0 %v8802_v3  ;;  %7138 = vmatprep.mubr.msk.f32.mxu0 %vm35_vm0, %v5966_v20  ;;  %v9268_v20 = vld [vmem:[%s11500_s3 + $0x30] sm:$0xff] }
  0x28   :  { %7136 = vmatprep.subr.mxu0 %v8811_v4  ;;  %7067 = vmatpush3.msra.mxu1 %v8811_v4 }
  0x29   :  { %7137 = vmatpush3.msra.mxu0 %v8811_v4  ;;  %7068 = vmatprep.mubr.msk.f32.mxu1 %vm35_vm0, %v5926_v61  ;;  %v6071_v61 = vld [vmem:[%s11499_s0 + $0x2a8] sm:$0xff] }
  0x2a   :  { %7139 = vmatmul.mubr.msk.f32.vlgmr.msra.gmra.mxu0 %vm35_vm0, %v5967_v21  ;;  %7158 = vmatprep.subr.mxu0 %v8786_v0  ;;  %v9277_v21 = vld [vmem:[%s11500_s3 + $0x28] sm:$0xff] }
  0x2b   :  { %7159 = vmatpush3.msra.mxu0 %v8786_v0  ;;  %7141 = vmatprep.mubr.msk.f32.mxu0 %vm35_vm0, %v5968_v22  ;;  %v5944_v22 = vld [vmem:[%s11499_s0 + $0xb0] sm:$0xff] }
  0x2c   :  { %7160 = vmatprep.subr.mxu0 %v8791_v1  ;;  %7069 = vmatmul.mubr.msk.f32.vlgmr.msra.gmra.mxu1 %vm35_vm0, %v5927_v6 }
  0x2d   :  { %7161 = vmatpush3.msra.mxu0 %v8791_v1  ;;  %7088 = vmatprep.subr.mxu1 %v8786_v0 }
  0x2e   :  { %7142 = vmatmul.mubr.msk.f32.gmra.mxu0 %vm35_vm0, %v5969_v23  ;;  %7162 = vmatprep.subr.mxu0 %v8802_v3  ;;  %v9289_v23 = vld [vmem:[%s11500_s3 + $0x20] sm:$0xff] }
  0x2f   :  { %7163 = vmatpush3.msra.mxu0 %v8802_v3  ;;  %7166 = vmatprep.mubr.msk.f32.mxu0 %vm35_vm0, %v5982_v24  ;;  %v5945_v24 = vld [vmem:[%s11499_s0 + $0xb8] sm:$0xff] }
  0x30   :  { %7164 = vmatprep.subr.mxu0 %v8811_v4  ;;  %7089 = vmatpush3.msra.mxu1 %v8786_v0 }
  0x31   :  { %7165 = vmatpush3.msra.mxu0 %v8811_v4  ;;  %7090 = vmatprep.subr.mxu1 %v8791_v1 }
  0x32   :  { %7167 = vmatmul.mubr.msk.f32.vlgmr.msra.gmra.mxu0 %vm35_vm0, %v5983_v25  ;;  %7186 = vmatprep.subr.mxu0 %v8786_v0  ;;  %v9301_v25 = vld [vmem:[%s11500_s3 + $0x18] sm:$0xff] }
  0x33   :  { %7187 = vmatpush3.msra.mxu0 %v8786_v0  ;;  %7169 = vmatprep.mubr.msk.f32.mxu0 %vm35_vm0, %v5984_v26  ;;  %v9310_v26 = vld [vmem:[%s11500_s3 + $0x10] sm:$0xff] }
  0x34   :  { %7188 = vmatprep.subr.mxu0 %v8791_v1  ;;  %7071 = vmatprep.mubr.msk.f32.mxu1 %vm35_vm0, %v5928_v12  ;;  %v6087_v12 = vld [vmem:[%s11499_s0 + $0x2e8] sm:$0xff] }
  0x35   :  { %7189 = vmatpush3.msra.mxu0 %v8791_v1  ;;  %7091 = vmatpush3.msra.mxu1 %v8791_v1 }
  0x36   :  { %7170 = vmatmul.mubr.msk.f32.gmra.mxu0 %vm35_vm0, %v5985_v27  ;;  %7190 = vmatprep.subr.mxu0 %v8802_v3  ;;  %v5958_v27 = vld [vmem:[%s11499_s0 + $0xe0] sm:$0xff] }
  0x37   :  { %7191 = vmatpush3.msra.mxu0 %v8802_v3  ;;  %7194 = vmatprep.mubr.msk.f32.mxu0 %vm35_vm0, %v5998_v28  ;;  %v9322_v28 = vld [vmem:[%s11500_s3 + $0x8] sm:$0xff] }
  0x38   :  { %7192 = vmatprep.subr.mxu0 %v8811_v4  ;;  %7072 = vmatmul.mubr.msk.f32.gmra.mxu1 %vm35_vm0, %v5929_v14 }
  0x39   :  { %7193 = vmatpush3.msra.mxu0 %v8811_v4  ;;  %7092 = vmatprep.subr.mxu1 %v8802_v3 }
  0x3a   :  { %7195 = vmatmul.mubr.msk.f32.vlgmr.msra.gmra.mxu0 %vm35_vm0, %v5999_v29  ;;  %7214 = vmatprep.subr.mxu0 %v8786_v0  ;;  %v5959_v29 = vld [vmem:[%s11499_s0 + $0xe8] sm:$0xff] }
  0x3b   :  { %7215 = vmatpush3.msra.mxu0 %v8786_v0  ;;  %7197 = vmatprep.mubr.msk.f32.mxu0 %vm35_vm0, %v6000_v30  ;;  %v9334_v30 = vld [vmem:[%s11500_s3] sm:$0xff] }
  0x3c   :  { %7216 = vmatprep.subr.mxu0 %v8791_v1  ;;  %7093 = vmatpush3.msra.mxu1 %v8802_v3 }
  0x3d   :  { %7217 = vmatpush3.msra.mxu0 %v8791_v1  ;;  %7094 = vmatprep.subr.mxu1 %v8811_v4 }
  0x3e   :  { %7198 = vmatmul.mubr.msk.f32.gmra.mxu0 %vm35_vm0, %v6001_v31  ;;  %7218 = vmatprep.subr.mxu0 %v8802_v3  ;;  %v3043_v31 = vld [vmem:[%s11501_s1 + $0x8] sm:$0xff] }
  0x3f   :  { %7219 = vmatpush3.msra.mxu0 %v8802_v3  ;;  %7222 = vmatprep.mubr.msk.f32.mxu0 %vm35_vm0, %v6014_v32  ;;  %v5960_v32 = vld [vmem:[%s11499_s0 + $0xf0] sm:$0xff] }
  0x40   :  { %7220 = vmatprep.subr.mxu0 %v8811_v4  ;;  %7095 = vmatpush3.msra.mxu1 %v8811_v4 }
  0x41   :  { %7221 = vmatpush3.msra.mxu0 %v8811_v4  ;;  %7096 = vmatprep.mubr.msk.f32.mxu1 %vm35_vm0, %v5942_v17  ;;  %v6089_v17 = vld [vmem:[%s11499_s0 + $0x2f8] sm:$0xff] }
  0x42   :  { %7223 = vmatmul.mubr.msk.f32.vlgmr.msra.gmra.mxu0 %vm35_vm0, %v6015_v33  ;;  %7242 = vmatprep.subr.mxu0 %v8786_v0  ;;  %v3044_v33 = vld [vmem:[%s11501_s1 + $0x10] sm:$0xff] }
  0x43   :  { %7243 = vmatpush3.msra.mxu0 %v8786_v0  ;;  %7225 = vmatprep.mubr.msk.f32.mxu0 %vm35_vm0, %v6016_v34  ;;  %v5961_v34 = vld [vmem:[%s11499_s0 + $0xf8] sm:$0xff] }
  0x44   :  { %7244 = vmatprep.subr.mxu0 %v8791_v1  ;;  %7097 = vmatmul.mubr.msk.f32.vlgmr.msra.gmra.mxu1 %vm35_vm0, %v5943_v19 }
  0x45   :  { %7245 = vmatpush3.msra.mxu0 %v8791_v1  ;;  %7116 = vmatprep.subr.mxu1 %v8786_v0 }
  0x46   :  { %7226 = vmatmul.mubr.msk.f32.gmra.mxu0 %vm35_vm0, %v6017_v35  ;;  %7246 = vmatprep.subr.mxu0 %v8802_v3  ;;  %v5974_v35 = vld [vmem:[%s11499_s0 + $0x120] sm:$0xff] }
  0x47   :  { %7247 = vmatpush3.msra.mxu0 %v8802_v3  ;;  %7250 = vmatprep.mubr.msk.f32.mxu0 %vm35_vm0, %v6030_v36  ;;  %v3045_v36 = vld [vmem:[%s11501_s1 + $0x18] sm:$0xff] }
  0x48   :  { %7248 = vmatprep.subr.mxu0 %v8811_v4  ;;  %7117 = vmatpush3.msra.mxu1 %v8786_v0 }
  0x49   :  { %7249 = vmatpush3.msra.mxu0 %v8811_v4  ;;  %7118 = vmatprep.subr.mxu1 %v8791_v1 }
  0x4a   :  { %7251 = vmatmul.mubr.msk.f32.vlgmr.msra.gmra.mxu0 %vm35_vm0, %v6031_v37  ;;  %7270 = vmatprep.subr.mxu0 %v8786_v0  ;;  %v5975_v37 = vld [vmem:[%s11499_s0 + $0x128] sm:$0xff] }
  0x4b   :  { %7271 = vmatpush3.msra.mxu0 %v8786_v0  ;;  %7253 = vmatprep.mubr.msk.f32.mxu0 %vm35_vm0, %v6032_v38  ;;  %v5976_v38 = vld [vmem:[%s11499_s0 + $0x130] sm:$0xff] }
  0x4c   :  { %7272 = vmatprep.subr.mxu0 %v8791_v1  ;;  %7099 = vmatprep.mubr.msk.f32.mxu1 %vm35_vm0, %v5944_v22  ;;  %v6102_v22 = vld [vmem:[%s11499_s0 + $0x320] sm:$0xff] }
  0x4d   :  { %7273 = vmatpush3.msra.mxu0 %v8791_v1  ;;  %7119 = vmatpush3.msra.mxu1 %v8791_v1 }
  0x4e   :  { %7254 = vmatmul.mubr.msk.f32.gmra.mxu0 %vm35_vm0, %v6033_v39  ;;  %7274 = vmatprep.subr.mxu0 %v8802_v3  ;;  %v5977_v39 = vld [vmem:[%s11499_s0 + $0x138] sm:$0xff] }
  0x4f   :  { %7275 = vmatpush3.msra.mxu0 %v8802_v3  ;;  %7278 = vmatprep.mubr.msk.f32.mxu0 %vm35_vm0, %v6046_v40  ;;  %v5990_v40 = vld [vmem:[%s11499_s0 + $0x160] sm:$0xff] }
  0x50   :  { %7276 = vmatprep.subr.mxu0 %v8811_v4  ;;  %7100 = vmatmul.mubr.msk.f32.gmra.mxu1 %vm35_vm0, %v5945_v24  ;;  %v8699_v24 = vld [vmem:[%s11498_s2 + $0x8] sm:$0xff] }
  0x51   :  { %7277 = vmatpush3.msra.mxu0 %v8811_v4  ;;  %7120 = vmatprep.subr.mxu1 %v8802_v3 }
  0x52   :  { %7279 = vmatmul.mubr.msk.f32.vlgmr.msra.gmra.mxu0 %vm35_vm0, %v6047_v41  ;;  %7298 = vmatprep.subr.mxu0 %v8786_v0  ;;  %v5991_v41 = vld [vmem:[%s11499_s0 + $0x168] sm:$0xff] }
  0x53   :  { %7299 = vmatpush3.msra.mxu0 %v8786_v0  ;;  %7281 = vmatprep.mubr.msk.f32.mxu0 %vm35_vm0, %v6048_v42  ;;  %v5992_v42 = vld [vmem:[%s11499_s0 + $0x170] sm:$0xff] }
  0x54   :  { %7300 = vmatprep.subr.mxu0 %v8791_v1  ;;  %7121 = vmatpush3.msra.mxu1 %v8802_v3 }
  0x55   :  { %7301 = vmatpush3.msra.mxu0 %v8791_v1  ;;  %7122 = vmatprep.subr.mxu1 %v8811_v4 }
  0x56   :  { %7282 = vmatmul.mubr.msk.f32.gmra.mxu0 %vm35_vm0, %v6049_v43  ;;  %7302 = vmatprep.subr.mxu0 %v8802_v3  ;;  %v5993_v43 = vld [vmem:[%s11499_s0 + $0x178] sm:$0xff] }
  0x57   :  { %7303 = vmatpush3.msra.mxu0 %v8802_v3  ;;  %7306 = vmatprep.mubr.msk.f32.mxu0 %vm35_vm0, %v6062_v44  ;;  %v6006_v44 = vld [vmem:[%s11499_s0 + $0x1a0] sm:$0xff] }
  0x58   :  { %7304 = vmatprep.subr.mxu0 %v8811_v4  ;;  %7123 = vmatpush3.msra.mxu1 %v8811_v4 }
  0x59   :  { %7305 = vmatpush3.msra.mxu0 %v8811_v4  ;;  %7124 = vmatprep.mubr.msk.f32.mxu1 %vm35_vm0, %v5958_v27  ;;  %v6103_v27 = vld [vmem:[%s11499_s0 + $0x328] sm:$0xff] }
  0x5a   :  { %7307 = vmatmul.mubr.msk.f32.vlgmr.msra.gmra.mxu0 %vm35_vm0, %v6063_v45  ;;  %7326 = vmatprep.subr.mxu0 %v8786_v0  ;;  %v6007_v45 = vld [vmem:[%s11499_s0 + $0x1a8] sm:$0xff] }
  0x5b   :  { %7327 = vmatpush3.msra.mxu0 %v8786_v0  ;;  %7309 = vmatprep.mubr.msk.f32.mxu0 %vm35_vm0, %v6064_v46  ;;  %v6008_v46 = vld [vmem:[%s11499_s0 + $0x1b0] sm:$0xff] }
  0x5c   :  { %7328 = vmatprep.subr.mxu0 %v8791_v1  ;;  %7125 = vmatmul.mubr.msk.f32.vlgmr.msra.gmra.mxu1 %vm35_vm0, %v5959_v29 }
  0x5d   :  { %7329 = vmatpush3.msra.mxu0 %v8791_v1  ;;  %7144 = vmatprep.subr.mxu1 %v8786_v0 }
  0x5e   :  { %7310 = vmatmul.mubr.msk.f32.gmra.mxu0 %vm35_vm0, %v6065_v47  ;;  %7330 = vmatprep.subr.mxu0 %v8802_v3  ;;  %v6009_v47 = vld [vmem:[%s11499_s0 + $0x1b8] sm:$0xff] }
  0x5f   :  { %7331 = vmatpush3.msra.mxu0 %v8802_v3  ;;  %7334 = vmatprep.mubr.msk.f32.mxu0 %vm35_vm0, %v6078_v49  ;;  %v6023_v49 = vld [vmem:[%s11499_s0 + $0x1e8] sm:$0xff] }
  0x60   :  { %7332 = vmatprep.subr.mxu0 %v8811_v4  ;;  %7145 = vmatpush3.msra.mxu1 %v8786_v0 }
  0x61   :  { %7333 = vmatpush3.msra.mxu0 %v8811_v4  ;;  %7146 = vmatprep.subr.mxu1 %v8791_v1 }
  0x62   :  { %7335 = vmatmul.mubr.msk.f32.vlgmr.msra.gmra.mxu0 %vm35_vm0, %v6079_v51  ;;  %7354 = vmatprep.subr.mxu0 %v8786_v0  ;;  %v6025_v51 = vld [vmem:[%s11499_s0 + $0x1f8] sm:$0xff] }
  0x63   :  { %7355 = vmatpush3.msra.mxu0 %v8786_v0  ;;  %7337 = vmatprep.mubr.msk.f32.mxu0 %vm35_vm0, %v6080_v52  ;;  %v6038_v52 = vld [vmem:[%s11499_s0 + $0x220] sm:$0xff] }
  0x64   :  { %7356 = vmatprep.subr.mxu0 %v8791_v1  ;;  %7127 = vmatprep.mubr.msk.f32.mxu1 %vm35_vm0, %v5960_v32  ;;  %v6104_v32 = vld [vmem:[%s11499_s0 + $0x330] sm:$0xff] }
  0x65   :  { %7357 = vmatpush3.msra.mxu0 %v8791_v1  ;;  %7147 = vmatpush3.msra.mxu1 %v8791_v1 }
  0x66   :  { %7338 = vmatmul.mubr.msk.f32.gmra.mxu0 %vm35_vm0, %v6081_v54  ;;  %7358 = vmatprep.subr.mxu0 %v8802_v3  ;;  %v6040_v54 = vld [vmem:[%s11499_s0 + $0x230] sm:$0xff] }
  0x67   :  { %7359 = vmatpush3.msra.mxu0 %v8802_v3  ;;  %7362 = vmatprep.mubr.msk.f32.mxu0 %vm35_vm0, %v6094_v55  ;;  %v6041_v55 = vld [vmem:[%s11499_s0 + $0x238] sm:$0xff] }
  0x68   :  { %7360 = vmatprep.subr.mxu0 %v8811_v4  ;;  %7128 = vmatmul.mubr.msk.f32.gmra.mxu1 %vm35_vm0, %v5961_v34  ;;  %v8701_v34 = vld [vmem:[%s11498_s2 + $0x18] sm:$0xff] }
  0x69   :  { %7361 = vmatpush3.msra.mxu0 %v8811_v4  ;;  %7148 = vmatprep.subr.mxu1 %v8802_v3 }
  0x6a   :  { %7363 = vmatmul.mubr.msk.f32.vlgmr.msra.gmra.mxu0 %vm35_vm0, %v6095_v57  ;;  %7382 = vmatprep.subr.mxu0 %v8786_v0  ;;  %v6055_v57 = vld [vmem:[%s11499_s0 + $0x268] sm:$0xff] }
  0x6b   :  { %7383 = vmatpush3.msra.mxu0 %v8786_v0  ;;  %7365 = vmatprep.mubr.msk.f32.mxu0 %vm35_vm0, %v6096_v58  ;;  %v6056_v58 = vld [vmem:[%s11499_s0 + $0x270] sm:$0xff] }
  0x6c   :  { %7384 = vmatprep.subr.mxu0 %v8791_v1  ;;  %7149 = vmatpush3.msra.mxu1 %v8802_v3 }
  0x6d   :  { %7385 = vmatpush3.msra.mxu0 %v8791_v1  ;;  %7152 = vmatprep.mubr.msk.f32.mxu1 %vm35_vm0, %v5974_v35  ;;  %v6105_v35 = vld [vmem:[%s11499_s0 + $0x338] sm:$0xff] }
  0x6e   :  { %7366 = vmatmul.mubr.msk.f32.gmra.mxu0 %vm35_vm0, %v6097_v59  ;;  %7386 = vmatprep.subr.mxu0 %v8802_v3  ;;  %v6057_v59 = vld [vmem:[%s11499_s0 + $0x278] sm:$0xff] }
  0x6f   :  { %7387 = vmatpush3.msra.mxu0 %v8802_v3  ;;  %7390 = vmatprep.mubr.msk.f32.mxu0 %vm35_vm0, %v6110_v60  ;;  %v6070_v60 = vld [vmem:[%s11499_s0 + $0x2a0] sm:$0xff] }
  0x70   :  { %7388 = vmatprep.subr.mxu0 %v8811_v4  ;;  %7150 = vmatprep.subr.mxu1 %v8811_v4 }
  0x71   :  { %7389 = vmatpush3.msra.mxu0 %v8811_v4  ;;  %7151 = vmatpush3.msra.mxu1 %v8811_v4 }
  0x72   :  { %7391 = vmatmul.mubr.msk.f32.vlgmr.msra.gmra.mxu0 %vm35_vm0, %v6111_v62  ;;  %7410 = vmatprep.subr.mxu0 %v9165_v63  ;;  %v6072_v62 = vld [vmem:[%s11499_s0 + $0x2b0] sm:$0xff] }
  0x73   :  { %7411 = vmatpush3.msra.mxu0 %v9165_v63  ;;  %7393 = vmatprep.mubr.msk.f32.mxu0 %vm35_vm0, %v6112_v2  ;;  %v6073_v2 = vld [vmem:[%s11499_s0 + $0x2b8] sm:$0xff] }
  0x74   :  { %7412 = vmatprep.subr.mxu0 %v9176_v5  ;;  %7153 = vmatmul.mubr.msk.f32.vlgmr.msra.gmra.mxu1 %vm35_vm0, %v5975_v37  ;;  %v6118_v37 = vld [vmem:[%s11499_s0 + $0x360] sm:$0xff] }
  0x75   :  { %7413 = vmatpush3.msra.mxu0 %v9176_v5  ;;  %7172 = vmatprep.subr.mxu1 %v8786_v0 }
  0x76   :  { %7414 = vmatprep.subr.mxu0 %v9188_v7  ;;  %7394 = vmatmul.mubr.msk.f32.gmra.mxu0 %vm35_vm0, %v6113_v8  ;;  %v6086_v8 = vld [vmem:[%s11499_s0 + $0x2e0] sm:$0xff] }
  0x77   :  { %7415 = vmatpush3.msra.mxu0 %v9188_v7  ;;  %7442 = vmatprep.mubr.f32.mxu0 %v3042_v9 }
  0x78   :  { %7416 = vmatprep.subr.mxu0 %v9203_v10  ;;  %7173 = vmatpush3.msra.mxu1 %v8786_v0 }
  0x79   :  { %7417 = vmatpush3.msra.mxu0 %v9203_v10  ;;  %7155 = vmatprep.mubr.msk.f32.mxu1 %vm35_vm0, %v5976_v38 }
  0x7a   :  { %7418 = vmatprep.subr.mxu0 %v9212_v11  ;;  %7174 = vmatprep.subr.mxu1 %v8791_v1 }
  0x7b   :  { %7419 = vmatpush3.msra.mxu0 %v9212_v11  ;;  %7175 = vmatpush3.msra.mxu1 %v8791_v1 }
  0x7c   :  { %7420 = vmatprep.subr.mxu0 %v9223_v13  ;;  %7156 = vmatmul.mubr.msk.f32.gmra.mxu1 %vm35_vm0, %v5977_v39  ;;  %v6119_v39 = vld [vmem:[%s11499_s0 + $0x368] sm:$0xff] }
  0x7d   :  { %7421 = vmatpush3.msra.mxu0 %v9223_v13  ;;  %7176 = vmatprep.subr.mxu1 %v8802_v3 }
  0x7e   :  { %7422 = vmatprep.subr.mxu0 %v9235_v15  ;;  %7177 = vmatpush3.msra.mxu1 %v8802_v3 }
  0x7f   :  { %7423 = vmatpush3.msra.mxu0 %v9235_v15  ;;  %7180 = vmatprep.mubr.msk.f32.mxu1 %vm35_vm0, %v5990_v40 }
  0x80   :  { %7424 = vmatprep.subr.mxu0 %v9244_v16  ;;  %7178 = vmatprep.subr.mxu1 %v8811_v4 }
  0x81   :  { %7425 = vmatpush3.msra.mxu0 %v9244_v16  ;;  %7179 = vmatpush3.msra.mxu1 %v8811_v4 }
  0x82   :  { %7426 = vmatprep.subr.mxu0 %v9256_v18  ;;  %7181 = vmatmul.mubr.msk.f32.vlgmr.msra.gmra.mxu1 %vm35_vm0, %v5991_v41  ;;  %v6120_v41 = vld [vmem:[%s11499_s0 + $0x370] sm:$0xff] }
  0x83   :  { %7427 = vmatpush3.msra.mxu0 %v9256_v18  ;;  %7200 = vmatprep.subr.mxu1 %v8786_v0 }
  0x84   :  { %7428 = vmatprep.subr.mxu0 %v9268_v20  ;;  %7201 = vmatpush3.msra.mxu1 %v8786_v0 }
  0x85   :  { %7429 = vmatpush3.msra.mxu0 %v9268_v20  ;;  %7183 = vmatprep.mubr.msk.f32.mxu1 %vm35_vm0, %v5992_v42 }
  0x86   :  { %7430 = vmatprep.subr.mxu0 %v9277_v21  ;;  %7202 = vmatprep.subr.mxu1 %v8791_v1 }
  0x87   :  { %7431 = vmatpush3.msra.mxu0 %v9277_v21  ;;  %7203 = vmatpush3.msra.mxu1 %v8791_v1 }
  0x88   :  { %7432 = vmatprep.subr.mxu0 %v9289_v23  ;;  %7184 = vmatmul.mubr.msk.f32.gmra.mxu1 %vm35_vm0, %v5993_v43  ;;  %v6121_v43 = vld [vmem:[%s11499_s0 + $0x378] sm:$0xff] }
  0x89   :  { %7433 = vmatpush3.msra.mxu0 %v9289_v23  ;;  %7204 = vmatprep.subr.mxu1 %v8802_v3 }
  0x8a   :  { %7434 = vmatprep.subr.mxu0 %v9301_v25  ;;  %7205 = vmatpush3.msra.mxu1 %v8802_v3 }
  0x8b   :  { %7435 = vmatpush3.msra.mxu0 %v9301_v25  ;;  %7208 = vmatprep.mubr.msk.f32.mxu1 %vm35_vm0, %v6006_v44 }
  0x8c   :  { %7436 = vmatprep.subr.mxu0 %v9310_v26  ;;  %7206 = vmatprep.subr.mxu1 %v8811_v4 }
  0x8d   :  { %7437 = vmatpush3.msra.mxu0 %v9310_v26  ;;  %7207 = vmatpush3.msra.mxu1 %v8811_v4 }
  0x8e   :  { %7438 = vmatprep.subr.mxu0 %v9322_v28  ;;  %7209 = vmatmul.mubr.msk.f32.vlgmr.msra.gmra.mxu1 %vm35_vm0, %v6007_v45 }
  0x8f   :  { %7439 = vmatpush3.msra.mxu0 %v9322_v28  ;;  %7228 = vmatprep.subr.mxu1 %v8786_v0 }
  0x90   :  { %7440 = vmatprep.subr.mxu0 %v9334_v30  ;;  %7229 = vmatpush3.msra.mxu1 %v8786_v0 }
  0x91   :  { %7441 = vmatpush3.msra.mxu0 %v9334_v30  ;;  %7211 = vmatprep.mubr.msk.f32.mxu1 %vm35_vm0, %v6008_v46 }
  0x92   :  { %7443 = vmatmul.mubr.f32.vlgmr.msra.gmra.mxu0 %v3043_v31  ;;  %7486 = vmatprep.subr.mxu0 %v9165_v63  ;;  %v8700_v31 = vld [vmem:[%s11498_s2] sm:$0xff] }
  0x93   :  { %7445 = vmatprep.mubr.f32.mxu0 %v3044_v33  ;;  %7487 = vmatpush3.msra.mxu0 %v9165_v63 }
  0x94   :  { %7488 = vmatprep.subr.mxu0 %v9176_v5  ;;  %7230 = vmatprep.subr.mxu1 %v8791_v1 }
  0x95   :  { %7489 = vmatpush3.msra.mxu0 %v9176_v5  ;;  %7231 = vmatpush3.msra.mxu1 %v8791_v1 }
  0x96   :  { %7446 = vmatmul.mubr.f32.gmra.mxu0 %v3045_v36  ;;  %7490 = vmatprep.subr.mxu0 %v9188_v7 }
  0x97   :  { %7491 = vmatpush3.msra.mxu0 %v9188_v7  ;;  %7212 = vmatmul.mubr.msk.f32.gmra.mxu1 %vm35_vm0, %v6009_v47 }
  0x98   :  { %7492 = vmatprep.subr.mxu0 %v9203_v10  ;;  %7232 = vmatprep.subr.mxu1 %v8802_v3 }
  0x99   :  { %7493 = vmatpush3.msra.mxu0 %v9203_v10  ;;  %7233 = vmatpush3.msra.mxu1 %v8802_v3 }
  0x9a   :  { %7494 = vmatprep.subr.mxu0 %v9212_v11  ;;  %7236 = vmatprep.mubr.msk.f32.mxu1 %vm35_vm0, %v6022_v48 }
  0x9b   :  { %7495 = vmatpush3.msra.mxu0 %v9212_v11  ;;  %7234 = vmatprep.subr.mxu1 %v8811_v4 }
  0x9c   :  { %7496 = vmatprep.subr.mxu0 %v9223_v13  ;;  %7235 = vmatpush3.msra.mxu1 %v8811_v4 }
  0x9d   :  { %7497 = vmatpush3.msra.mxu0 %v9223_v13  ;;  %7237 = vmatmul.mubr.msk.f32.vlgmr.msra.gmra.mxu1 %vm35_vm0, %v6023_v49 }
  0x9e   :  { %7498 = vmatprep.subr.mxu0 %v9235_v15  ;;  %7256 = vmatprep.subr.mxu1 %v8786_v0 }
  0x9f   :  { %7257 = vmatpush3.msra.mxu1 %v8786_v0  ;;  %7239 = vmatprep.mubr.msk.f32.mxu1 %vm35_vm0, %v6024_v50 }
  0xa0   :  { %7258 = vmatprep.subr.mxu1 %v8791_v1  ;;  %7499 = vmatpush3.msra.mxu0 %v9235_v15 }
  0xa1   :  { %7259 = vmatpush3.msra.mxu1 %v8791_v1  ;;  %7500 = vmatprep.subr.mxu0 %v9244_v16 }
  0xa2   :  { %7240 = vmatmul.mubr.msk.f32.gmra.mxu1 %vm35_vm0, %v6025_v51  ;;  %7260 = vmatprep.subr.mxu1 %v8802_v3 }
  0xa3   :  { %7261 = vmatpush3.msra.mxu1 %v8802_v3  ;;  %7264 = vmatprep.mubr.msk.f32.mxu1 %vm35_vm0, %v6038_v52 }
  0xa4   :  { %7262 = vmatprep.subr.mxu1 %v8811_v4  ;;  %7501 = vmatpush3.msra.mxu0 %v9244_v16 }
  0xa5   :  { %7263 = vmatpush3.msra.mxu1 %v8811_v4  ;;  %7502 = vmatprep.subr.mxu0 %v9256_v18 }
  0xa6   :  { %7265 = vmatmul.mubr.msk.f32.vlgmr.msra.gmra.mxu1 %vm35_vm0, %v6039_v53  ;;  %7284 = vmatprep.subr.mxu1 %v8786_v0 }
  0xa7   :  { %7285 = vmatpush3.msra.mxu1 %v8786_v0  ;;  %7267 = vmatprep.mubr.msk.f32.mxu1 %vm35_vm0, %v6040_v54 }
  0xa8   :  { %7286 = vmatprep.subr.mxu1 %v8791_v1  ;;  %7503 = vmatpush3.msra.mxu0 %v9256_v18 }
  0xa9   :  { %7287 = vmatpush3.msra.mxu1 %v8791_v1  ;;  %7504 = vmatprep.subr.mxu0 %v9268_v20 }
  0xaa   :  { %7268 = vmatmul.mubr.msk.f32.gmra.mxu1 %vm35_vm0, %v6041_v55  ;;  %7288 = vmatprep.subr.mxu1 %v8802_v3 }
  0xab   :  { %7289 = vmatpush3.msra.mxu1 %v8802_v3  ;;  %7292 = vmatprep.mubr.msk.f32.mxu1 %vm35_vm0, %v6054_v56 }
  0xac   :  { %7290 = vmatprep.subr.mxu1 %v8811_v4  ;;  %7505 = vmatpush3.msra.mxu0 %v9268_v20 }
  0xad   :  { %7291 = vmatpush3.msra.mxu1 %v8811_v4  ;;  %7506 = vmatprep.subr.mxu0 %v9277_v21 }
  0xae   :  { %7293 = vmatmul.mubr.msk.f32.vlgmr.msra.gmra.mxu1 %vm35_vm0, %v6055_v57  ;;  %7312 = vmatprep.subr.mxu1 %v8786_v0 }
  0xaf   :  { %7313 = vmatpush3.msra.mxu1 %v8786_v0  ;;  %7295 = vmatprep.mubr.msk.f32.mxu1 %vm35_vm0, %v6056_v58 }
  0xb0   :  { %7314 = vmatprep.subr.mxu1 %v8791_v1  ;;  %7507 = vmatpush3.msra.mxu0 %v9277_v21 }
  0xb1   :  { %7315 = vmatpush3.msra.mxu1 %v8791_v1  ;;  %7508 = vmatprep.subr.mxu0 %v9289_v23 }
  0xb2   :  { %7296 = vmatmul.mubr.msk.f32.gmra.mxu1 %vm35_vm0, %v6057_v59  ;;  %7316 = vmatprep.subr.mxu1 %v8802_v3 }
  0xb3   :  { %7317 = vmatpush3.msra.mxu1 %v8802_v3  ;;  %7320 = vmatprep.mubr.msk.f32.mxu1 %vm35_vm0, %v6070_v60 }
  0xb4   :  { %7318 = vmatprep.subr.mxu1 %v8811_v4  ;;  %7509 = vmatpush3.msra.mxu0 %v9289_v23 }
  0xb5   :  { %7319 = vmatpush3.msra.mxu1 %v8811_v4  ;;  %7510 = vmatprep.subr.mxu0 %v9301_v25 }
  0xb6   :  { %7321 = vmatmul.mubr.msk.f32.vlgmr.msra.gmra.mxu1 %vm35_vm0, %v6071_v61  ;;  %7340 = vmatprep.subr.mxu1 %v8786_v0 }
  0xb7   :  { %7341 = vmatpush3.msra.mxu1 %v8786_v0  ;;  %7323 = vmatprep.mubr.msk.f32.mxu1 %vm35_vm0, %v6072_v62 }
  0xb8   :  { %7342 = vmatprep.subr.mxu1 %v8791_v1  ;;  %7511 = vmatpush3.msra.mxu0 %v9301_v25 }
  0xb9   :  { %7343 = vmatpush3.msra.mxu1 %v8791_v1  ;;  %7512 = vmatprep.subr.mxu0 %v9310_v26  ;;  %v6088_v1 = vld [vmem:[%s11499_s0 + $0x2f0] sm:$0xff] }
  0xba   :  { %7324 = vmatmul.mubr.msk.f32.gmra.mxu1 %vm35_vm0, %v6073_v2  ;;  %7344 = vmatprep.subr.mxu1 %v8802_v3 }
  0xbb   :  { %7345 = vmatpush3.msra.mxu1 %v8802_v3  ;;  %7348 = vmatprep.mubr.msk.f32.mxu1 %vm35_vm0, %v6086_v8 }
  0xbc   :  { %7346 = vmatprep.subr.mxu1 %v8811_v4  ;;  %7513 = vmatpush3.msra.mxu0 %v9310_v26 }
  0xbd   :  { %7347 = vmatpush3.msra.mxu1 %v8811_v4  ;;  %7514 = vmatprep.subr.mxu0 %v9322_v28  ;;  %v8698_v4 = vld [vmem:[%s11498_s2 + $0x10] sm:$0xff] }
  0xbe   :  { %7349 = vmatmul.mubr.msk.f32.vlgmr.msra.gmra.mxu1 %vm35_vm0, %v6087_v12  ;;  %7368 = vmatprep.subr.mxu1 %v8786_v0 }
  0xbf   :  { %7369 = vmatpush3.msra.mxu1 %v8786_v0  ;;  %7351 = vmatprep.mubr.msk.f32.mxu1 %vm35_vm0, %v6088_v1 }
  0xc0   :  { %7370 = vmatprep.subr.mxu1 %v8698_v4  ;;  %7515 = vmatpush3.msra.mxu0 %v9322_v28 }
  0xc1   :  { %7371 = vmatpush3.msra.mxu1 %v8698_v4  ;;  %7516 = vmatprep.subr.mxu0 %v9334_v30 }
  0xc2   :  { %7352 = vmatmul.mubr.msk.f32.gmra.mxu1 %vm35_vm0, %v6089_v17  ;;  %7372 = vmatprep.subr.mxu1 %v8699_v24 }
  0xc3   :  { %7373 = vmatpush3.msra.mxu1 %v8699_v24  ;;  %7376 = vmatprep.mubr.msk.f32.mxu1 %vm35_vm0, %v6102_v22 }
  0xc4   :  { %7374 = vmatprep.subr.mxu1 %v8700_v31  ;;  %7517 = vmatpush3.msra.mxu0 %v9334_v30 }
  0xc5   :  { %7375 = vmatpush3.msra.mxu1 %v8700_v31  ;;  %7562 = vmatprep.subr.mxu0 %v9165_v63 }
  0xc6   :  { %7377 = vmatmul.mubr.msk.f32.vlgmr.msra.gmra.mxu1 %vm35_vm0, %v6103_v27  ;;  %7396 = vmatprep.subr.mxu1 %v8701_v34 }
  0xc7   :  { %7397 = vmatpush3.msra.mxu1 %v8701_v34  ;;  %7379 = vmatprep.mubr.msk.f32.mxu1 %vm35_vm0, %v6104_v32 }
  0xc8   :  { %7398 = vmatprep.subr.mxu1 %v8698_v4 }
  0xc9   :  { %7399 = vmatpush3.msra.mxu1 %v8698_v4 }
  0xca   :  { %v9553_v6 = vpop.f32.mrf.mxu0  ;;  %7380 = vmatmul.mubr.msk.f32.gmra.mxu1 %vm35_vm0, %v6105_v35  ;;  %7400 = vmatprep.subr.mxu1 %v8699_v24 }
  0xcb   :  { %7401 = vmatpush3.msra.mxu1 %v8699_v24  ;;  %7404 = vmatprep.mubr.msk.f32.mxu1 %vm35_vm0, %v6118_v37 }
  0xcc   :  { %v9562_v9 = vpop.f32.mrf.mxu0  ;;  %7402 = vmatprep.subr.mxu1 %v8700_v31 }
  0xcd   :  { %7403 = vmatpush3.msra.mxu1 %v8700_v31 }
  0xce   :  { %v9571_v14 = vpop.f32.mrf.mxu0  ;;  %7405 = vmatmul.mubr.msk.f32.vlgmr.msra.gmra.mxu1 %vm35_vm0, %v6119_v39  ;;  %7448 = vmatprep.subr.mxu1 %v9165_v63 }
  0xcf   :  { %7449 = vmatpush3.msra.mxu1 %v9165_v63  ;;  %7407 = vmatprep.mubr.msk.f32.mxu1 %vm35_vm0, %v6120_v41 }
  0xd0   :  { %v9580_v3 = vpop.f32.mrf.mxu0  ;;  %7450 = vmatprep.subr.mxu1 %v9176_v5 }
  0xd1   :  { %7451 = vmatpush3.msra.mxu1 %v9176_v5 }
  0xd2   :  { %v9589_v19 = vpop.f32.mrf.mxu0  ;;  %7452 = vmatprep.subr.mxu1 %v9188_v7  ;;  %7408 = vmatmul.mubr.msk.f32.gmra.mxu1 %vm35_vm0, %v6121_v43 }
  0xd3   :  { %7453 = vmatpush3.msra.mxu1 %v9188_v7 }
  0xd4   :  { %v9599_v0 = vpop.f32.mrf.mxu0  ;;  %7454 = vmatprep.subr.mxu1 %v9203_v10 }
  0xd5   :  { %7455 = vmatpush3.msra.mxu1 %v9203_v10 }
  0xd6   :  { %v9609_v29 = vpop.f32.mrf.mxu0  ;;  %7456 = vmatprep.subr.mxu1 %v9212_v11 }
  0xd7   :  { %7457 = vmatpush3.msra.mxu1 %v9212_v11 }
  0xd8   :  { %v9619_v33 = vpop.f32.mrf.mxu0  ;;  %7458 = vmatprep.subr.mxu1 %v9223_v13 }
  0xd9   :  { %7459 = vmatpush3.msra.mxu1 %v9223_v13 }
  0xda   :  { %v9629_v36 = vpop.f32.mrf.mxu0  ;;  %7460 = vmatprep.subr.mxu1 %v9235_v15 }
  0xdb   :  { %7461 = vmatpush3.msra.mxu1 %v9235_v15 }
  0xdc   :  { %v9634_v38 = vpop.f32.mrf.mxu0  ;;  %7462 = vmatprep.subr.mxu1 %v9244_v16 }
  0xdd   :  { %7463 = vmatpush3.msra.mxu1 %v9244_v16 }
  0xde   :  { %v9641_v40 = vpop.f32.mrf.mxu0  ;;  %7464 = vmatprep.subr.mxu1 %v9256_v18 }
  0xdf   :  { %7465 = vmatpush3.msra.mxu1 %v9256_v18 }
  0xe0   :  { %v9646_v42 = vpop.f32.mrf.mxu0  ;;  %7466 = vmatprep.subr.mxu1 %v9268_v20 }
  0xe1   :  { %7467 = vmatpush3.msra.mxu1 %v9268_v20 }
  0xe2   :  { %v9655_v44 = vpop.f32.mrf.mxu0  ;;  %7468 = vmatprep.subr.mxu1 %v9277_v21 }
  0xe3   :  { %7469 = vmatpush3.msra.mxu1 %v9277_v21 }
  0xe4   :  { %v9659_v45 = vpop.f32.mrf.mxu0  ;;  %7470 = vmatprep.subr.mxu1 %v9289_v23 }
  0xe5   :  { %7471 = vmatpush3.msra.mxu1 %v9289_v23 }
  0xe6   :  { %v9664_v46 = vpop.f32.mrf.mxu0  ;;  %7472 = vmatprep.subr.mxu1 %v9301_v25 }
  0xe7   :  { %7473 = vmatpush3.msra.mxu1 %v9301_v25 }
  0xe8   :  { %v9668_v47 = vpop.f32.mrf.mxu0  ;;  %7474 = vmatprep.subr.mxu1 %v9310_v26 }
  0xe9   :  { %7475 = vmatpush3.msra.mxu1 %v9310_v26 }
  0xea   :  { %v9672_v48 = vpop.f32.mrf.mxu0  ;;  %7476 = vmatprep.subr.mxu1 %v9322_v28 }
  0xeb   :  { %7477 = vmatpush3.msra.mxu1 %v9322_v28 }
  0xec   :  { %v9676_v49 = vpop.f32.mrf.mxu0  ;;  %7478 = vmatprep.subr.mxu1 %v9334_v30 }
  0xed   :  { %7479 = vmatpush3.msra.mxu1 %v9334_v30 }
  0xee   :  { %v9680_v50 = vpop.f32.mrf.mxu0  ;;  %7524 = vmatprep.subr.mxu1 %v9165_v63 }
  0xf0   :  { %v9684_v51 = vpop.f32.mrf.mxu0 }
  0xf2   :  { %v9688_v52 = vpop.f32.mrf.mxu0 }
  0xf4   :  { %v9692_v53 = vpop.f32.mrf.mxu0 }
  0xf6   :  { %v9696_v54 = vpop.f32.mrf.mxu0 }
  0xf8   :  { %v9700_v55 = vpop.f32.mrf.mxu0 }
  0xfa   :  { %v9704_v56 = vpop.f32.mrf.mxu0 }
  0xfb   :  { %11504 = vst [vmem:[#allocation3_spill] sm:$0xff] %v9704_v56 }
  0xfc   :  { %v9708_v57 = vpop.f32.mrf.mxu0 }
  0xfd   :  { %11505 = vst [vmem:[#allocation4_spill] sm:$0xff] %v9708_v57 }
  0xfe   :  { %v9712_v58 = vpop.f32.mrf.mxu0 }
  0xff   :  { %11506 = vst [vmem:[#allocation5_spill] sm:$0xff] %v9712_v58 }
 0x100   :  { %v9716_v59 = vpop.f32.mrf.mxu0 }
 0x101   :  { %11507 = vst [vmem:[#allocation6_spill] sm:$0xff] %v9716_v59 }
 0x102   :  { %v9719_v60 = vpop.f32.mrf.mxu0 }
 0x103   :  { %11508 = vst [vmem:[#allocation7_spill] sm:$0xff] %v9719_v60 }
 0x104   :  { %v9721_v61 = vpop.f32.mrf.mxu0 }
 0x105   :  { %11509 = vst [vmem:[#allocation8_spill] sm:$0xff] %v9721_v61 }
 0x106   :  { %v9723_v62 = vpop.f32.mrf.mxu0 }
 0x107   :  { %11510 = vst [vmem:[#allocation9_spill] sm:$0xff] %v9723_v62 }
 0x108   :  { %v9725_v2 = vpop.f32.mrf.mxu0 }
 0x109   :  { %11511 = vst [vmem:[#allocation10_spill] sm:$0xff] %v9725_v2 }
 0x10a   :  { %v9727_v8 = vpop.f32.mrf.mxu0 }
 0x10b   :  { %11512 = vst [vmem:[#allocation11_spill] sm:$0xff] %v9727_v8 }
 0x10c   :  { %v9729_v12 = vpop.f32.mrf.mxu0 }
 0x10d   :  { %11513 = vst [vmem:[#allocation12_spill] sm:$0xff] %v9729_v12 }
 0x10e   :  { %v9731_v1 = vpop.f32.mrf.mxu0 }
 0x10f   :  { %11514 = vst [vmem:[#allocation13_spill] sm:$0xff] %v9731_v1 }
 0x110   :  { %v9733_v17 = vpop.f32.mrf.mxu0 }
 0x111   :  { %11515 = vst [vmem:[#allocation14_spill] sm:$0xff] %v9733_v17 }
 0x112   :  { %v9735_v4 = vpop.f32.mrf.mxu0 }
 0x113   :  { %11516 = vst [vmem:[#allocation15_spill] sm:$0xff] %v9735_v4 }
 0x114   :  { %v9737_v22 = vpop.f32.mrf.mxu0 }
 0x115   :  { %11517 = vst [vmem:[#allocation16_spill] sm:$0xff] %v9737_v22 }
 0x116   :  { %v9739_v24 = vpop.f32.mrf.mxu0 }
 0x117   :  { %11518 = vst [vmem:[#allocation17_spill] sm:$0xff] %v9739_v24 }
 0x118   :  { %v9741_v27 = vpop.f32.mrf.mxu0 }
 0x119   :  { %11519 = vst [vmem:[#allocation18_spill] sm:$0xff] %v9741_v27 }
 0x11a   :  { %v9743_v31 = vpop.f32.mrf.mxu0 }
 0x11b   :  { %11520 = vst [vmem:[#allocation19_spill] sm:$0xff] %v9743_v31 }
 0x11c   :  { %v9745_v32 = vpop.f32.mrf.mxu0 }
 0x11d   :  { %11521 = vst [vmem:[#allocation20_spill] sm:$0xff] %v9745_v32 }
 0x11e   :  { %v9747_v34 = vpop.f32.mrf.mxu0 }
 0x11f   :  { %11522 = vst [vmem:[#allocation21_spill] sm:$0xff] %v9747_v34 }
 0x120   :  { %v9749_v35 = vpop.f32.mrf.mxu0 }
 0x121   :  { %11523 = vst [vmem:[#allocation22_spill] sm:$0xff] %v9749_v35  ;;  %v9771_v35 = vpop.f32.mrf.mxu1 }
 0x122   :  { %v9751_v37 = vpop.f32.mrf.mxu0 }
 0x123   :  { %11524 = vst [vmem:[#allocation23_spill] sm:$0xff] %v9751_v37 }
 0x124   :  { %v9753_v39 = vpop.f32.mrf.mxu0 }
 0x125   :  { %11525 = vst [vmem:[#allocation24_spill] sm:$0xff] %v9753_v39 }
 0x126   :  { %v9755_v41 = vpop.f32.mrf.mxu0 }
 0x127   :  { %11526 = vst [vmem:[#allocation25_spill] sm:$0xff] %v9755_v41 }
 0x128   :  { %v9757_v43 = vpop.f32.mrf.mxu0 }
 0x129   :  { %11527 = vst [vmem:[#allocation26_spill] sm:$0xff] %v9757_v43  ;;  %v9778_v43 = vld [vmem:[%s11502_s4] ss:$0 sm:$0xff] }
 0x12a   :  { %v9759_v22 = vpop.f32.mrf.mxu0  ;;  %v130_v39 = vadd.f32 %v9571_v14, %v9778_v43 }
 0x12b   :  { %11528 = vst [vmem:[#allocation27_spill] sm:$0xff] %v9759_v22  ;;  %v9780_v22 = vpop.f32.mrf.mxu1 }
 0x12c   :  { %v9761_v24 = vpop.f32.mrf.mxu0 }
 0x12d   :  { %11529 = vst [vmem:[#allocation28_spill] sm:$0xff] %v9761_v24 }
 0x12e   :  { %v9763_v27 = vpop.f32.mrf.mxu0 }
 0x12f   :  { %11530 = vst [vmem:[#allocation29_spill] sm:$0xff] %v9763_v27 }
 0x130   :  { %v9765_v31 = vpop.f32.mrf.mxu0 }
 0x131   :  { %11531 = vst [vmem:[#allocation30_spill] sm:$0xff] %v9765_v31  ;;  %v120_v31 = vadd.f32 %v9553_v6, %v9778_v43 }
 0x132   :  { %v9767_v32 = vpop.f32.mrf.mxu0 }
 0x133   :  { %11532 = vst [vmem:[#allocation31_spill] sm:$0xff] %v9767_v32  ;;  %v9786_v32 = vpop.f32.mrf.mxu1 }
 0x134   :  { %v9769_v34 = vpop.f32.mrf.mxu0 }
 0x135   :  { %11533 = vst [vmem:[#allocation32_spill] sm:$0xff] %v9769_v34  ;;  %v115_v34 = vadd.f32 %v9778_v43, %v9562_v9  ;;  %v9792_v1 = vpop.f32.mrf.mxu1 }
 0x136   :  { %v9773_v37 = vpop.f32.mrf.mxu0 }
 0x137   :  { %11534 = vst [vmem:[#allocation33_spill] sm:$0xff] %v9773_v37  ;;  %v9796_v2 = vpop.f32.mrf.mxu1 }
 0x138   :  { %v9782_v24 = vpop.f32.mrf.mxu0 }
 0x139   :  { %11535 = vst [vmem:[#allocation34_spill] sm:$0xff] %v9782_v24  ;;  %v125_v24 = vadd.f32 %v9778_v43, %v9580_v3  ;;  %v9798_v9 = vpop.f32.mrf.mxu1 }
 0x13b   :  { %v9800_v14 = vpop.f32.mrf.mxu1 }
 0x152   :  { %v7444_v27 = vpop.f32.mrf.mxu0 }
 0x153   :  { %v3136_v41 = vadd.f32 %v7444_v27, %v120_v31 }
 0x154   :  { %v3116_v37 = vpop.f32.mrf.mxu0 }
 0x155   :  { %8474 = vtanh.f32 %v3136_v41  ;;  %v3135_v4 = vadd.f32 %v3116_v37, %v115_v34 }
 0x156   :  { %v7447_v17 = vpop.f32.mrf.mxu0 }
 0x157   :  { %8476 = vtanh.f32 %v3135_v4  ;;  %v3138_v6 = vadd.f32 %v7447_v17, %v130_v39 }
 0x158   :  { %v3126_v12 = vpop.f32.mrf.mxu0 }
 0x159   :  { %8478 = vtanh.f32 %v3138_v6  ;;  %v3137_v8 = vadd.f32 %v3126_v12, %v125_v24  ;;  %v9808_v12 = vpop.f32.mrf.mxu1 }
 0x15b   :  { %8480 = vtanh.f32 %v3137_v8  ;;  %v9819_v17 = vpop.f32.mrf.mxu1 }
 0x15d   :  { %v9825_v4 = vpop.f32.mrf.mxu1 }
 0x162   :  { %v8475_v27 = vpop.eup %8474 }
 0x163   :  { %3144 = vst [vmem:[%s11503_s5 + $0x8] sm:$0xff] %v8475_v27 }
 0x164   :  { %v8477_v31 = vpop.eup %8476 }
 0x165   :  { %3143 = vst [vmem:[%s11503_s5] sm:$0xff] %v8477_v31  ;;  %7480 = vmatprep.mubr.f32.mxu1 %v8477_v31 }
 0x166   :  { %v8479_v3 = vpop.eup %8478  ;;  %7481 = vmatmul.mubr.f32.vlgmr.msra.gmra.mxu1 %v8475_v27 }
 0x167   :  { %3146 = vst [vmem:[%s11503_s5 + $0x18] sm:$0xff] %v8479_v3  ;;  %7525 = vmatpush3.msra.mxu1 %v9165_v63 }
 0x168   :  { %v8481_v8 = vpop.eup %8480  ;;  %7526 = vmatprep.subr.mxu1 %v9176_v5 }
 0x169   :  { %3145 = vst [vmem:[%s11503_s5 + $0x10] sm:$0xff] %v8481_v8  ;;  %7483 = vmatprep.mubr.f32.mxu1 %v8481_v8  ;;  %7527 = vmatpush3.msra.mxu1 %v9176_v5  ;;  %v9831_v5 = vpop.f32.mrf.mxu1 }
 0x16a   :  { %7484 = vmatmul.mubr.f32.gmra.mxu1 %v8479_v3  ;;  %7528 = vmatprep.subr.mxu1 %v9188_v7 }
 0x16b   :  { %7529 = vmatpush3.msra.mxu1 %v9188_v7  ;;  %v9837_v7 = vpop.f32.mrf.mxu1 }
 0x16c   :  { %7530 = vmatprep.subr.mxu1 %v9203_v10 }
 0x16d   :  { %7531 = vmatpush3.msra.mxu1 %v9203_v10  ;;  %v9843_v10 = vpop.f32.mrf.mxu1 }
 0x16e   :  { %7532 = vmatprep.subr.mxu1 %v9212_v11 }
 0x16f   :  { %7533 = vmatpush3.msra.mxu1 %v9212_v11  ;;  %v9849_v11 = vpop.f32.mrf.mxu1 }
 0x170   :  { %7534 = vmatprep.subr.mxu1 %v9223_v13 }
 0x171   :  { %7535 = vmatpush3.msra.mxu1 %v9223_v13  ;;  %v9855_v13 = vpop.f32.mrf.mxu1 }
 0x172   :  { %7536 = vmatprep.subr.mxu1 %v9235_v15 }
 0x173   :  { %7537 = vmatpush3.msra.mxu1 %v9235_v15  ;;  %v9861_v24 = vpop.f32.mrf.mxu1 }
 0x174   :  { %7538 = vmatprep.subr.mxu1 %v9244_v16 }
 0x175   :  { %7539 = vmatpush3.msra.mxu1 %v9244_v16  ;;  %v9864_v34 = vpop.f32.mrf.mxu1 }
 0x176   :  { %7540 = vmatprep.subr.mxu1 %v9256_v18 }
 0x177   :  { %7541 = vmatpush3.msra.mxu1 %v9256_v18  ;;  %v9866_v37 = vpop.f32.mrf.mxu1 }
 0x178   :  { %7542 = vmatprep.subr.mxu1 %v9268_v20 }
 0x179   :  { %7543 = vmatpush3.msra.mxu1 %v9268_v20  ;;  %v9868_v39 = vpop.f32.mrf.mxu1 }
 0x17a   :  { %7544 = vmatprep.subr.mxu1 %v9277_v21 }
 0x17b   :  { %7545 = vmatpush3.msra.mxu1 %v9277_v21  ;;  %v9870_v41 = vpop.f32.mrf.mxu1 }
 0x17c   :  { %7546 = vmatprep.subr.mxu1 %v9289_v23 }
 0x17d   :  { %7547 = vmatpush3.msra.mxu1 %v9289_v23  ;;  %v9872_v6 = vpop.f32.mrf.mxu1 }
 0x17e   :  { %7548 = vmatprep.subr.mxu1 %v9301_v25 }
 0x17f   :  { %7549 = vmatpush3.msra.mxu1 %v9301_v25  ;;  %v9874_v27 = vpop.f32.mrf.mxu1 }
 0x180   :  { %7550 = vmatprep.subr.mxu1 %v9310_v26  ;;  %11536 = vst [vmem:[#allocation35_spill] sm:$0xff] %v9874_v27 }
 0x181   :  { %7551 = vmatpush3.msra.mxu1 %v9310_v26  ;;  %v9876_v31 = vpop.f32.mrf.mxu1 }
 0x182   :  { %7552 = vmatprep.subr.mxu1 %v9322_v28  ;;  %11537 = vst [vmem:[#allocation36_spill] sm:$0xff] %v9876_v31 }
 0x183   :  { %7553 = vmatpush3.msra.mxu1 %v9322_v28  ;;  %v9878_v3 = vpop.f32.mrf.mxu1 }
 0x184   :  { %7554 = vmatprep.subr.mxu1 %v9334_v30  ;;  %11538 = vst [vmem:[#allocation37_spill] sm:$0xff] %v9878_v3 }
 0x185   :  { %7555 = vmatpush3.msra.mxu1 %v9334_v30  ;;  %v9880_v8 = vpop.f32.mrf.mxu1 }
 0x186   :  { %7600 = vmatprep.subr.mxu1 %v9165_v63  ;;  %11539 = vst [vmem:[#allocation38_spill] sm:$0xff] %v9880_v8 }
 0x187   :  { %v9882_v62 = vpop.f32.mrf.mxu1 }
 0x188   :  { %11540 = vst [vmem:[#allocation39_spill] sm:$0xff] %v9882_v62 }
 0x189   :  { %v9884_v63 = vpop.f32.mrf.mxu1 }
 0x18a   :  { %11541 = vst [vmem:[#allocation40_spill] sm:$0xff] %v9884_v63 }
 0x18b   :  { %v9886_v61 = vpop.f32.mrf.mxu1 }
 0x18c   :  { %11542 = vst [vmem:[#allocation41_spill] sm:$0xff] %v9886_v61 }
 0x18d   :  { %v9888_v60 = vpop.f32.mrf.mxu1 }
 0x18e   :  { %11543 = vst [vmem:[#allocation42_spill] sm:$0xff] %v9888_v60 }
 0x18f   :  { %v9890_v59 = vpop.f32.mrf.mxu1 }
 0x190   :  { %11544 = vst [vmem:[#allocation43_spill] sm:$0xff] %v9890_v59 }
 0x191   :  { %v9892_v58 = vpop.f32.mrf.mxu1 }
 0x192   :  { %11545 = vst [vmem:[#allocation44_spill] sm:$0xff] %v9892_v58 }
 0x193   :  { %v9894_v57 = vpop.f32.mrf.mxu1 }
 0x194   :  { %11546 = vst [vmem:[#allocation45_spill] sm:$0xff] %v9894_v57 }
 0x195   :  { %v9896_v56 = vpop.f32.mrf.mxu1 }
 0x196   :  { %11547 = vst [vmem:[#allocation46_spill] sm:$0xff] %v9896_v56 }
 0x197   :  { %v9898_v31 = vpop.f32.mrf.mxu1 }
 0x198   :  { %11548 = vst [vmem:[#allocation47_spill] sm:$0xff] %v9898_v31 }
 0x199   :  { %v9900_v3 = vpop.f32.mrf.mxu1 }
 0x19a   :  { %11549 = vst [vmem:[#allocation48_spill] sm:$0xff] %v9900_v3 }
 0x19b   :  { %v9902_v8 = vpop.f32.mrf.mxu1 }
 0x19c   :  { %11550 = vst [vmem:[#allocation49_spill] sm:$0xff] %v9902_v8 }
 0x19d   :  { %v9904_v62 = vpop.f32.mrf.mxu1 }
 0x19e   :  { %11551 = vst [vmem:[#allocation50_spill] sm:$0xff] %v9904_v62 }
 0x19f   :  { %v9906_v63 = vpop.f32.mrf.mxu1 }
 0x1a0   :  { %11552 = vst [vmem:[#allocation51_spill] sm:$0xff] %v9906_v63 }
 0x1a1   :  { %v9908_v61 = vpop.f32.mrf.mxu1 }
 0x1a2   :  { %11553 = vst [vmem:[#allocation52_spill] sm:$0xff] %v9908_v61 }
 0x1a3   :  { %v9910_v60 = vpop.f32.mrf.mxu1 }
 0x1a4   :  { %11554 = vst [vmem:[#allocation53_spill] sm:$0xff] %v9910_v60 }
 0x1a5   :  { %v9912_v59 = vpop.f32.mrf.mxu1 }
 0x1a6   :  { %11555 = vst [vmem:[#allocation54_spill] sm:$0xff] %v9912_v59 }
 0x1a7   :  { %v9914_v58 = vpop.f32.mrf.mxu1 }
 0x1a8   :  { %11556 = vst [vmem:[#allocation55_spill] sm:$0xff] %v9914_v58 }
 0x1a9   :  { %v9916_v57 = vpop.f32.mrf.mxu1 }
 0x1aa   :  { %11557 = vst [vmem:[#allocation56_spill] sm:$0xff] %v9916_v57 }
 0x1ab   :  { %v9918_v56 = vpop.f32.mrf.mxu1 }
 0x1ac   :  { %11558 = vst [vmem:[#allocation57_spill] sm:$0xff] %v9918_v56 }
 0x1ad   :  { %v9920_v31 = vpop.f32.mrf.mxu1 }
 0x1ae   :  { %11559 = vst [vmem:[#allocation58_spill] sm:$0xff] %v9920_v31 }
 0x1af   :  { %v9922_v3 = vpop.f32.mrf.mxu1 }
 0x1b0   :  { %11560 = vst [vmem:[#allocation59_spill] sm:$0xff] %v9922_v3 }
 0x1b1   :  { %v9924_v8 = vpop.f32.mrf.mxu1 }
 0x1b2   :  { %11561 = vst [vmem:[#allocation60_spill] sm:$0xff] %v9924_v8  ;;  %v226_v8 = vadd.f32 %v9771_v35, %v9778_v43 }
 0x1b3   :  { %v9926_v62 = vpop.f32.mrf.mxu1 }
 0x1b4   :  { %11562 = vst [vmem:[#allocation61_spill] sm:$0xff] %v9926_v62 }
 0x1b5   :  { %v9928_v63 = vpop.f32.mrf.mxu1 }
 0x1b6   :  { %11563 = vst [vmem:[#allocation62_spill] sm:$0xff] %v9928_v63  ;;  %v221_v63 = vadd.f32 %v9778_v43, %v9780_v22  ;;  %v10001_v22 = vld [vmem:[%s11500_s3 + $0x50] sm:$0xff] }
 0x1b7   :  { %v9930_v61 = vpop.f32.mrf.mxu1 }
 0x1b8   :  { %11564 = vst [vmem:[#allocation63_spill] sm:$0xff] %v9930_v61 }
 0x1b9   :  { %v9932_v60 = vpop.f32.mrf.mxu1 }
 0x1ba   :  { %11565 = vst [vmem:[#allocation64_spill] sm:$0xff] %v9932_v60 }
 0x1bb   :  { %v9934_v59 = vpop.f32.mrf.mxu1 }
 0x1bc   :  { %11566 = vst [vmem:[#allocation65_spill] sm:$0xff] %v9934_v59  ;;  %v236_v59 = vadd.f32 %v9786_v32, %v9778_v43 }
 0x1bd   :  { %v9936_v58 = vpop.f32.mrf.mxu1 }
 0x1be   :  { %11567 = vst [vmem:[#allocation66_spill] sm:$0xff] %v9936_v58 }
 0x1bf   :  { %v9938_v57 = vpop.f32.mrf.mxu1 }
 0x1c0   :  { %11568 = vst [vmem:[#allocation67_spill] sm:$0xff] %v9938_v57 }
 0x1c1   :  { %v9940_v56 = vpop.f32.mrf.mxu1 }
 0x1c2   :  { %11569 = vst [vmem:[#allocation68_spill] sm:$0xff] %v9940_v56  ;;  %v231_v56 = vadd.f32 %v9778_v43, %v9792_v1  ;;  %v9994_v1 = vld [vmem:[%s11500_s3 + $0x58] sm:$0xff] }
 0x1c3   :  { %v9942_v31 = vpop.f32.mrf.mxu1 }
 0x1c4   :  { %11570 = vst [vmem:[#allocation69_spill] sm:$0xff] %v9942_v31 }
 0x226   :  { %v7482_v62 = vpop.f32.mrf.mxu1 }
 0x227   :  { %v3237_v61 = vadd.f32 %v7482_v62, %v226_v8  ;;  %v10074_v8 = vld [vmem:[%s11500_s3 + $0x38] sm:$0xff] }
 0x228   :  { %v3217_v3 = vpop.f32.mrf.mxu1 }
 0x229   :  { %8482 = vtanh.f32 %v3237_v61  ;;  %v3236_v58 = vadd.f32 %v3217_v3, %v221_v63  ;;  %v10067_v3 = vld [vmem:[%s11500_s3 + $0x40] sm:$0xff]  ;;  %v10081_v63 = vld [vmem:[%s11500_s3 + $0x30] sm:$0xff] }
 0x22a   :  { %v7485_v60 = vpop.f32.mrf.mxu1 }
 0x22b   :  { %8484 = vtanh.f32 %v3236_v58  ;;  %v3239_v31 = vadd.f32 %v7485_v60, %v236_v59  ;;  %v9970_v58 = vld [vmem:[%s11500_s3 + $0x70] sm:$0xff]  ;;  %v9980_v59 = vld [vmem:[%s11500_s3 + $0x68] sm:$0xff]  ;;  %v9987_v60 = vld [vmem:[%s11500_s3 + $0x60] sm:$0xff] }
 0x22c   :  { %v3227_v57 = vpop.f32.mrf.mxu1 }
 0x22d   :  { %8486 = vtanh.f32 %v3239_v31  ;;  %v3238_v35 = vadd.f32 %v3227_v57, %v231_v56  ;;  %v9964_v56 = vld [vmem:[%s11500_s3 + $0x78] sm:$0xff]  ;;  %v10060_v31 = vld [vmem:[%s11500_s3 + $0x48] sm:$0xff] }
 0x22f   :  { %8488 = vtanh.f32 %v3238_v35  ;;  %v10088_v35 = vld [vmem:[%s11500_s3 + $0x28] sm:$0xff] }
 0x236   :  { %v8483_v27 = vpop.eup %8482 }
 0x237   :  { %6127 = vst [vmem:[%s11503_s5 + $0x28] sm:$0xff] %v8483_v27 }
 0x238   :  { %v8485_v62 = vpop.eup %8484 }
 0x239   :  { %6126 = vst [vmem:[%s11503_s5 + $0x20] sm:$0xff] %v8485_v62  ;;  %7518 = vmatprep.mubr.f32.mxu0 %v8485_v62  ;;  %v10095_v62 = vld [vmem:[%s11500_s3 + $0x20] sm:$0xff] }
 0x23a   :  { %v8487_v61 = vpop.eup %8486  ;;  %7519 = vmatmul.mubr.f32.vlgmr.msra.gmra.mxu0 %v8483_v27 }
 0x23b   :  { %6129 = vst [vmem:[%s11503_s5 + $0x38] sm:$0xff] %v8487_v61  ;;  %7563 = vmatpush3.msra.mxu0 %v9964_v56 }
 0x23c   :  { %v8489_v57 = vpop.eup %8488  ;;  %7564 = vmatprep.subr.mxu0 %v9970_v58 }
 0x23d   :  { %6128 = vst [vmem:[%s11503_s5 + $0x30] sm:$0xff] %v8489_v57  ;;  %7521 = vmatprep.mubr.f32.mxu0 %v8489_v57  ;;  %7565 = vmatpush3.msra.mxu0 %v9970_v58  ;;  %v10109_v57 = vld [vmem:[%s11500_s3 + $0x10] sm:$0xff] }
 0x23e   :  { %7522 = vmatmul.mubr.f32.gmra.mxu0 %v8487_v61  ;;  %7566 = vmatprep.subr.mxu0 %v9980_v59  ;;  %v10102_v61 = vld [vmem:[%s11500_s3 + $0x18] sm:$0xff] }
 0x23f   :  { %7567 = vmatpush3.msra.mxu0 %v9980_v59 }
 0x240   :  { %7568 = vmatprep.subr.mxu0 %v9987_v60 }
 0x241   :  { %7569 = vmatpush3.msra.mxu0 %v9987_v60 }
 0x242   :  { %7570 = vmatprep.subr.mxu0 %v9994_v1 }
 0x243   :  { %7571 = vmatpush3.msra.mxu0 %v9994_v1 }
 0x244   :  { %7572 = vmatprep.subr.mxu0 %v10001_v22 }
 0x245   :  { %7573 = vmatpush3.msra.mxu0 %v10001_v22 }
 0x246   :  { %7574 = vmatprep.subr.mxu0 %v9235_v15 }
 0x247   :  { %7575 = vmatpush3.msra.mxu0 %v9235_v15  ;;  %v333_v15 = vadd.f32 %v9589_v19, %v9778_v43 }
 0x248   :  { %7576 = vmatprep.subr.mxu0 %v9244_v16 }
 0x249   :  { %7577 = vmatpush3.msra.mxu0 %v9244_v16 }
 0x24a   :  { %7578 = vmatprep.subr.mxu0 %v9256_v18 }
 0x24b   :  { %7579 = vmatpush3.msra.mxu0 %v9256_v18  ;;  %v328_v18 = vadd.f32 %v9778_v43, %v9599_v0 }
 0x24c   :  { %7580 = vmatprep.subr.mxu0 %v9268_v20 }
 0x24d   :  { %7581 = vmatpush3.msra.mxu0 %v9268_v20 }
 0x24e   :  { %7582 = vmatprep.subr.mxu0 %v9277_v21 }
 0x24f   :  { %7583 = vmatpush3.msra.mxu0 %v9277_v21 }
 0x250   :  { %7584 = vmatprep.subr.mxu0 %v9289_v23 }
 0x251   :  { %7585 = vmatpush3.msra.mxu0 %v9289_v23  ;;  %v343_v23 = vadd.f32 %v9609_v29, %v9778_v43 }
 0x252   :  { %7586 = vmatprep.subr.mxu0 %v9301_v25 }
 0x253   :  { %7587 = vmatpush3.msra.mxu0 %v9301_v25 }
 0x254   :  { %7588 = vmatprep.subr.mxu0 %v9310_v26 }
 0x255   :  { %7589 = vmatpush3.msra.mxu0 %v9310_v26 }
 0x256   :  { %7590 = vmatprep.subr.mxu0 %v9322_v28 }
 0x257   :  { %7591 = vmatpush3.msra.mxu0 %v9322_v28  ;;  %v338_v28 = vadd.f32 %v9778_v43, %v9619_v33 }
 0x258   :  { %7592 = vmatprep.subr.mxu0 %v9334_v30 }
 0x259   :  { %7593 = vmatpush3.msra.mxu0 %v9334_v30 }
 0x25a   :  { %7638 = vmatprep.subr.mxu0 %v9964_v56 }
 0x2fa   :  { %v7520_v16 = vpop.f32.mrf.mxu0 }
 0x2fb   :  { %v3339_v20 = vadd.f32 %v7520_v16, %v333_v15  ;;  %v10116_v15 = vld [vmem:[%s11500_s3 + $0x8] sm:$0xff]  ;;  %v10123_v16 = vld [vmem:[%s11500_s3] sm:$0xff] }
 0x2fc   :  { %v3319_v21 = vpop.f32.mrf.mxu0 }
 0x2fd   :  { %8490 = vtanh.f32 %v3339_v20  ;;  %v3338_v25 = vadd.f32 %v3319_v21, %v328_v18  ;;  %v440_v18 = vadd.f32 %v9796_v2, %v9778_v43  ;;  %v435_v21 = vadd.f32 %v9778_v43, %v9798_v9 }
 0x2fe   :  { %v7523_v26 = vpop.f32.mrf.mxu0 }
 0x2ff   :  { %8492 = vtanh.f32 %v3338_v25  ;;  %v3341_v30 = vadd.f32 %v7523_v26, %v343_v23  ;;  %v450_v26 = vadd.f32 %v9800_v14, %v9778_v43 }
 0x300   :  { %v3329_v32 = vpop.f32.mrf.mxu0 }
 0x301   :  { %8494 = vtanh.f32 %v3341_v30  ;;  %v3340_v19 = vadd.f32 %v3329_v32, %v338_v28  ;;  %v445_v32 = vadd.f32 %v9778_v43, %v9808_v12 }
 0x303   :  { %8496 = vtanh.f32 %v3340_v19 }
 0x30a   :  { %v8491_v27 = vpop.eup %8490 }
 0x30b   :  { %6131 = vst [vmem:[%s11503_s5 + $0x48] sm:$0xff] %v8491_v27 }
 0x30c   :  { %v8493_v0 = vpop.eup %8492 }
 0x30d   :  { %6130 = vst [vmem:[%s11503_s5 + $0x40] sm:$0xff] %v8493_v0  ;;  %7556 = vmatprep.mubr.f32.mxu1 %v8493_v0 }
 0x30e   :  { %v8495_v29 = vpop.eup %8494  ;;  %7557 = vmatmul.mubr.f32.vlgmr.msra.gmra.mxu1 %v8491_v27 }
 0x30f   :  { %6133 = vst [vmem:[%s11503_s5 + $0x58] sm:$0xff] %v8495_v29  ;;  %7601 = vmatpush3.msra.mxu1 %v9964_v56 }
 0x310   :  { %v8497_v33 = vpop.eup %8496  ;;  %7602 = vmatprep.subr.mxu1 %v9970_v58 }
 0x311   :  { %6132 = vst [vmem:[%s11503_s5 + $0x50] sm:$0xff] %v8497_v33  ;;  %7559 = vmatprep.mubr.f32.mxu1 %v8497_v33  ;;  %7603 = vmatpush3.msra.mxu1 %v9970_v58 }
 0x312   :  { %7560 = vmatmul.mubr.f32.gmra.mxu1 %v8495_v29  ;;  %7604 = vmatprep.subr.mxu1 %v9980_v59  ;;  %v547_v29 = vadd.f32 %v9629_v36, %v9778_v43 }
 0x313   :  { %7605 = vmatpush3.msra.mxu1 %v9980_v59 }
 0x314   :  { %7606 = vmatprep.subr.mxu1 %v9987_v60 }
 0x315   :  { %7607 = vmatpush3.msra.mxu1 %v9987_v60 }
 0x316   :  { %7608 = vmatprep.subr.mxu1 %v9994_v1 }
 0x317   :  { %7609 = vmatpush3.msra.mxu1 %v9994_v1 }
 0x318   :  { %7610 = vmatprep.subr.mxu1 %v10001_v22 }
 0x319   :  { %7611 = vmatpush3.msra.mxu1 %v10001_v22 }
 0x31a   :  { %7612 = vmatprep.subr.mxu1 %v10060_v31 }
 0x31b   :  { %7613 = vmatpush3.msra.mxu1 %v10060_v31 }
 0x31c   :  { %7614 = vmatprep.subr.mxu1 %v10067_v3 }
 0x31d   :  { %7615 = vmatpush3.msra.mxu1 %v10067_v3 }
 0x31e   :  { %7616 = vmatprep.subr.mxu1 %v10074_v8 }
 0x31f   :  { %7617 = vmatpush3.msra.mxu1 %v10074_v8 }
 0x320   :  { %7618 = vmatprep.subr.mxu1 %v10081_v63 }
 0x321   :  { %7619 = vmatpush3.msra.mxu1 %v10081_v63 }
 0x322   :  { %7620 = vmatprep.subr.mxu1 %v10088_v35 }
 0x323   :  { %7621 = vmatpush3.msra.mxu1 %v10088_v35 }
 0x324   :  { %7622 = vmatprep.subr.mxu1 %v10095_v62 }
 0x325   :  { %7623 = vmatpush3.msra.mxu1 %v10095_v62 }
 0x326   :  { %7624 = vmatprep.subr.mxu1 %v10102_v61 }
 0x327   :  { %7625 = vmatpush3.msra.mxu1 %v10102_v61 }
 0x328   :  { %7626 = vmatprep.subr.mxu1 %v10109_v57 }
 0x329   :  { %7627 = vmatpush3.msra.mxu1 %v10109_v57 }
 0x32a   :  { %7628 = vmatprep.subr.mxu1 %v10116_v15 }
 0x32b   :  { %7629 = vmatpush3.msra.mxu1 %v10116_v15 }
 0x32c   :  { %7630 = vmatprep.subr.mxu1 %v10123_v16 }
 0x32d   :  { %7631 = vmatpush3.msra.mxu1 %v10123_v16 }
 0x32e   :  { %7676 = vmatprep.subr.mxu1 %v9964_v56 }
 0x3ce   :  { %v7558_v20 = vpop.f32.mrf.mxu1 }
 0x3cf   :  { %v3441_v23 = vadd.f32 %v7558_v20, %v440_v18  ;;  %v542_v18 = vadd.f32 %v9778_v43, %v9634_v38 }
 0x3d0   :  { %v3421_v25 = vpop.f32.mrf.mxu1 }
 0x3d1   :  { %8498 = vtanh.f32 %v3441_v23  ;;  %v3440_v28 = vadd.f32 %v3421_v25, %v435_v21  ;;  %v557_v23 = vadd.f32 %v9641_v40, %v9778_v43 }
 0x3d2   :  { %v7561_v30 = vpop.f32.mrf.mxu1 }
 0x3d3   :  { %8500 = vtanh.f32 %v3440_v28  ;;  %v3443_v19 = vadd.f32 %v7561_v30, %v450_v26  ;;  %v552_v28 = vadd.f32 %v9778_v43, %v9646_v42 }
 0x3d4   :  { %v3431_v27 = vpop.f32.mrf.mxu1 }
 0x3d5   :  { %8502 = vtanh.f32 %v3443_v19  ;;  %v3442_v2 = vadd.f32 %v3431_v27, %v445_v32  ;;  %v654_v27 = vadd.f32 %v9819_v17, %v9778_v43 }
 0x3d7   :  { %8504 = vtanh.f32 %v3442_v2 }
 0x3de   :  { %v8499_v0 = vpop.eup %8498 }
 0x3df   :  { %6135 = vst [vmem:[%s11503_s5 + $0x68] sm:$0xff] %v8499_v0 }
 0x3e0   :  { %v8501_v9 = vpop.eup %8500 }
 0x3e1   :  { %6134 = vst [vmem:[%s11503_s5 + $0x60] sm:$0xff] %v8501_v9  ;;  %7594 = vmatprep.mubr.f32.mxu0 %v8501_v9 }
 0x3e2   :  { %v8503_v14 = vpop.eup %8502  ;;  %7595 = vmatmul.mubr.f32.vlgmr.msra.gmra.mxu0 %v8499_v0  ;;  %v649_v0 = vadd.f32 %v9778_v43, %v9825_v4 }
 0x3e3   :  { %6137 = vst [vmem:[%s11503_s5 + $0x78] sm:$0xff] %v8503_v14  ;;  %7639 = vmatpush3.msra.mxu0 %v9964_v56 }
 0x3e4   :  { %v8505_v12 = vpop.eup %8504  ;;  %7640 = vmatprep.subr.mxu0 %v9970_v58 }
 0x3e5   :  { %6136 = vst [vmem:[%s11503_s5 + $0x70] sm:$0xff] %v8505_v12  ;;  %7597 = vmatprep.mubr.f32.mxu0 %v8505_v12  ;;  %7641 = vmatpush3.msra.mxu0 %v9970_v58  ;;  %v664_v12 = vadd.f32 %v9831_v5, %v9778_v43 }
 0x3e6   :  { %7598 = vmatmul.mubr.f32.gmra.mxu0 %v8503_v14  ;;  %7642 = vmatprep.subr.mxu0 %v9980_v59 }
 0x3e7   :  { %7643 = vmatpush3.msra.mxu0 %v9980_v59 }
 0x3e8   :  { %7644 = vmatprep.subr.mxu0 %v9987_v60 }
 0x3e9   :  { %7645 = vmatpush3.msra.mxu0 %v9987_v60 }
 0x3ea   :  { %7646 = vmatprep.subr.mxu0 %v9994_v1 }
 0x3eb   :  { %7647 = vmatpush3.msra.mxu0 %v9994_v1 }
 0x3ec   :  { %7648 = vmatprep.subr.mxu0 %v10001_v22 }
 0x3ed   :  { %7649 = vmatpush3.msra.mxu0 %v10001_v22 }
 0x3ee   :  { %7650 = vmatprep.subr.mxu0 %v10060_v31 }
 0x3ef   :  { %7651 = vmatpush3.msra.mxu0 %v10060_v31 }
 0x3f0   :  { %7652 = vmatprep.subr.mxu0 %v10067_v3 }
 0x3f1   :  { %7653 = vmatpush3.msra.mxu0 %v10067_v3 }
 0x3f2   :  { %7654 = vmatprep.subr.mxu0 %v10074_v8 }
 0x3f3   :  { %7655 = vmatpush3.msra.mxu0 %v10074_v8 }
 0x3f4   :  { %7656 = vmatprep.subr.mxu0 %v10081_v63 }
 0x3f5   :  { %7657 = vmatpush3.msra.mxu0 %v10081_v63 }
 0x3f6   :  { %7658 = vmatprep.subr.mxu0 %v10088_v35 }
 0x3f7   :  { %7659 = vmatpush3.msra.mxu0 %v10088_v35 }
 0x3f8   :  { %7660 = vmatprep.subr.mxu0 %v10095_v62 }
 0x3f9   :  { %7661 = vmatpush3.msra.mxu0 %v10095_v62 }
 0x3fa   :  { %7662 = vmatprep.subr.mxu0 %v10102_v61 }
 0x3fb   :  { %7663 = vmatpush3.msra.mxu0 %v10102_v61 }
 0x3fc   :  { %7664 = vmatprep.subr.mxu0 %v10109_v57 }
 0x3fd   :  { %7665 = vmatpush3.msra.mxu0 %v10109_v57 }
 0x3fe   :  { %7666 = vmatprep.subr.mxu0 %v10116_v15 }
 0x3ff   :  { %7667 = vmatpush3.msra.mxu0 %v10116_v15 }
 0x400   :  { %7668 = vmatprep.subr.mxu0 %v10123_v16 }
 0x401   :  { %7669 = vmatpush3.msra.mxu0 %v10123_v16 }
 0x402   :  { %7714 = vmatprep.subr.mxu0 %v9964_v56 }
 0x4a2   :  { %v7596_v33 = vpop.f32.mrf.mxu0 }
 0x4a3   :  { %v3543_v20 = vadd.f32 %v7596_v33, %v547_v29 }
 0x4a4   :  { %v3523_v21 = vpop.f32.mrf.mxu0 }
 0x4a5   :  { %8506 = vtanh.f32 %v3543_v20  ;;  %v3542_v25 = vadd.f32 %v3523_v21, %v542_v18  ;;  %v659_v18 = vadd.f32 %v9778_v43, %v9837_v7 }
 0x4a6   :  { %v7599_v26 = vpop.f32.mrf.mxu0 }
 0x4a7   :  { %8508 = vtanh.f32 %v3542_v25  ;;  %v3545_v30 = vadd.f32 %v7599_v26, %v557_v23  ;;  %v761_v25 = vadd.f32 %v9655_v44, %v9778_v43 }
 0x4a8   :  { %v3533_v32 = vpop.f32.mrf.mxu0 }
 0x4a9   :  { %8510 = vtanh.f32 %v3545_v30  ;;  %v3544_v36 = vadd.f32 %v3533_v32, %v552_v28  ;;  %v756_v28 = vadd.f32 %v9778_v43, %v9659_v45 }
 0x4ab   :  { %8512 = vtanh.f32 %v3544_v36  ;;  %v771_v36 = vadd.f32 %v9664_v46, %v9778_v43 }
 0x4b2   :  { %v8507_v19 = vpop.eup %8506 }
 0x4b3   :  { %6139 = vst [vmem:[%s11503_s5 + $0x88] sm:$0xff] %v8507_v19 }
 0x4b4   :  { %v8509_v38 = vpop.eup %8508 }
 0x4b5   :  { %6138 = vst [vmem:[%s11503_s5 + $0x80] sm:$0xff] %v8509_v38  ;;  %7632 = vmatprep.mubr.f32.mxu1 %v8509_v38 }
 0x4b6   :  { %v8511_v40 = vpop.eup %8510  ;;  %7633 = vmatmul.mubr.f32.vlgmr.msra.gmra.mxu1 %v8507_v19 }
 0x4b7   :  { %6141 = vst [vmem:[%s11503_s5 + $0x98] sm:$0xff] %v8511_v40  ;;  %7677 = vmatpush3.msra.mxu1 %v9964_v56 }
 0x4b8   :  { %v8513_v42 = vpop.eup %8512  ;;  %7678 = vmatprep.subr.mxu1 %v9970_v58 }
 0x4b9   :  { %6140 = vst [vmem:[%s11503_s5 + $0x90] sm:$0xff] %v8513_v42  ;;  %7635 = vmatprep.mubr.f32.mxu1 %v8513_v42  ;;  %7679 = vmatpush3.msra.mxu1 %v9970_v58 }
 0x4ba   :  { %7636 = vmatmul.mubr.f32.gmra.mxu1 %v8511_v40  ;;  %7680 = vmatprep.subr.mxu1 %v9980_v59  ;;  %v766_v40 = vadd.f32 %v9778_v43, %v9668_v47 }
 0x4bb   :  { %7681 = vmatpush3.msra.mxu1 %v9980_v59 }
 0x4bc   :  { %7682 = vmatprep.subr.mxu1 %v9987_v60 }
 0x4bd   :  { %7683 = vmatpush3.msra.mxu1 %v9987_v60 }
 0x4be   :  { %7684 = vmatprep.subr.mxu1 %v9994_v1 }
 0x4bf   :  { %7685 = vmatpush3.msra.mxu1 %v9994_v1 }
 0x4c0   :  { %7686 = vmatprep.subr.mxu1 %v10001_v22 }
 0x4c1   :  { %7687 = vmatpush3.msra.mxu1 %v10001_v22 }
 0x4c2   :  { %7688 = vmatprep.subr.mxu1 %v10060_v31 }
 0x4c3   :  { %7689 = vmatpush3.msra.mxu1 %v10060_v31 }
 0x4c4   :  { %7690 = vmatprep.subr.mxu1 %v10067_v3 }
 0x4c5   :  { %7691 = vmatpush3.msra.mxu1 %v10067_v3 }
 0x4c6   :  { %7692 = vmatprep.subr.mxu1 %v10074_v8 }
 0x4c7   :  { %7693 = vmatpush3.msra.mxu1 %v10074_v8 }
 0x4c8   :  { %7694 = vmatprep.subr.mxu1 %v10081_v63 }
 0x4c9   :  { %7695 = vmatpush3.msra.mxu1 %v10081_v63 }
 0x4ca   :  { %7696 = vmatprep.subr.mxu1 %v10088_v35 }
 0x4cb   :  { %7697 = vmatpush3.msra.mxu1 %v10088_v35 }
 0x4cc   :  { %7698 = vmatprep.subr.mxu1 %v10095_v62 }
 0x4cd   :  { %7699 = vmatpush3.msra.mxu1 %v10095_v62 }
 0x4ce   :  { %7700 = vmatprep.subr.mxu1 %v10102_v61 }
 0x4cf   :  { %7701 = vmatpush3.msra.mxu1 %v10102_v61 }
 0x4d0   :  { %7702 = vmatprep.subr.mxu1 %v10109_v57 }
 0x4d1   :  { %7703 = vmatpush3.msra.mxu1 %v10109_v57 }
 0x4d2   :  { %7704 = vmatprep.subr.mxu1 %v10116_v15 }
 0x4d3   :  { %7705 = vmatpush3.msra.mxu1 %v10116_v15 }
 0x4d4   :  { %7706 = vmatprep.subr.mxu1 %v10123_v16 }
 0x4d5   :  { %7707 = vmatpush3.msra.mxu1 %v10123_v16 }
 0x4d6   :  { %7752 = vmatprep.subr.mxu1 %v9964_v56 }
 0x576   :  { %v7634_v2 = vpop.f32.mrf.mxu1 }
 0x577   :  { %v3645_v9 = vadd.f32 %v7634_v2, %v654_v27 }
 0x578   :  { %v3625_v14 = vpop.f32.mrf.mxu1 }
 0x579   :  { %8514 = vtanh.f32 %v3645_v9  ;;  %v3644_v29 = vadd.f32 %v3625_v14, %v649_v0  ;;  %v868_v0 = vadd.f32 %v9843_v10, %v9778_v43  ;;  %v863_v14 = vadd.f32 %v9778_v43, %v9849_v11 }
 0x57a   :  { %v7637_v33 = vpop.f32.mrf.mxu1 }
 0x57b   :  { %8516 = vtanh.f32 %v3644_v29  ;;  %v3647_v20 = vadd.f32 %v7637_v33, %v664_v12  ;;  %v878_v33 = vadd.f32 %v9855_v13, %v9778_v43 }
 0x57c   :  { %v3635_v21 = vpop.f32.mrf.mxu1 }
 0x57d   :  { %8518 = vtanh.f32 %v3647_v20  ;;  %v3646_v17 = vadd.f32 %v3635_v21, %v659_v18  ;;  %v873_v21 = vadd.f32 %v9778_v43, %v9861_v24  ;;  %v10391_v24 = vld [vmem:[%s11502_s4] ss:$0 sm:$0xff] }
 0x57f   :  { %8520 = vtanh.f32 %v3646_v17 }
 0x586   :  { %v8515_v23 = vpop.eup %8514 }
 0x587   :  { %6143 = vst [vmem:[%s11503_s5 + $0xa8] sm:$0xff] %v8515_v23 }
 0x588   :  { %v8517_v4 = vpop.eup %8516 }
 0x589   :  { %6142 = vst [vmem:[%s11503_s5 + $0xa0] sm:$0xff] %v8517_v4  ;;  %7670 = vmatprep.mubr.f32.mxu0 %v8517_v4 }
 0x58a   :  { %v8519_v5 = vpop.eup %8518  ;;  %7671 = vmatmul.mubr.f32.vlgmr.msra.gmra.mxu0 %v8515_v23 }
 0x58b   :  { %6145 = vst [vmem:[%s11503_s5 + $0xb8] sm:$0xff] %v8519_v5  ;;  %7715 = vmatpush3.msra.mxu0 %v9964_v56 }
 0x58c   :  { %v8521_v7 = vpop.eup %8520  ;;  %7716 = vmatprep.subr.mxu0 %v9970_v58 }
 0x58d   :  { %6144 = vst [vmem:[%s11503_s5 + $0xb0] sm:$0xff] %v8521_v7  ;;  %7673 = vmatprep.mubr.f32.mxu0 %v8521_v7  ;;  %7717 = vmatpush3.msra.mxu0 %v9970_v58 }
 0x58e   :  { %7674 = vmatmul.mubr.f32.gmra.mxu0 %v8519_v5  ;;  %7718 = vmatprep.subr.mxu0 %v9980_v59  ;;  %v975_v5 = vadd.f32 %v10391_v24, %v9672_v48 }
 0x58f   :  { %7719 = vmatpush3.msra.mxu0 %v9980_v59 }
 0x590   :  { %7720 = vmatprep.subr.mxu0 %v9987_v60 }
 0x591   :  { %7721 = vmatpush3.msra.mxu0 %v9987_v60 }
 0x592   :  { %7722 = vmatprep.subr.mxu0 %v9994_v1 }
 0x593   :  { %7723 = vmatpush3.msra.mxu0 %v9994_v1 }
 0x594   :  { %7724 = vmatprep.subr.mxu0 %v10001_v22 }
 0x595   :  { %7725 = vmatpush3.msra.mxu0 %v10001_v22 }
 0x596   :  { %7726 = vmatprep.subr.mxu0 %v10060_v31 }
 0x597   :  { %7727 = vmatpush3.msra.mxu0 %v10060_v31 }
 0x598   :  { %7728 = vmatprep.subr.mxu0 %v10067_v3 }
 0x599   :  { %7729 = vmatpush3.msra.mxu0 %v10067_v3 }
 0x59a   :  { %7730 = vmatprep.subr.mxu0 %v10074_v8 }
 0x59b   :  { %7731 = vmatpush3.msra.mxu0 %v10074_v8 }
 0x59c   :  { %7732 = vmatprep.subr.mxu0 %v10081_v63 }
 0x59d   :  { %7733 = vmatpush3.msra.mxu0 %v10081_v63 }
 0x59e   :  { %7734 = vmatprep.subr.mxu0 %v10088_v35 }
 0x59f   :  { %7735 = vmatpush3.msra.mxu0 %v10088_v35 }
 0x5a0   :  { %7736 = vmatprep.subr.mxu0 %v10095_v62 }
 0x5a1   :  { %7737 = vmatpush3.msra.mxu0 %v10095_v62 }
 0x5a2   :  { %7738 = vmatprep.subr.mxu0 %v10102_v61 }
 0x5a3   :  { %7739 = vmatpush3.msra.mxu0 %v10102_v61 }
 0x5a4   :  { %7740 = vmatprep.subr.mxu0 %v10109_v57 }
 0x5a5   :  { %7741 = vmatpush3.msra.mxu0 %v10109_v57 }
 0x5a6   :  { %7742 = vmatprep.subr.mxu0 %v10116_v15 }
 0x5a7   :  { %7743 = vmatpush3.msra.mxu0 %v10116_v15 }
 0x5a8   :  { %7744 = vmatprep.subr.mxu0 %v10123_v16 }
 0x5a9   :  { %7745 = vmatpush3.msra.mxu0 %v10123_v16 }
 0x5aa   :  { %7790 = vmatprep.subr.mxu0 %v9964_v56 }
 0x64a   :  { %v7672_v26 = vpop.f32.mrf.mxu0 }
 0x64b   :  { %v3747_v30 = vadd.f32 %v7672_v26, %v761_v25  ;;  %v970_v25 = vadd.f32 %v10391_v24, %v9676_v49 }
 0x64c   :  { %v3727_v32 = vpop.f32.mrf.mxu0 }
 0x64d   :  { %8522 = vtanh.f32 %v3747_v30  ;;  %v3746_v19 = vadd.f32 %v3727_v32, %v756_v28  ;;  %v985_v30 = vadd.f32 %v10391_v24, %v9680_v50 }
 0x64e   :  { %v7675_v38 = vpop.f32.mrf.mxu0 }
 0x64f   :  { %8524 = vtanh.f32 %v3746_v19  ;;  %v3749_v42 = vadd.f32 %v7675_v38, %v771_v36  ;;  %v980_v19 = vadd.f32 %v10391_v24, %v9684_v51 }
 0x650   :  { %v3737_v27 = vpop.f32.mrf.mxu0 }
 0x651   :  { %8526 = vtanh.f32 %v3749_v42  ;;  %v3748_v44 = vadd.f32 %v3737_v27, %v766_v40  ;;  %v1082_v27 = vadd.f32 %v10391_v24, %v9864_v34 }
 0x653   :  { %8528 = vtanh.f32 %v3748_v44 }
 0x65a   :  { %v8523_v2 = vpop.eup %8522 }
 0x65b   :  { %6147 = vst [vmem:[%s11503_s5 + $0xc8] sm:$0xff] %v8523_v2 }
 0x65c   :  { %v8525_v45 = vpop.eup %8524 }
 0x65d   :  { %6146 = vst [vmem:[%s11503_s5 + $0xc0] sm:$0xff] %v8525_v45  ;;  %7708 = vmatprep.mubr.f32.mxu1 %v8525_v45 }
 0x65e   :  { %v8527_v46 = vpop.eup %8526  ;;  %7709 = vmatmul.mubr.f32.vlgmr.msra.gmra.mxu1 %v8523_v2  ;;  %v1077_v2 = vadd.f32 %v10391_v24, %v9866_v37 }
 0x65f   :  { %6149 = vst [vmem:[%s11503_s5 + $0xd8] sm:$0xff] %v8527_v46  ;;  %7753 = vmatpush3.msra.mxu1 %v9964_v56 }
 0x660   :  { %v8529_v47 = vpop.eup %8528  ;;  %7754 = vmatprep.subr.mxu1 %v9970_v58 }
 0x661   :  { %6148 = vst [vmem:[%s11503_s5 + $0xd0] sm:$0xff] %v8529_v47  ;;  %7711 = vmatprep.mubr.f32.mxu1 %v8529_v47  ;;  %7755 = vmatpush3.msra.mxu1 %v9970_v58  ;;  %v1092_v47 = vadd.f32 %v10391_v24, %v9868_v39 }
 0x662   :  { %7712 = vmatmul.mubr.f32.gmra.mxu1 %v8527_v46  ;;  %7756 = vmatprep.subr.mxu1 %v9980_v59 }
 0x663   :  { %7757 = vmatpush3.msra.mxu1 %v9980_v59 }
 0x664   :  { %7758 = vmatprep.subr.mxu1 %v9987_v60 }
 0x665   :  { %7759 = vmatpush3.msra.mxu1 %v9987_v60 }
 0x666   :  { %7760 = vmatprep.subr.mxu1 %v9994_v1 }
 0x667   :  { %7761 = vmatpush3.msra.mxu1 %v9994_v1 }
 0x668   :  { %7762 = vmatprep.subr.mxu1 %v10001_v22 }
 0x669   :  { %7763 = vmatpush3.msra.mxu1 %v10001_v22 }
 0x66a   :  { %7764 = vmatprep.subr.mxu1 %v10060_v31 }
 0x66b   :  { %7765 = vmatpush3.msra.mxu1 %v10060_v31 }
 0x66c   :  { %7766 = vmatprep.subr.mxu1 %v10067_v3 }
 0x66d   :  { %7767 = vmatpush3.msra.mxu1 %v10067_v3 }
 0x66e   :  { %7768 = vmatprep.subr.mxu1 %v10074_v8 }
 0x66f   :  { %7769 = vmatpush3.msra.mxu1 %v10074_v8 }
 0x670   :  { %7770 = vmatprep.subr.mxu1 %v10081_v63 }
 0x671   :  { %7771 = vmatpush3.msra.mxu1 %v10081_v63 }
 0x672   :  { %7772 = vmatprep.subr.mxu1 %v10088_v35 }
 0x673   :  { %7773 = vmatpush3.msra.mxu1 %v10088_v35 }
 0x674   :  { %7774 = vmatprep.subr.mxu1 %v10095_v62 }
 0x675   :  { %7775 = vmatpush3.msra.mxu1 %v10095_v62 }
 0x676   :  { %7776 = vmatprep.subr.mxu1 %v10102_v61 }
 0x677   :  { %7777 = vmatpush3.msra.mxu1 %v10102_v61 }
 0x678   :  { %7778 = vmatprep.subr.mxu1 %v10109_v57 }
 0x679   :  { %7779 = vmatpush3.msra.mxu1 %v10109_v57 }
 0x67a   :  { %7780 = vmatprep.subr.mxu1 %v10116_v15 }
 0x67b   :  { %7781 = vmatpush3.msra.mxu1 %v10116_v15 }
 0x67c   :  { %7782 = vmatprep.subr.mxu1 %v10123_v16 }
 0x67d   :  { %7783 = vmatpush3.msra.mxu1 %v10123_v16 }
 0x67e   :  { %7828 = vmatprep.subr.mxu1 %v9964_v56 }
 0x71e   :  { %v7710_v9 = vpop.f32.mrf.mxu1 }
 0x71f   :  { %v3849_v12 = vadd.f32 %v7710_v9, %v868_v0 }
 0x720   :  { %v3829_v29 = vpop.f32.mrf.mxu1 }
 0x721   :  { %8530 = vtanh.f32 %v3849_v12  ;;  %v3848_v18 = vadd.f32 %v3829_v29, %v863_v14  ;;  %v1087_v14 = vadd.f32 %v10391_v24, %v9870_v41 }
 0x722   :  { %v7713_v20 = vpop.f32.mrf.mxu1 }
 0x723   :  { %8532 = vtanh.f32 %v3848_v18  ;;  %v3851_v17 = vadd.f32 %v7713_v20, %v878_v33  ;;  %v1199_v18 = vadd.f32 %v10391_v24, %v9696_v54 }
 0x724   :  { %v3839_v23 = vpop.f32.mrf.mxu1 }
 0x725   :  { %8534 = vtanh.f32 %v3851_v17  ;;  %v3850_v10 = vadd.f32 %v3839_v23, %v873_v21  ;;  %v1194_v17 = vadd.f32 %v10391_v24, %v9700_v55 }
 0x727   :  { %8536 = vtanh.f32 %v3850_v10 }
 0x72e   :  { %v8531_v4 = vpop.eup %8530 }
 0x72f   :  { %6151 = vst [vmem:[%s11503_s5 + $0xe8] sm:$0xff] %v8531_v4 }
 0x730   :  { %v8533_v11 = vpop.eup %8532 }
 0x731   :  { %6150 = vst [vmem:[%s11503_s5 + $0xe0] sm:$0xff] %v8533_v11  ;;  %7746 = vmatprep.mubr.f32.mxu0 %v8533_v11  ;;  %v10523_v11 = vld [vmem:[%s11500_s3 + $0x70] sm:$0xff] }
 0x732   :  { %v8535_v13 = vpop.eup %8534  ;;  %7747 = vmatmul.mubr.f32.vlgmr.msra.gmra.mxu0 %v8531_v4 }
 0x733   :  { %6153 = vst [vmem:[%s11503_s5 + $0xf8] sm:$0xff] %v8535_v13  ;;  %7791 = vmatpush3.msra.mxu0 %v9964_v56 }
 0x734   :  { %v8537_v43 = vpop.eup %8536  ;;  %7792 = vmatprep.subr.mxu0 %v9970_v58 }
 0x735   :  { %6152 = vst [vmem:[%s11503_s5 + $0xf0] sm:$0xff] %v8537_v43  ;;  %7749 = vmatprep.mubr.f32.mxu0 %v8537_v43  ;;  %7793 = vmatpush3.msra.mxu0 %v9970_v58  ;;  %v10540_v43 = vld [vmem:[%s11500_s3 + $0x60] sm:$0xff] }
 0x736   :  { %7750 = vmatmul.mubr.f32.gmra.mxu0 %v8535_v13  ;;  %7794 = vmatprep.subr.mxu0 %v9980_v59  ;;  %v10533_v13 = vld [vmem:[%s11500_s3 + $0x68] sm:$0xff] }
 0x737   :  { %7795 = vmatpush3.msra.mxu0 %v9980_v59 }
 0x738   :  { %7796 = vmatprep.subr.mxu0 %v9987_v60 }
 0x739   :  { %7797 = vmatpush3.msra.mxu0 %v9987_v60 }
 0x73a   :  { %7798 = vmatprep.subr.mxu0 %v9994_v1 }
 0x73b   :  { %7799 = vmatpush3.msra.mxu0 %v9994_v1 }
 0x73c   :  { %7800 = vmatprep.subr.mxu0 %v10001_v22 }
 0x73d   :  { %7801 = vmatpush3.msra.mxu0 %v10001_v22 }
 0x73e   :  { %7802 = vmatprep.subr.mxu0 %v10060_v31 }
 0x73f   :  { %7803 = vmatpush3.msra.mxu0 %v10060_v31 }
 0x740   :  { %7804 = vmatprep.subr.mxu0 %v10067_v3 }
 0x741   :  { %7805 = vmatpush3.msra.mxu0 %v10067_v3 }
 0x742   :  { %7806 = vmatprep.subr.mxu0 %v10074_v8 }
 0x743   :  { %7807 = vmatpush3.msra.mxu0 %v10074_v8 }
 0x744   :  { %7808 = vmatprep.subr.mxu0 %v10081_v63 }
 0x745   :  { %7809 = vmatpush3.msra.mxu0 %v10081_v63 }
 0x746   :  { %7810 = vmatprep.subr.mxu0 %v10088_v35 }
 0x747   :  { %7811 = vmatpush3.msra.mxu0 %v10088_v35 }
 0x748   :  { %7812 = vmatprep.subr.mxu0 %v10095_v62 }
 0x749   :  { %7813 = vmatpush3.msra.mxu0 %v10095_v62 }
 0x74a   :  { %7814 = vmatprep.subr.mxu0 %v10102_v61 }
 0x74b   :  { %7815 = vmatpush3.msra.mxu0 %v10102_v61 }
 0x74c   :  { %7816 = vmatprep.subr.mxu0 %v10109_v57 }
 0x74d   :  { %7817 = vmatpush3.msra.mxu0 %v10109_v57 }
 0x74e   :  { %7818 = vmatprep.subr.mxu0 %v10116_v15 }
 0x74f   :  { %7819 = vmatpush3.msra.mxu0 %v10116_v15 }
 0x750   :  { %7820 = vmatprep.subr.mxu0 %v10123_v16 }
 0x751   :  { %7821 = vmatpush3.msra.mxu0 %v10123_v16 }
 0x752   :  { %7866 = vmatprep.subr.mxu0 %v9964_v56 }
 0x7f2   :  { %v7748_v7 = vpop.f32.mrf.mxu0 }
 0x7f3   :  { %v3951_v26 = vadd.f32 %v7748_v7, %v975_v5  ;;  %v10547_v5 = vld [vmem:[%s11500_s3 + $0x58] sm:$0xff]  ;;  %v10554_v7 = vld [vmem:[%s11500_s3 + $0x50] sm:$0xff] }
 0x7f4   :  { %v3931_v28 = vpop.f32.mrf.mxu0 }
 0x7f5   :  { %8538 = vtanh.f32 %v3951_v26  ;;  %v3950_v32 = vadd.f32 %v3931_v28, %v970_v25  ;;  %v11573_v26 = vld [vmem:[#allocation37_spill] sm:$0xff] }
 0x7f6   :  { %v7751_v36 = vpop.f32.mrf.mxu0 }
 0x7f7   :  { %8540 = vtanh.f32 %v3950_v32  ;;  %v3953_v38 = vadd.f32 %v7751_v36, %v985_v30 }
 0x7f8   :  { %v3941_v40 = vpop.f32.mrf.mxu0 }
 0x7f9   :  { %8542 = vtanh.f32 %v3953_v38  ;;  %v3952_v48 = vadd.f32 %v3941_v40, %v980_v19  ;;  %v10613_v40 = vld [vmem:[%s11500_s3 + $0x48] sm:$0xff] }
 0x7fb   :  { %8544 = vtanh.f32 %v3952_v48  ;;  %v10620_v48 = vld [vmem:[%s11500_s3 + $0x40] sm:$0xff] }
 0x802   :  { %v8539_v42 = vpop.eup %8538 }
 0x803   :  { %6155 = vst [vmem:[%s11503_s5 + $0x108] sm:$0xff] %v8539_v42 }
 0x804   :  { %v8541_v49 = vpop.eup %8540 }
 0x805   :  { %6154 = vst [vmem:[%s11503_s5 + $0x100] sm:$0xff] %v8541_v49  ;;  %7784 = vmatprep.mubr.f32.mxu1 %v8541_v49  ;;  %v10634_v49 = vld [vmem:[%s11500_s3 + $0x30] sm:$0xff] }
 0x806   :  { %v8543_v50 = vpop.eup %8542  ;;  %7785 = vmatmul.mubr.f32.vlgmr.msra.gmra.mxu1 %v8539_v42  ;;  %v10627_v42 = vld [vmem:[%s11500_s3 + $0x38] sm:$0xff] }
 0x807   :  { %6157 = vst [vmem:[%s11503_s5 + $0x118] sm:$0xff] %v8543_v50  ;;  %7829 = vmatpush3.msra.mxu1 %v9964_v56 }
 0x808   :  { %v8545_v51 = vpop.eup %8544  ;;  %7830 = vmatprep.subr.mxu1 %v9970_v58 }
 0x809   :  { %6156 = vst [vmem:[%s11503_s5 + $0x110] sm:$0xff] %v8545_v51  ;;  %7787 = vmatprep.mubr.f32.mxu1 %v8545_v51  ;;  %7831 = vmatpush3.msra.mxu1 %v9970_v58  ;;  %v10648_v51 = vld [vmem:[%s11500_s3 + $0x20] sm:$0xff] }
 0x80a   :  { %7788 = vmatmul.mubr.f32.gmra.mxu1 %v8543_v50  ;;  %7832 = vmatprep.subr.mxu1 %v9980_v59  ;;  %v10641_v50 = vld [vmem:[%s11500_s3 + $0x28] sm:$0xff] }
 0x80b   :  { %7833 = vmatpush3.msra.mxu1 %v9980_v59 }
 0x80c   :  { %7834 = vmatprep.subr.mxu1 %v9987_v60 }
 0x80d   :  { %7835 = vmatpush3.msra.mxu1 %v9987_v60 }
 0x80e   :  { %7836 = vmatprep.subr.mxu1 %v9994_v1 }
 0x80f   :  { %7837 = vmatpush3.msra.mxu1 %v9994_v1 }
 0x810   :  { %7838 = vmatprep.subr.mxu1 %v10001_v22 }
 0x811   :  { %7839 = vmatpush3.msra.mxu1 %v10001_v22 }
 0x812   :  { %7840 = vmatprep.subr.mxu1 %v10060_v31 }
 0x813   :  { %7841 = vmatpush3.msra.mxu1 %v10060_v31 }
 0x814   :  { %7842 = vmatprep.subr.mxu1 %v10067_v3 }
 0x815   :  { %7843 = vmatpush3.msra.mxu1 %v10067_v3 }
 0x816   :  { %7844 = vmatprep.subr.mxu1 %v10074_v8 }
 0x817   :  { %7845 = vmatpush3.msra.mxu1 %v10074_v8 }
 0x818   :  { %7846 = vmatprep.subr.mxu1 %v10081_v63 }
 0x819   :  { %7847 = vmatpush3.msra.mxu1 %v10081_v63 }
 0x81a   :  { %7848 = vmatprep.subr.mxu1 %v10088_v35 }
 0x81b   :  { %7849 = vmatpush3.msra.mxu1 %v10088_v35 }
 0x81c   :  { %7850 = vmatprep.subr.mxu1 %v10095_v62 }
 0x81d   :  { %7851 = vmatpush3.msra.mxu1 %v10095_v62 }
 0x81e   :  { %7852 = vmatprep.subr.mxu1 %v10102_v61 }
 0x81f   :  { %7853 = vmatpush3.msra.mxu1 %v10102_v61 }
 0x820   :  { %7854 = vmatprep.subr.mxu1 %v10109_v57 }
 0x821   :  { %7855 = vmatpush3.msra.mxu1 %v10109_v57 }
 0x822   :  { %7856 = vmatprep.subr.mxu1 %v10116_v15 }
 0x823   :  { %7857 = vmatpush3.msra.mxu1 %v10116_v15 }
 0x824   :  { %7858 = vmatprep.subr.mxu1 %v10123_v16 }
 0x825   :  { %7859 = vmatpush3.msra.mxu1 %v10123_v16 }
 0x826   :  { %7904 = vmatprep.subr.mxu1 %v9964_v56 }
 0x8c6   :  { %v7786_v44 = vpop.f32.mrf.mxu1 }
 0x8c7   :  { %v4053_v45 = vadd.f32 %v7786_v44, %v1082_v27  ;;  %v10655_v27 = vld [vmem:[%s11500_s3 + $0x18] sm:$0xff]  ;;  %v10662_v44 = vld [vmem:[%s11500_s3 + $0x10] sm:$0xff] }
 0x8c8   :  { %v4033_v46 = vpop.f32.mrf.mxu1 }
 0x8c9   :  { %8546 = vtanh.f32 %v4053_v45  ;;  %v4052_v0 = vadd.f32 %v4033_v46, %v1077_v2  ;;  %v10669_v2 = vld [vmem:[%s11500_s3 + $0x8] sm:$0xff]  ;;  %v10676_v45 = vld [vmem:[%s11500_s3] sm:$0xff] }
 0x8ca   :  { %v7789_v9 = vpop.f32.mrf.mxu1  ;;  %v11574_v46 = vld [vmem:[#allocation3_spill] sm:$0xff] }
 0x8cb   :  { %8548 = vtanh.f32 %v4052_v0  ;;  %v4055_v12 = vadd.f32 %v7789_v9, %v1092_v47  ;;  %v1403_v47 = vadd.f32 %v10391_v24, %v11574_v46  ;;  %v11575_v9 = vld [vmem:[#allocation4_spill] sm:$0xff]  ;;  %v11584_v46 = vld [vmem:[#allocation9_spill] sm:$0xff] }
 0x8cc   :  { %v4043_v29 = vpop.f32.mrf.mxu1 }
 0x8cd   :  { %8550 = vtanh.f32 %v4055_v12  ;;  %v4054_v34 = vadd.f32 %v4043_v29, %v1087_v14  ;;  %v1398_v14 = vadd.f32 %v10391_v24, %v11575_v9 }
 0x8cf   :  { %8552 = vtanh.f32 %v4054_v34  ;;  %v11576_v34 = vld [vmem:[#allocation5_spill] sm:$0xff] }
 0x8d6   :  { %v8547_v33 = vpop.eup %8546 }
 0x8d7   :  { %6159 = vst [vmem:[%s11503_s5 + $0x128] sm:$0xff] %v8547_v33 }
 0x8d8   :  { %v8549_v37 = vpop.eup %8548 }
 0x8d9   :  { %6158 = vst [vmem:[%s11503_s5 + $0x120] sm:$0xff] %v8549_v37  ;;  %7822 = vmatprep.mubr.f32.mxu0 %v8549_v37 }
 0x8da   :  { %v8551_v39 = vpop.eup %8550  ;;  %7823 = vmatmul.mubr.f32.vlgmr.msra.gmra.mxu0 %v8547_v33  ;;  %v1413_v33 = vadd.f32 %v10391_v24, %v11576_v34 }
 0x8db   :  { %6161 = vst [vmem:[%s11503_s5 + $0x138] sm:$0xff] %v8551_v39  ;;  %7867 = vmatpush3.msra.mxu0 %v9964_v56  ;;  %v10499_v56 = vld [vmem:[%s11500_s3 + $0x78] sm:$0xff] }
 0x8dc   :  { %v8553_v41 = vpop.eup %8552  ;;  %7868 = vmatprep.subr.mxu0 %v9970_v58 }
 0x8dd   :  { %6160 = vst [vmem:[%s11503_s5 + $0x130] sm:$0xff] %v8553_v41  ;;  %7825 = vmatprep.mubr.f32.mxu0 %v8553_v41  ;;  %7869 = vmatpush3.msra.mxu0 %v9970_v58  ;;  %v1189_v58 = vadd.f32 %v10391_v24, %v9688_v52  ;;  %v11577_v41 = vld [vmem:[#allocation6_spill] sm:$0xff] }
 0x8de   :  { %7826 = vmatmul.mubr.f32.gmra.mxu0 %v8551_v39  ;;  %7870 = vmatprep.subr.mxu0 %v9980_v59 }
 0x8df   :  { %7871 = vmatpush3.msra.mxu0 %v9980_v59 }
 0x8e0   :  { %7872 = vmatprep.subr.mxu0 %v9987_v60 }
 0x8e1   :  { %7873 = vmatpush3.msra.mxu0 %v9987_v60  ;;  %v1184_v60 = vadd.f32 %v10391_v24, %v9692_v53 }
 0x8e2   :  { %7874 = vmatprep.subr.mxu0 %v9994_v1 }
 0x8e3   :  { %7875 = vmatpush3.msra.mxu0 %v9994_v1 }
 0x8e4   :  { %7876 = vmatprep.subr.mxu0 %v10001_v22 }
 0x8e5   :  { %7877 = vmatpush3.msra.mxu0 %v10001_v22 }
 0x8e6   :  { %7878 = vmatprep.subr.mxu0 %v10060_v31 }
 0x8e7   :  { %7879 = vmatpush3.msra.mxu0 %v10060_v31 }
 0x8e8   :  { %7880 = vmatprep.subr.mxu0 %v10067_v3 }
 0x8e9   :  { %7881 = vmatpush3.msra.mxu0 %v10067_v3 }
 0x8ea   :  { %7882 = vmatprep.subr.mxu0 %v10074_v8 }
 0x8eb   :  { %7883 = vmatpush3.msra.mxu0 %v10074_v8 }
 0x8ec   :  { %7884 = vmatprep.subr.mxu0 %v10081_v63 }
 0x8ed   :  { %7885 = vmatpush3.msra.mxu0 %v10081_v63 }
 0x8ee   :  { %7886 = vmatprep.subr.mxu0 %v10088_v35 }
 0x8ef   :  { %7887 = vmatpush3.msra.mxu0 %v10088_v35 }
 0x8f0   :  { %7888 = vmatprep.subr.mxu0 %v10095_v62 }
 0x8f1   :  { %7889 = vmatpush3.msra.mxu0 %v10095_v62 }
 0x8f2   :  { %7890 = vmatprep.subr.mxu0 %v10102_v61 }
 0x8f3   :  { %7891 = vmatpush3.msra.mxu0 %v10102_v61 }
 0x8f4   :  { %7892 = vmatprep.subr.mxu0 %v10109_v57 }
 0x8f5   :  { %7893 = vmatpush3.msra.mxu0 %v10109_v57 }
 0x8f6   :  { %7894 = vmatprep.subr.mxu0 %v10116_v15 }
 0x8f7   :  { %7895 = vmatpush3.msra.mxu0 %v10116_v15 }
 0x8f8   :  { %7896 = vmatprep.subr.mxu0 %v10123_v16 }
 0x8f9   :  { %7897 = vmatpush3.msra.mxu0 %v10123_v16 }
 0x8fa   :  { %7942 = vmatprep.subr.mxu0 %v10499_v56 }
 0x99a   :  { %v7824_v59 = vpop.f32.mrf.mxu0 }
 0x99b   :  { %v4155_v1 = vadd.f32 %v7824_v59, %v1189_v58  ;;  %v1408_v58 = vadd.f32 %v10391_v24, %v11577_v41 }
 0x99c   :  { %v4135_v22 = vpop.f32.mrf.mxu0 }
 0x99d   :  { %8554 = vtanh.f32 %v4155_v1  ;;  %v4154_v20 = vadd.f32 %v4135_v22, %v1184_v60 }
 0x99e   :  { %v7827_v21 = vpop.f32.mrf.mxu0 }
 0x99f   :  { %8556 = vtanh.f32 %v4154_v20  ;;  %v4157_v23 = vadd.f32 %v7827_v21, %v1199_v18 }
 0x9a0   :  { %v4145_v10 = vpop.f32.mrf.mxu0 }
 0x9a1   :  { %8558 = vtanh.f32 %v4157_v23  ;;  %v4156_v52 = vadd.f32 %v4145_v10, %v1194_v17  ;;  %v11578_v17 = vld [vmem:[#allocation38_spill] sm:$0xff] }
 0x9a2   :  { %v1510_v23 = vadd.f32 %v10391_v24, %v11578_v17  ;;  %v11588_v17 = vld [vmem:[#allocation44_spill] sm:$0xff] }
 0x9a3   :  { %8560 = vtanh.f32 %v4156_v52  ;;  %v11579_v52 = vld [vmem:[#allocation39_spill] sm:$0xff] }
 0x9aa   :  { %v8555_v4 = vpop.eup %8554 }
 0x9ab   :  { %6163 = vst [vmem:[%s11503_s5 + $0x148] sm:$0xff] %v8555_v4 }
 0x9ac   :  { %v8557_v53 = vpop.eup %8556 }
 0x9ad   :  { %6162 = vst [vmem:[%s11503_s5 + $0x140] sm:$0xff] %v8557_v53  ;;  %7860 = vmatprep.mubr.f32.mxu1 %v8557_v53 }
 0x9ae   :  { %v8559_v54 = vpop.eup %8558  ;;  %7861 = vmatmul.mubr.f32.vlgmr.msra.gmra.mxu1 %v8555_v4  ;;  %v1505_v4 = vadd.f32 %v10391_v24, %v11579_v52 }
 0x9af   :  { %6165 = vst [vmem:[%s11503_s5 + $0x158] sm:$0xff] %v8559_v54  ;;  %7905 = vmatpush3.msra.mxu1 %v10499_v56 }
 0x9b0   :  { %v8561_v55 = vpop.eup %8560  ;;  %7906 = vmatprep.subr.mxu1 %v10523_v11 }
 0x9b1   :  { %6164 = vst [vmem:[%s11503_s5 + $0x150] sm:$0xff] %v8561_v55  ;;  %7863 = vmatprep.mubr.f32.mxu1 %v8561_v55  ;;  %7907 = vmatpush3.msra.mxu1 %v10523_v11  ;;  %v11580_v55 = vld [vmem:[#allocation40_spill] sm:$0xff] }
 0x9b2   :  { %7864 = vmatmul.mubr.f32.gmra.mxu1 %v8559_v54  ;;  %7908 = vmatprep.subr.mxu1 %v10533_v13 }
 0x9b3   :  { %7909 = vmatpush3.msra.mxu1 %v10533_v13 }
 0x9b4   :  { %7910 = vmatprep.subr.mxu1 %v10540_v43 }
 0x9b5   :  { %7911 = vmatpush3.msra.mxu1 %v10540_v43 }
 0x9b6   :  { %7912 = vmatprep.subr.mxu1 %v10547_v5 }
 0x9b7   :  { %7913 = vmatpush3.msra.mxu1 %v10547_v5 }
 0x9b8   :  { %7914 = vmatprep.subr.mxu1 %v10554_v7 }
 0x9b9   :  { %7915 = vmatpush3.msra.mxu1 %v10554_v7 }
 0x9ba   :  { %7916 = vmatprep.subr.mxu1 %v10060_v31 }
 0x9bb   :  { %7917 = vmatpush3.msra.mxu1 %v10060_v31  ;;  %v1296_v31 = vadd.f32 %v10391_v24, %v9872_v6 }
 0x9bc   :  { %7918 = vmatprep.subr.mxu1 %v10067_v3 }
 0x9bd   :  { %7919 = vmatpush3.msra.mxu1 %v10067_v3 }
 0x9be   :  { %7920 = vmatprep.subr.mxu1 %v10074_v8 }
 0x9bf   :  { %7921 = vmatpush3.msra.mxu1 %v10074_v8  ;;  %v11571_v8 = vld [vmem:[#allocation35_spill] sm:$0xff] }
 0x9c0   :  { %7922 = vmatprep.subr.mxu1 %v10081_v63 }
 0x9c1   :  { %7923 = vmatpush3.msra.mxu1 %v10081_v63  ;;  %v1291_v63 = vadd.f32 %v10391_v24, %v11571_v8 }
 0x9c2   :  { %7924 = vmatprep.subr.mxu1 %v10088_v35 }
 0x9c3   :  { %7925 = vmatpush3.msra.mxu1 %v10088_v35 }
 0x9c4   :  { %7926 = vmatprep.subr.mxu1 %v10095_v62 }
 0x9c5   :  { %7927 = vmatpush3.msra.mxu1 %v10095_v62 }
 0x9c6   :  { %7928 = vmatprep.subr.mxu1 %v10102_v61 }
 0x9c7   :  { %7929 = vmatpush3.msra.mxu1 %v10102_v61  ;;  %v11572_v61 = vld [vmem:[#allocation36_spill] sm:$0xff] }
 0x9c8   :  { %7930 = vmatprep.subr.mxu1 %v10109_v57 }
 0x9c9   :  { %7931 = vmatpush3.msra.mxu1 %v10109_v57  ;;  %v1306_v57 = vadd.f32 %v10391_v24, %v11572_v61 }
 0x9ca   :  { %7932 = vmatprep.subr.mxu1 %v10116_v15 }
 0x9cb   :  { %7933 = vmatpush3.msra.mxu1 %v10116_v15 }
 0x9cc   :  { %7934 = vmatprep.subr.mxu1 %v10123_v16 }
 0x9cd   :  { %7935 = vmatpush3.msra.mxu1 %v10123_v16  ;;  %v1301_v16 = vadd.f32 %v10391_v24, %v11573_v26 }
 0x9ce   :  { %7980 = vmatprep.subr.mxu1 %v10499_v56 }
 0xa6e   :  { %v7862_v3 = vpop.f32.mrf.mxu1 }
 0xa6f   :  { %v4257_v35 = vadd.f32 %v7862_v3, %v1296_v31  ;;  %v1520_v31 = vadd.f32 %v10391_v24, %v11580_v55 }
 0xa70   :  { %v4237_v62 = vpop.f32.mrf.mxu1 }
 0xa71   :  { %8562 = vtanh.f32 %v4257_v35  ;;  %v4256_v15 = vadd.f32 %v4237_v62, %v1291_v63  ;;  %v11581_v63 = vld [vmem:[#allocation41_spill] sm:$0xff] }
 0xa72   :  { %v7865_v25 = vpop.f32.mrf.mxu1  ;;  %v1515_v35 = vadd.f32 %v10391_v24, %v11581_v63 }
 0xa73   :  { %8564 = vtanh.f32 %v4256_v15  ;;  %v4259_v28 = vadd.f32 %v7865_v25, %v1306_v57 }
 0xa74   :  { %v4247_v30 = vpop.f32.mrf.mxu1 }
 0xa75   :  { %8566 = vtanh.f32 %v4259_v28  ;;  %v4258_v6 = vadd.f32 %v4247_v30, %v1301_v16  ;;  %v11582_v28 = vld [vmem:[#allocation7_spill] sm:$0xff] }
 0xa76   :  { %v1617_v30 = vadd.f32 %v10391_v24, %v11582_v28  ;;  %v11592_v28 = vld [vmem:[#allocation13_spill] sm:$0xff] }
 0xa77   :  { %8568 = vtanh.f32 %v4258_v6 }
 0xa7e   :  { %v8563_v32 = vpop.eup %8562 }
 0xa7f   :  { %6167 = vst [vmem:[%s11503_s5 + $0x168] sm:$0xff] %v8563_v32 }
 0xa80   :  { %v8565_v36 = vpop.eup %8564 }
 0xa81   :  { %6166 = vst [vmem:[%s11503_s5 + $0x160] sm:$0xff] %v8565_v36  ;;  %7898 = vmatprep.mubr.f32.mxu0 %v8565_v36 }
 0xa82   :  { %v8567_v19 = vpop.eup %8566  ;;  %7899 = vmatmul.mubr.f32.vlgmr.msra.gmra.mxu0 %v8563_v32  ;;  %v11583_v32 = vld [vmem:[#allocation8_spill] sm:$0xff] }
 0xa83   :  { %6169 = vst [vmem:[%s11503_s5 + $0x178] sm:$0xff] %v8567_v19  ;;  %7943 = vmatpush3.msra.mxu0 %v10499_v56  ;;  %v1612_v36 = vadd.f32 %v10391_v24, %v11583_v32 }
 0xa84   :  { %v8569_v38 = vpop.eup %8568  ;;  %7944 = vmatprep.subr.mxu0 %v10523_v11 }
 0xa85   :  { %6168 = vst [vmem:[%s11503_s5 + $0x170] sm:$0xff] %v8569_v38  ;;  %7901 = vmatprep.mubr.f32.mxu0 %v8569_v38  ;;  %7945 = vmatpush3.msra.mxu0 %v10523_v11 }
 0xa86   :  { %7902 = vmatmul.mubr.f32.gmra.mxu0 %v8567_v19  ;;  %7946 = vmatprep.subr.mxu0 %v10533_v13 }
 0xa87   :  { %7947 = vmatpush3.msra.mxu0 %v10533_v13 }
 0xa88   :  { %7948 = vmatprep.subr.mxu0 %v10540_v43 }
 0xa89   :  { %7949 = vmatpush3.msra.mxu0 %v10540_v43 }
 0xa8a   :  { %7950 = vmatprep.subr.mxu0 %v10547_v5 }
 0xa8b   :  { %7951 = vmatpush3.msra.mxu0 %v10547_v5 }
 0xa8c   :  { %7952 = vmatprep.subr.mxu0 %v10554_v7 }
 0xa8d   :  { %7953 = vmatpush3.msra.mxu0 %v10554_v7 }
 0xa8e   :  { %7954 = vmatprep.subr.mxu0 %v10613_v40 }
 0xa8f   :  { %7955 = vmatpush3.msra.mxu0 %v10613_v40 }
 0xa90   :  { %7956 = vmatprep.subr.mxu0 %v10620_v48 }
 0xa91   :  { %7957 = vmatpush3.msra.mxu0 %v10620_v48 }
 0xa92   :  { %7958 = vmatprep.subr.mxu0 %v10627_v42 }
 0xa93   :  { %7959 = vmatpush3.msra.mxu0 %v10627_v42 }
 0xa94   :  { %7960 = vmatprep.subr.mxu0 %v10634_v49 }
 0xa95   :  { %7961 = vmatpush3.msra.mxu0 %v10634_v49 }
 0xa96   :  { %7962 = vmatprep.subr.mxu0 %v10641_v50 }
 0xa97   :  { %7963 = vmatpush3.msra.mxu0 %v10641_v50 }
 0xa98   :  { %7964 = vmatprep.subr.mxu0 %v10648_v51 }
 0xa99   :  { %7965 = vmatpush3.msra.mxu0 %v10648_v51 }
 0xa9a   :  { %7966 = vmatprep.subr.mxu0 %v10655_v27 }
 0xa9b   :  { %7967 = vmatpush3.msra.mxu0 %v10655_v27 }
 0xa9c   :  { %7968 = vmatprep.subr.mxu0 %v10662_v44 }
 0xa9d   :  { %7969 = vmatpush3.msra.mxu0 %v10662_v44 }
 0xa9e   :  { %7970 = vmatprep.subr.mxu0 %v10669_v2 }
 0xa9f   :  { %7971 = vmatpush3.msra.mxu0 %v10669_v2 }
 0xaa0   :  { %7972 = vmatprep.subr.mxu0 %v10676_v45 }
 0xaa1   :  { %7973 = vmatpush3.msra.mxu0 %v10676_v45 }
 0xaa2   :  { %8018 = vmatprep.subr.mxu0 %v10499_v56 }
 0xb42   :  { %v7900_v0 = vpop.f32.mrf.mxu0 }
 0xb43   :  { %v4359_v12 = vadd.f32 %v7900_v0, %v1403_v47  ;;  %v1627_v47 = vadd.f32 %v10391_v24, %v11584_v46 }
 0xb44   :  { %v4339_v29 = vpop.f32.mrf.mxu0 }
 0xb45   :  { %8570 = vtanh.f32 %v4359_v12  ;;  %v4358_v37 = vadd.f32 %v4339_v29, %v1398_v14  ;;  %v11585_v14 = vld [vmem:[#allocation10_spill] sm:$0xff] }
 0xb46   :  { %v7903_v39 = vpop.f32.mrf.mxu0  ;;  %v1622_v12 = vadd.f32 %v10391_v24, %v11585_v14 }
 0xb47   :  { %8572 = vtanh.f32 %v4358_v37  ;;  %v4361_v59 = vadd.f32 %v7903_v39, %v1413_v33 }
 0xb48   :  { %v4349_v60 = vpop.f32.mrf.mxu0 }
 0xb49   :  { %8574 = vtanh.f32 %v4361_v59  ;;  %v4360_v1 = vadd.f32 %v4349_v60, %v1408_v58  ;;  %v11586_v59 = vld [vmem:[#allocation42_spill] sm:$0xff] }
 0xb4a   :  { %v1724_v60 = vadd.f32 %v10391_v24, %v11586_v59  ;;  %v11596_v59 = vld [vmem:[#allocation48_spill] sm:$0xff] }
 0xb4b   :  { %8576 = vtanh.f32 %v4360_v1 }
 0xb52   :  { %v8571_v22 = vpop.eup %8570 }
 0xb53   :  { %6171 = vst [vmem:[%s11503_s5 + $0x188] sm:$0xff] %v8571_v22 }
 0xb54   :  { %v8573_v18 = vpop.eup %8572 }
 0xb55   :  { %6170 = vst [vmem:[%s11503_s5 + $0x180] sm:$0xff] %v8573_v18  ;;  %7936 = vmatprep.mubr.f32.mxu1 %v8573_v18 }
 0xb56   :  { %v8575_v20 = vpop.eup %8574  ;;  %7937 = vmatmul.mubr.f32.vlgmr.msra.gmra.mxu1 %v8571_v22  ;;  %v11587_v22 = vld [vmem:[#allocation43_spill] sm:$0xff] }
 0xb57   :  { %6173 = vst [vmem:[%s11503_s5 + $0x198] sm:$0xff] %v8575_v20  ;;  %7981 = vmatpush3.msra.mxu1 %v10499_v56  ;;  %v1719_v18 = vadd.f32 %v10391_v24, %v11587_v22 }
 0xb58   :  { %v8577_v21 = vpop.eup %8576  ;;  %7982 = vmatprep.subr.mxu1 %v10523_v11 }
 0xb59   :  { %6172 = vst [vmem:[%s11503_s5 + $0x190] sm:$0xff] %v8577_v21  ;;  %7939 = vmatprep.mubr.f32.mxu1 %v8577_v21  ;;  %7983 = vmatpush3.msra.mxu1 %v10523_v11 }
 0xb5a   :  { %7940 = vmatmul.mubr.f32.gmra.mxu1 %v8575_v20  ;;  %7984 = vmatprep.subr.mxu1 %v10533_v13 }
 0xb5b   :  { %7985 = vmatpush3.msra.mxu1 %v10533_v13 }
 0xb5c   :  { %7986 = vmatprep.subr.mxu1 %v10540_v43 }
 0xb5d   :  { %7987 = vmatpush3.msra.mxu1 %v10540_v43 }
 0xb5e   :  { %7988 = vmatprep.subr.mxu1 %v10547_v5 }
 0xb5f   :  { %7989 = vmatpush3.msra.mxu1 %v10547_v5 }
 0xb60   :  { %7990 = vmatprep.subr.mxu1 %v10554_v7 }
 0xb61   :  { %7991 = vmatpush3.msra.mxu1 %v10554_v7 }
 0xb62   :  { %7992 = vmatprep.subr.mxu1 %v10613_v40 }
 0xb63   :  { %7993 = vmatpush3.msra.mxu1 %v10613_v40 }
 0xb64   :  { %7994 = vmatprep.subr.mxu1 %v10620_v48 }
 0xb65   :  { %7995 = vmatpush3.msra.mxu1 %v10620_v48 }
 0xb66   :  { %7996 = vmatprep.subr.mxu1 %v10627_v42 }
 0xb67   :  { %7997 = vmatpush3.msra.mxu1 %v10627_v42 }
 0xb68   :  { %7998 = vmatprep.subr.mxu1 %v10634_v49 }
 0xb69   :  { %7999 = vmatpush3.msra.mxu1 %v10634_v49 }
 0xb6a   :  { %8000 = vmatprep.subr.mxu1 %v10641_v50 }
 0xb6b   :  { %8001 = vmatpush3.msra.mxu1 %v10641_v50 }
 0xb6c   :  { %8002 = vmatprep.subr.mxu1 %v10648_v51 }
 0xb6d   :  { %8003 = vmatpush3.msra.mxu1 %v10648_v51 }
 0xb6e   :  { %8004 = vmatprep.subr.mxu1 %v10655_v27 }
 0xb6f   :  { %8005 = vmatpush3.msra.mxu1 %v10655_v27 }
 0xb70   :  { %8006 = vmatprep.subr.mxu1 %v10662_v44 }
 0xb71   :  { %8007 = vmatpush3.msra.mxu1 %v10662_v44 }
 0xb72   :  { %8008 = vmatprep.subr.mxu1 %v10669_v2 }
 0xb73   :  { %8009 = vmatpush3.msra.mxu1 %v10669_v2 }
 0xb74   :  { %8010 = vmatprep.subr.mxu1 %v10676_v45 }
 0xb75   :  { %8011 = vmatpush3.msra.mxu1 %v10676_v45 }
 0xb76   :  { %8056 = vmatprep.subr.mxu1 %v10499_v56 }
 0xc16   :  { %v7938_v10 = vpop.f32.mrf.mxu1 }
 0xc17   :  { %v4461_v53 = vadd.f32 %v7938_v10, %v1510_v23  ;;  %v1734_v23 = vadd.f32 %v10391_v24, %v11588_v17 }
 0xc18   :  { %v4441_v54 = vpop.f32.mrf.mxu1 }
 0xc19   :  { %8578 = vtanh.f32 %v4461_v53  ;;  %v4460_v3 = vadd.f32 %v4441_v54, %v1505_v4  ;;  %v11589_v4 = vld [vmem:[#allocation45_spill] sm:$0xff] }
 0xc1a   :  { %v7941_v8 = vpop.f32.mrf.mxu1  ;;  %v1729_v53 = vadd.f32 %v10391_v24, %v11589_v4 }
 0xc1b   :  { %8580 = vtanh.f32 %v4460_v3  ;;  %v4463_v62 = vadd.f32 %v7941_v8, %v1520_v31 }
 0xc1c   :  { %v4451_v61 = vpop.f32.mrf.mxu1 }
 0xc1d   :  { %8582 = vtanh.f32 %v4463_v62  ;;  %v4462_v57 = vadd.f32 %v4451_v61, %v1515_v35  ;;  %v11590_v62 = vld [vmem:[#allocation11_spill] sm:$0xff] }
 0xc1e   :  { %v1831_v61 = vadd.f32 %v10391_v24, %v11590_v62  ;;  %v11600_v62 = vld [vmem:[#allocation17_spill] sm:$0xff] }
 0xc1f   :  { %8584 = vtanh.f32 %v4462_v57 }
 0xc26   :  { %v8579_v15 = vpop.eup %8578 }
 0xc27   :  { %6175 = vst [vmem:[%s11503_s5 + $0x1a8] sm:$0xff] %v8579_v15 }
 0xc28   :  { %v8581_v25 = vpop.eup %8580 }
 0xc29   :  { %6174 = vst [vmem:[%s11503_s5 + $0x1a0] sm:$0xff] %v8581_v25  ;;  %7974 = vmatprep.mubr.f32.mxu0 %v8581_v25 }
 0xc2a   :  { %v8583_v26 = vpop.eup %8582  ;;  %7975 = vmatmul.mubr.f32.vlgmr.msra.gmra.mxu0 %v8579_v15  ;;  %v11591_v15 = vld [vmem:[#allocation12_spill] sm:$0xff] }
 0xc2b   :  { %6177 = vst [vmem:[%s11503_s5 + $0x1b8] sm:$0xff] %v8583_v26  ;;  %8019 = vmatpush3.msra.mxu0 %v10499_v56  ;;  %v1826_v25 = vadd.f32 %v10391_v24, %v11591_v15 }
 0xc2c   :  { %v8585_v16 = vpop.eup %8584  ;;  %8020 = vmatprep.subr.mxu0 %v10523_v11 }
 0xc2d   :  { %6176 = vst [vmem:[%s11503_s5 + $0x1b0] sm:$0xff] %v8585_v16  ;;  %7977 = vmatprep.mubr.f32.mxu0 %v8585_v16  ;;  %8021 = vmatpush3.msra.mxu0 %v10523_v11 }
 0xc2e   :  { %7978 = vmatmul.mubr.f32.gmra.mxu0 %v8583_v26  ;;  %8022 = vmatprep.subr.mxu0 %v10533_v13 }
 0xc2f   :  { %8023 = vmatpush3.msra.mxu0 %v10533_v13 }
 0xc30   :  { %8024 = vmatprep.subr.mxu0 %v10540_v43 }
 0xc31   :  { %8025 = vmatpush3.msra.mxu0 %v10540_v43 }
 0xc32   :  { %8026 = vmatprep.subr.mxu0 %v10547_v5 }
 0xc33   :  { %8027 = vmatpush3.msra.mxu0 %v10547_v5 }
 0xc34   :  { %8028 = vmatprep.subr.mxu0 %v10554_v7 }
 0xc35   :  { %8029 = vmatpush3.msra.mxu0 %v10554_v7 }
 0xc36   :  { %8030 = vmatprep.subr.mxu0 %v10613_v40 }
 0xc37   :  { %8031 = vmatpush3.msra.mxu0 %v10613_v40 }
 0xc38   :  { %8032 = vmatprep.subr.mxu0 %v10620_v48 }
 0xc39   :  { %8033 = vmatpush3.msra.mxu0 %v10620_v48 }
 0xc3a   :  { %8034 = vmatprep.subr.mxu0 %v10627_v42 }
 0xc3b   :  { %8035 = vmatpush3.msra.mxu0 %v10627_v42 }
 0xc3c   :  { %8036 = vmatprep.subr.mxu0 %v10634_v49 }
 0xc3d   :  { %8037 = vmatpush3.msra.mxu0 %v10634_v49 }
 0xc3e   :  { %8038 = vmatprep.subr.mxu0 %v10641_v50 }
 0xc3f   :  { %8039 = vmatpush3.msra.mxu0 %v10641_v50 }
 0xc40   :  { %8040 = vmatprep.subr.mxu0 %v10648_v51 }
 0xc41   :  { %8041 = vmatpush3.msra.mxu0 %v10648_v51 }
 0xc42   :  { %8042 = vmatprep.subr.mxu0 %v10655_v27 }
 0xc43   :  { %8043 = vmatpush3.msra.mxu0 %v10655_v27 }
 0xc44   :  { %8044 = vmatprep.subr.mxu0 %v10662_v44 }
 0xc45   :  { %8045 = vmatpush3.msra.mxu0 %v10662_v44 }
 0xc46   :  { %8046 = vmatprep.subr.mxu0 %v10669_v2 }
 0xc47   :  { %8047 = vmatpush3.msra.mxu0 %v10669_v2 }
 0xc48   :  { %8048 = vmatprep.subr.mxu0 %v10676_v45 }
 0xc49   :  { %8049 = vmatpush3.msra.mxu0 %v10676_v45 }
 0xc4a   :  { %8094 = vmatprep.subr.mxu0 %v10499_v56 }
 0xcea   :  { %v7976_v6 = vpop.f32.mrf.mxu0 }
 0xceb   :  { %v4563_v19 = vadd.f32 %v7976_v6, %v1617_v30  ;;  %v1841_v30 = vadd.f32 %v10391_v24, %v11592_v28 }
 0xcec   :  { %v4543_v38 = vpop.f32.mrf.mxu0 }
 0xced   :  { %8586 = vtanh.f32 %v4563_v19  ;;  %v4562_v0 = vadd.f32 %v4543_v38, %v1612_v36  ;;  %v11593_v36 = vld [vmem:[#allocation14_spill] sm:$0xff] }
 0xcee   :  { %v7979_v9 = vpop.f32.mrf.mxu0  ;;  %v1836_v19 = vadd.f32 %v10391_v24, %v11593_v36 }
 0xcef   :  { %8588 = vtanh.f32 %v4562_v0  ;;  %v4565_v29 = vadd.f32 %v7979_v9, %v1627_v47 }
 0xcf0   :  { %v4553_v34 = vpop.f32.mrf.mxu0 }
 0xcf1   :  { %8590 = vtanh.f32 %v4565_v29  ;;  %v4564_v33 = vadd.f32 %v4553_v34, %v1622_v12  ;;  %v10944_v12 = vld [vmem:[%s11502_s4] ss:$0 sm:$0xff]  ;;  %v11594_v29 = vld [vmem:[#allocation46_spill] sm:$0xff] }
 0xcf2   :  { %v1938_v34 = vadd.f32 %v10944_v12, %v11594_v29 }
 0xcf3   :  { %8592 = vtanh.f32 %v4564_v33 }
 0xcfa   :  { %v8587_v37 = vpop.eup %8586 }
 0xcfb   :  { %6179 = vst [vmem:[%s11503_s5 + $0x1c8] sm:$0xff] %v8587_v37 }
 0xcfc   :  { %v8589_v39 = vpop.eup %8588 }
 0xcfd   :  { %6178 = vst [vmem:[%s11503_s5 + $0x1c0] sm:$0xff] %v8589_v39  ;;  %8012 = vmatprep.mubr.f32.mxu1 %v8589_v39 }
 0xcfe   :  { %v8591_v41 = vpop.eup %8590  ;;  %8013 = vmatmul.mubr.f32.vlgmr.msra.gmra.mxu1 %v8587_v37  ;;  %v11595_v37 = vld [vmem:[#allocation47_spill] sm:$0xff] }
 0xcff   :  { %6181 = vst [vmem:[%s11503_s5 + $0x1d8] sm:$0xff] %v8591_v41  ;;  %8057 = vmatpush3.msra.mxu1 %v10499_v56  ;;  %v1933_v39 = vadd.f32 %v10944_v12, %v11595_v37 }
 0xd00   :  { %v8593_v58 = vpop.eup %8592  ;;  %8058 = vmatprep.subr.mxu1 %v10523_v11 }
 0xd01   :  { %6180 = vst [vmem:[%s11503_s5 + $0x1d0] sm:$0xff] %v8593_v58  ;;  %8015 = vmatprep.mubr.f32.mxu1 %v8593_v58  ;;  %8059 = vmatpush3.msra.mxu1 %v10523_v11 }
 0xd02   :  { %8016 = vmatmul.mubr.f32.gmra.mxu1 %v8591_v41  ;;  %8060 = vmatprep.subr.mxu1 %v10533_v13 }
 0xd03   :  { %8061 = vmatpush3.msra.mxu1 %v10533_v13 }
 0xd04   :  { %8062 = vmatprep.subr.mxu1 %v10540_v43 }
 0xd05   :  { %8063 = vmatpush3.msra.mxu1 %v10540_v43 }
 0xd06   :  { %8064 = vmatprep.subr.mxu1 %v10547_v5 }
 0xd07   :  { %8065 = vmatpush3.msra.mxu1 %v10547_v5 }
 0xd08   :  { %8066 = vmatprep.subr.mxu1 %v10554_v7 }
 0xd09   :  { %8067 = vmatpush3.msra.mxu1 %v10554_v7 }
 0xd0a   :  { %8068 = vmatprep.subr.mxu1 %v10613_v40 }
 0xd0b   :  { %8069 = vmatpush3.msra.mxu1 %v10613_v40 }
 0xd0c   :  { %8070 = vmatprep.subr.mxu1 %v10620_v48 }
 0xd0d   :  { %8071 = vmatpush3.msra.mxu1 %v10620_v48 }
 0xd0e   :  { %8072 = vmatprep.subr.mxu1 %v10627_v42 }
 0xd0f   :  { %8073 = vmatpush3.msra.mxu1 %v10627_v42 }
 0xd10   :  { %8074 = vmatprep.subr.mxu1 %v10634_v49 }
 0xd11   :  { %8075 = vmatpush3.msra.mxu1 %v10634_v49 }
 0xd12   :  { %8076 = vmatprep.subr.mxu1 %v10641_v50 }
 0xd13   :  { %8077 = vmatpush3.msra.mxu1 %v10641_v50 }
 0xd14   :  { %8078 = vmatprep.subr.mxu1 %v10648_v51 }
 0xd15   :  { %8079 = vmatpush3.msra.mxu1 %v10648_v51 }
 0xd16   :  { %8080 = vmatprep.subr.mxu1 %v10655_v27 }
 0xd17   :  { %8081 = vmatpush3.msra.mxu1 %v10655_v27 }
 0xd18   :  { %8082 = vmatprep.subr.mxu1 %v10662_v44 }
 0xd19   :  { %8083 = vmatpush3.msra.mxu1 %v10662_v44 }
 0xd1a   :  { %8084 = vmatprep.subr.mxu1 %v10669_v2 }
 0xd1b   :  { %8085 = vmatpush3.msra.mxu1 %v10669_v2 }
 0xd1c   :  { %8086 = vmatprep.subr.mxu1 %v10676_v45 }
 0xd1d   :  { %8087 = vmatpush3.msra.mxu1 %v10676_v45 }
 0xd1e   :  { %8132 = vmatprep.subr.mxu1 %v10499_v56 }
 0xdbe   :  { %v8014_v1 = vpop.f32.mrf.mxu1 }
 0xdbf   :  { %v4665_v20 = vadd.f32 %v8014_v1, %v1724_v60  ;;  %v1948_v60 = vadd.f32 %v10944_v12, %v11596_v59 }
 0xdc0   :  { %v4645_v21 = vpop.f32.mrf.mxu1 }
 0xdc1   :  { %8594 = vtanh.f32 %v4665_v20  ;;  %v4664_v10 = vadd.f32 %v4645_v21, %v1719_v18  ;;  %v11597_v18 = vld [vmem:[#allocation49_spill] sm:$0xff] }
 0xdc2   :  { %v8017_v52 = vpop.f32.mrf.mxu1  ;;  %v1943_v20 = vadd.f32 %v10944_v12, %v11597_v18  ;;  %v11100_v18 = vld [vmem:[%s11500_s3 + $0x58] sm:$0xff] }
 0xdc3   :  { %8596 = vtanh.f32 %v4664_v10  ;;  %v4667_v54 = vadd.f32 %v8017_v52, %v1734_v23 }
 0xdc4   :  { %v4655_v55 = vpop.f32.mrf.mxu1 }
 0xdc5   :  { %8598 = vtanh.f32 %v4667_v54  ;;  %v4666_v31 = vadd.f32 %v4655_v55, %v1729_v53  ;;  %v11598_v54 = vld [vmem:[#allocation15_spill] sm:$0xff] }
 0xdc6   :  { %v2045_v55 = vadd.f32 %v10944_v12, %v11598_v54 }
 0xdc7   :  { %8600 = vtanh.f32 %v4666_v31 }
 0xdce   :  { %v8595_v3 = vpop.eup %8594 }
 0xdcf   :  { %6183 = vst [vmem:[%s11503_s5 + $0x1e8] sm:$0xff] %v8595_v3 }
 0xdd0   :  { %v8597_v8 = vpop.eup %8596 }
 0xdd1   :  { %6182 = vst [vmem:[%s11503_s5 + $0x1e0] sm:$0xff] %v8597_v8  ;;  %8050 = vmatprep.mubr.f32.mxu0 %v8597_v8 }
 0xdd2   :  { %v8599_v63 = vpop.eup %8598  ;;  %8051 = vmatmul.mubr.f32.vlgmr.msra.gmra.mxu0 %v8595_v3  ;;  %v11599_v3 = vld [vmem:[#allocation16_spill] sm:$0xff] }
 0xdd3   :  { %6185 = vst [vmem:[%s11503_s5 + $0x1f8] sm:$0xff] %v8599_v63  ;;  %8095 = vmatpush3.msra.mxu0 %v10499_v56  ;;  %v2040_v8 = vadd.f32 %v10944_v12, %v11599_v3  ;;  %v11166_v3 = vld [vmem:[%s11500_s3 + $0x48] sm:$0xff] }
 0xdd4   :  { %v8601_v35 = vpop.eup %8600  ;;  %8096 = vmatprep.subr.mxu0 %v10523_v11 }
 0xdd5   :  { %6184 = vst [vmem:[%s11503_s5 + $0x1f0] sm:$0xff] %v8601_v35  ;;  %8053 = vmatprep.mubr.f32.mxu0 %v8601_v35  ;;  %8097 = vmatpush3.msra.mxu0 %v10523_v11 }
 0xdd6   :  { %8054 = vmatmul.mubr.f32.gmra.mxu0 %v8599_v63  ;;  %8098 = vmatprep.subr.mxu0 %v10533_v13 }
 0xdd7   :  { %8099 = vmatpush3.msra.mxu0 %v10533_v13 }
 0xdd8   :  { %8100 = vmatprep.subr.mxu0 %v10540_v43 }
 0xdd9   :  { %8101 = vmatpush3.msra.mxu0 %v10540_v43 }
 0xdda   :  { %8102 = vmatprep.subr.mxu0 %v10547_v5 }
 0xddb   :  { %8103 = vmatpush3.msra.mxu0 %v10547_v5 }
 0xddc   :  { %8104 = vmatprep.subr.mxu0 %v10554_v7 }
 0xddd   :  { %8105 = vmatpush3.msra.mxu0 %v10554_v7 }
 0xdde   :  { %8106 = vmatprep.subr.mxu0 %v10613_v40 }
 0xddf   :  { %8107 = vmatpush3.msra.mxu0 %v10613_v40 }
 0xde0   :  { %8108 = vmatprep.subr.mxu0 %v10620_v48 }
 0xde1   :  { %8109 = vmatpush3.msra.mxu0 %v10620_v48 }
 0xde2   :  { %8110 = vmatprep.subr.mxu0 %v10627_v42 }
 0xde3   :  { %8111 = vmatpush3.msra.mxu0 %v10627_v42 }
 0xde4   :  { %8112 = vmatprep.subr.mxu0 %v10634_v49 }
 0xde5   :  { %8113 = vmatpush3.msra.mxu0 %v10634_v49 }
 0xde6   :  { %8114 = vmatprep.subr.mxu0 %v10641_v50 }
 0xde7   :  { %8115 = vmatpush3.msra.mxu0 %v10641_v50 }
 0xde8   :  { %8116 = vmatprep.subr.mxu0 %v10648_v51 }
 0xde9   :  { %8117 = vmatpush3.msra.mxu0 %v10648_v51 }
 0xdea   :  { %8118 = vmatprep.subr.mxu0 %v10655_v27 }
 0xdeb   :  { %8119 = vmatpush3.msra.mxu0 %v10655_v27 }
 0xdec   :  { %8120 = vmatprep.subr.mxu0 %v10662_v44 }
 0xded   :  { %8121 = vmatpush3.msra.mxu0 %v10662_v44 }
 0xdee   :  { %8122 = vmatprep.subr.mxu0 %v10669_v2 }
 0xdef   :  { %8123 = vmatpush3.msra.mxu0 %v10669_v2 }
 0xdf0   :  { %8124 = vmatprep.subr.mxu0 %v10676_v45 }
 0xdf1   :  { %8125 = vmatpush3.msra.mxu0 %v10676_v45 }
 0xdf2   :  { %8170 = vmatprep.subr.mxu0 %v10499_v56 }
 0xe92   :  { %v8052_v57 = vpop.f32.mrf.mxu0 }
 0xe93   :  { %v4767_v26 = vadd.f32 %v8052_v57, %v1831_v61  ;;  %v2055_v61 = vadd.f32 %v10944_v12, %v11600_v62  ;;  %v11194_v62 = vld [vmem:[%s11500_s3 + $0x28] sm:$0xff] }
 0xe94   :  { %v4747_v16 = vpop.f32.mrf.mxu0 }
 0xe95   :  { %8602 = vtanh.f32 %v4767_v26  ;;  %v4766_v6 = vadd.f32 %v4747_v16, %v1826_v25  ;;  %v11601_v25 = vld [vmem:[#allocation18_spill] sm:$0xff] }
 0xe96   :  { %v8055_v32 = vpop.f32.mrf.mxu0  ;;  %v2050_v26 = vadd.f32 %v10944_v12, %v11601_v25  ;;  %v11222_v25 = vld [vmem:[%s11500_s3 + $0x8] sm:$0xff] }
 0xe97   :  { %8604 = vtanh.f32 %v4766_v6  ;;  %v4769_v38 = vadd.f32 %v8055_v32, %v1841_v30 }
 0xe98   :  { %v4757_v46 = vpop.f32.mrf.mxu0 }
 0xe99   :  { %8606 = vtanh.f32 %v4769_v38  ;;  %v4768_v47 = vadd.f32 %v4757_v46, %v1836_v19 }
 0xe9b   :  { %8608 = vtanh.f32 %v4768_v47  ;;  %v11604_v47 = vld [vmem:[#allocation52_spill] sm:$0xff] }
 0xea2   :  { %v8603_v0 = vpop.eup %8602 }
 0xea3   :  { %6187 = vst [vmem:[%s11503_s5 + $0x208] sm:$0xff] %v8603_v0 }
 0xea4   :  { %v8605_v9 = vpop.eup %8604 }
 0xea5   :  { %6186 = vst [vmem:[%s11503_s5 + $0x200] sm:$0xff] %v8605_v9  ;;  %8088 = vmatprep.mubr.f32.mxu1 %v8605_v9 }
 0xea6   :  { %v8607_v14 = vpop.eup %8606  ;;  %8089 = vmatmul.mubr.f32.vlgmr.msra.gmra.mxu1 %v8603_v0  ;;  %v2162_v0 = vadd.f32 %v10944_v12, %v11604_v47 }
 0xea7   :  { %6189 = vst [vmem:[%s11503_s5 + $0x218] sm:$0xff] %v8607_v14  ;;  %8133 = vmatpush3.msra.mxu1 %v10499_v56 }
 0xea8   :  { %v8609_v24 = vpop.eup %8608  ;;  %8134 = vmatprep.subr.mxu1 %v10523_v11 }
 0xea9   :  { %6188 = vst [vmem:[%s11503_s5 + $0x210] sm:$0xff] %v8609_v24  ;;  %8091 = vmatprep.mubr.f32.mxu1 %v8609_v24  ;;  %8135 = vmatpush3.msra.mxu1 %v10523_v11  ;;  %v11605_v24 = vld [vmem:[#allocation53_spill] sm:$0xff] }
 0xeaa   :  { %8092 = vmatmul.mubr.f32.gmra.mxu1 %v8607_v14  ;;  %8136 = vmatprep.subr.mxu1 %v10533_v13  ;;  %v2157_v29 = vadd.f32 %v10944_v12, %v11605_v24 }
 0xeab   :  { %8137 = vmatpush3.msra.mxu1 %v10533_v13 }
 0xeac   :  { %8138 = vmatprep.subr.mxu1 %v10540_v43 }
 0xead   :  { %8139 = vmatpush3.msra.mxu1 %v10540_v43 }
 0xeae   :  { %8140 = vmatprep.subr.mxu1 %v10547_v5 }
 0xeaf   :  { %8141 = vmatpush3.msra.mxu1 %v10547_v5 }
 0xeb0   :  { %8142 = vmatprep.subr.mxu1 %v10554_v7 }
 0xeb1   :  { %8143 = vmatpush3.msra.mxu1 %v10554_v7 }
 0xeb2   :  { %8144 = vmatprep.subr.mxu1 %v10613_v40 }
 0xeb3   :  { %8145 = vmatpush3.msra.mxu1 %v10613_v40 }
 0xeb4   :  { %8146 = vmatprep.subr.mxu1 %v10620_v48 }
 0xeb5   :  { %8147 = vmatpush3.msra.mxu1 %v10620_v48 }
 0xeb6   :  { %8148 = vmatprep.subr.mxu1 %v10627_v42 }
 0xeb7   :  { %8149 = vmatpush3.msra.mxu1 %v10627_v42 }
 0xeb8   :  { %8150 = vmatprep.subr.mxu1 %v10634_v49 }
 0xeb9   :  { %8151 = vmatpush3.msra.mxu1 %v10634_v49 }
 0xeba   :  { %8152 = vmatprep.subr.mxu1 %v10641_v50 }
 0xebb   :  { %8153 = vmatpush3.msra.mxu1 %v10641_v50 }
 0xebc   :  { %8154 = vmatprep.subr.mxu1 %v10648_v51 }
 0xebd   :  { %8155 = vmatpush3.msra.mxu1 %v10648_v51 }
 0xebe   :  { %8156 = vmatprep.subr.mxu1 %v10655_v27 }
 0xebf   :  { %8157 = vmatpush3.msra.mxu1 %v10655_v27 }
 0xec0   :  { %8158 = vmatprep.subr.mxu1 %v10662_v44 }
 0xec1   :  { %8159 = vmatpush3.msra.mxu1 %v10662_v44 }
 0xec2   :  { %8160 = vmatprep.subr.mxu1 %v10669_v2 }
 0xec3   :  { %8161 = vmatpush3.msra.mxu1 %v10669_v2 }
 0xec4   :  { %8162 = vmatprep.subr.mxu1 %v10676_v45 }
 0xec5   :  { %8163 = vmatpush3.msra.mxu1 %v10676_v45 }
 0xec6   :  { %8208 = vmatprep.subr.mxu1 %v10499_v56 }
 0xf66   :  { %v8090_v33 = vpop.f32.mrf.mxu1 }
 0xf67   :  { %v4869_v41 = vadd.f32 %v8090_v33, %v1938_v34 }
 0xf68   :  { %v4849_v58 = vpop.f32.mrf.mxu1 }
 0xf69   :  { %8610 = vtanh.f32 %v4869_v41  ;;  %v4868_v1 = vadd.f32 %v4849_v58, %v1933_v39 }
 0xf6a   :  { %v8093_v22 = vpop.f32.mrf.mxu1 }
 0xf6b   :  { %8612 = vtanh.f32 %v4868_v1  ;;  %v4871_v21 = vadd.f32 %v8093_v22, %v1948_v60  ;;  %v11076_v60 = vld [vmem:[%s11500_s3 + $0x70] sm:$0xff]  ;;  %v11086_v1 = vld [vmem:[%s11500_s3 + $0x68] sm:$0xff]  ;;  %v11093_v22 = vld [vmem:[%s11500_s3 + $0x60] sm:$0xff] }
 0xf6c   :  { %v4859_v17 = vpop.f32.mrf.mxu1 }
 0xf6d   :  { %8614 = vtanh.f32 %v4871_v21  ;;  %v4870_v23 = vadd.f32 %v4859_v17, %v1943_v20  ;;  %v11107_v20 = vld [vmem:[%s11500_s3 + $0x50] sm:$0xff] }
 0xf6f   :  { %8616 = vtanh.f32 %v4870_v23  ;;  %v11609_v23 = vld [vmem:[#allocation22_spill] sm:$0xff] }
 0xf76   :  { %v8611_v10 = vpop.eup %8610 }
 0xf77   :  { %6191 = vst [vmem:[%s11503_s5 + $0x228] sm:$0xff] %v8611_v10 }
 0xf78   :  { %v8613_v52 = vpop.eup %8612 }
 0xf79   :  { %6190 = vst [vmem:[%s11503_s5 + $0x220] sm:$0xff] %v8613_v52  ;;  %8126 = vmatprep.mubr.f32.mxu0 %v8613_v52 }
 0xf7a   :  { %v8615_v4 = vpop.eup %8614  ;;  %8127 = vmatmul.mubr.f32.vlgmr.msra.gmra.mxu0 %v8611_v10 }
 0xf7b   :  { %6193 = vst [vmem:[%s11503_s5 + $0x238] sm:$0xff] %v8615_v4  ;;  %8171 = vmatpush3.msra.mxu0 %v10499_v56 }
 0xf7c   :  { %v8617_v53 = vpop.eup %8616  ;;  %8172 = vmatprep.subr.mxu0 %v10523_v11 }
 0xf7d   :  { %6192 = vst [vmem:[%s11503_s5 + $0x230] sm:$0xff] %v8617_v53  ;;  %8129 = vmatprep.mubr.f32.mxu0 %v8617_v53  ;;  %8173 = vmatpush3.msra.mxu0 %v10523_v11 }
 0xf7e   :  { %8130 = vmatmul.mubr.f32.gmra.mxu0 %v8615_v4  ;;  %8174 = vmatprep.subr.mxu0 %v10533_v13 }
 0xf7f   :  { %8175 = vmatpush3.msra.mxu0 %v10533_v13 }
 0xf80   :  { %8176 = vmatprep.subr.mxu0 %v10540_v43 }
 0xf81   :  { %8177 = vmatpush3.msra.mxu0 %v10540_v43 }
 0xf82   :  { %8178 = vmatprep.subr.mxu0 %v10547_v5 }
 0xf83   :  { %8179 = vmatpush3.msra.mxu0 %v10547_v5 }
 0xf84   :  { %8180 = vmatprep.subr.mxu0 %v10554_v7 }
 0xf85   :  { %8181 = vmatpush3.msra.mxu0 %v10554_v7 }
 0xf86   :  { %8182 = vmatprep.subr.mxu0 %v10613_v40 }
 0xf87   :  { %8183 = vmatpush3.msra.mxu0 %v10613_v40 }
 0xf88   :  { %8184 = vmatprep.subr.mxu0 %v10620_v48 }
 0xf89   :  { %8185 = vmatpush3.msra.mxu0 %v10620_v48 }
 0xf8a   :  { %8186 = vmatprep.subr.mxu0 %v10627_v42 }
 0xf8b   :  { %8187 = vmatpush3.msra.mxu0 %v10627_v42 }
 0xf8c   :  { %8188 = vmatprep.subr.mxu0 %v10634_v49 }
 0xf8d   :  { %8189 = vmatpush3.msra.mxu0 %v10634_v49 }
 0xf8e   :  { %8190 = vmatprep.subr.mxu0 %v10641_v50 }
 0xf8f   :  { %8191 = vmatpush3.msra.mxu0 %v10641_v50 }
 0xf90   :  { %8192 = vmatprep.subr.mxu0 %v10648_v51 }
 0xf91   :  { %8193 = vmatpush3.msra.mxu0 %v10648_v51 }
 0xf92   :  { %8194 = vmatprep.subr.mxu0 %v10655_v27 }
 0xf93   :  { %8195 = vmatpush3.msra.mxu0 %v10655_v27 }
 0xf94   :  { %8196 = vmatprep.subr.mxu0 %v10662_v44 }
 0xf95   :  { %8197 = vmatpush3.msra.mxu0 %v10662_v44 }
 0xf96   :  { %8198 = vmatprep.subr.mxu0 %v10669_v2 }
 0xf97   :  { %8199 = vmatpush3.msra.mxu0 %v10669_v2 }
 0xf98   :  { %8200 = vmatprep.subr.mxu0 %v10676_v45 }
 0xf99   :  { %8201 = vmatpush3.msra.mxu0 %v10676_v45 }
 0xf9a   :  { %8246 = vmatprep.subr.mxu0 %v10499_v56 }
0x103a   :  { %v8128_v31 = vpop.f32.mrf.mxu0 }
0x103b   :  { %v4971_v63 = vadd.f32 %v8128_v31, %v2045_v55 }
0x103c   :  { %v4951_v35 = vpop.f32.mrf.mxu0 }
0x103d   :  { %8618 = vtanh.f32 %v4971_v63  ;;  %v4970_v57 = vadd.f32 %v4951_v35, %v2040_v8  ;;  %v11173_v8 = vld [vmem:[%s11500_s3 + $0x40] sm:$0xff]  ;;  %v11180_v63 = vld [vmem:[%s11500_s3 + $0x38] sm:$0xff]  ;;  %v11187_v35 = vld [vmem:[%s11500_s3 + $0x30] sm:$0xff] }
0x103e   :  { %v8131_v15 = vpop.f32.mrf.mxu0 }
0x103f   :  { %8620 = vtanh.f32 %v4970_v57  ;;  %v4973_v16 = vadd.f32 %v8131_v15, %v2055_v61  ;;  %v11201_v61 = vld [vmem:[%s11500_s3 + $0x20] sm:$0xff]  ;;  %v11208_v57 = vld [vmem:[%s11500_s3 + $0x18] sm:$0xff]  ;;  %v11215_v15 = vld [vmem:[%s11500_s3 + $0x10] sm:$0xff] }
0x1040   :  { %v4961_v28 = vpop.f32.mrf.mxu0 }
0x1041   :  { %8622 = vtanh.f32 %v4973_v16  ;;  %v4972_v30 = vadd.f32 %v4961_v28, %v2050_v26  ;;  %v11229_v26 = vld [vmem:[%s11500_s3] sm:$0xff]  ;;  %v11610_v16 = vld [vmem:[#allocation54_spill] sm:$0xff] }
0x1042   :  { %v2366_v28 = vadd.f32 %v10944_v12, %v11610_v16  ;;  %v11620_v16 = vld [vmem:[#allocation60_spill] sm:$0xff] }
0x1043   :  { %8624 = vtanh.f32 %v4972_v30 }
0x104a   :  { %v8619_v6 = vpop.eup %8618 }
0x104b   :  { %6195 = vst [vmem:[%s11503_s5 + $0x248] sm:$0xff] %v8619_v6 }
0x104c   :  { %v8621_v32 = vpop.eup %8620 }
0x104d   :  { %6194 = vst [vmem:[%s11503_s5 + $0x240] sm:$0xff] %v8621_v32  ;;  %8164 = vmatprep.mubr.f32.mxu1 %v8621_v32 }
0x104e   :  { %v8623_v36 = vpop.eup %8622  ;;  %8165 = vmatmul.mubr.f32.vlgmr.msra.gmra.mxu1 %v8619_v6  ;;  %v11611_v6 = vld [vmem:[#allocation55_spill] sm:$0xff] }
0x104f   :  { %6197 = vst [vmem:[%s11503_s5 + $0x258] sm:$0xff] %v8623_v36  ;;  %8209 = vmatpush3.msra.mxu1 %v10499_v56  ;;  %v11052_v56 = vld [vmem:[%s11500_s3 + $0x78] sm:$0xff]  ;;  %v2361_v32 = vadd.f32 %v10944_v12, %v11611_v6 }
0x1050   :  { %v8625_v19 = vpop.eup %8624  ;;  %8210 = vmatprep.subr.mxu1 %v10523_v11 }
0x1051   :  { %6196 = vst [vmem:[%s11503_s5 + $0x250] sm:$0xff] %v8625_v19  ;;  %8167 = vmatprep.mubr.f32.mxu1 %v8625_v19  ;;  %8211 = vmatpush3.msra.mxu1 %v10523_v11  ;;  %v11602_v11 = vld [vmem:[#allocation50_spill] sm:$0xff] }
0x1052   :  { %8168 = vmatmul.mubr.f32.gmra.mxu1 %v8623_v36  ;;  %8212 = vmatprep.subr.mxu1 %v10533_v13 }
0x1053   :  { %8213 = vmatpush3.msra.mxu1 %v10533_v13  ;;  %v2152_v13 = vadd.f32 %v10944_v12, %v11602_v11  ;;  %v11612_v11 = vld [vmem:[#allocation56_spill] sm:$0xff] }
0x1054   :  { %8214 = vmatprep.subr.mxu1 %v10540_v43 }
0x1055   :  { %8215 = vmatpush3.msra.mxu1 %v10540_v43 }
0x1056   :  { %8216 = vmatprep.subr.mxu1 %v10547_v5 }
0x1057   :  { %8217 = vmatpush3.msra.mxu1 %v10547_v5  ;;  %v11603_v5 = vld [vmem:[#allocation51_spill] sm:$0xff] }
0x1058   :  { %8218 = vmatprep.subr.mxu1 %v10554_v7 }
0x1059   :  { %8219 = vmatpush3.msra.mxu1 %v10554_v7  ;;  %v2147_v7 = vadd.f32 %v10944_v12, %v11603_v5 }
0x105a   :  { %8220 = vmatprep.subr.mxu1 %v10613_v40 }
0x105b   :  { %8221 = vmatpush3.msra.mxu1 %v10613_v40 }
0x105c   :  { %8222 = vmatprep.subr.mxu1 %v10620_v48 }
0x105d   :  { %8223 = vmatpush3.msra.mxu1 %v10620_v48 }
0x105e   :  { %8224 = vmatprep.subr.mxu1 %v10627_v42 }
0x105f   :  { %8225 = vmatpush3.msra.mxu1 %v10627_v42 }
0x1060   :  { %8226 = vmatprep.subr.mxu1 %v10634_v49 }
0x1061   :  { %8227 = vmatpush3.msra.mxu1 %v10634_v49 }
0x1062   :  { %8228 = vmatprep.subr.mxu1 %v10641_v50 }
0x1063   :  { %8229 = vmatpush3.msra.mxu1 %v10641_v50 }
0x1064   :  { %8230 = vmatprep.subr.mxu1 %v10648_v51 }
0x1065   :  { %8231 = vmatpush3.msra.mxu1 %v10648_v51 }
0x1066   :  { %8232 = vmatprep.subr.mxu1 %v10655_v27 }
0x1067   :  { %8233 = vmatpush3.msra.mxu1 %v10655_v27 }
0x1068   :  { %8234 = vmatprep.subr.mxu1 %v10662_v44 }
0x1069   :  { %8235 = vmatpush3.msra.mxu1 %v10662_v44 }
0x106a   :  { %8236 = vmatprep.subr.mxu1 %v10669_v2 }
0x106b   :  { %8237 = vmatpush3.msra.mxu1 %v10669_v2 }
0x106c   :  { %8238 = vmatprep.subr.mxu1 %v10676_v45 }
0x106d   :  { %8239 = vmatpush3.msra.mxu1 %v10676_v45 }
0x106e   :  { %8284 = vmatprep.subr.mxu1 %v11052_v56 }
0x110e   :  { %v8166_v43 = vpop.f32.mrf.mxu1 }
0x110f   :  { %v5073_v38 = vadd.f32 %v8166_v43, %v2152_v13  ;;  %v2376_v13 = vadd.f32 %v10944_v12, %v11612_v11 }
0x1110   :  { %v5053_v46 = vpop.f32.mrf.mxu1 }
0x1111   :  { %8626 = vtanh.f32 %v5073_v38  ;;  %v5072_v9 = vadd.f32 %v5053_v46, %v2147_v7  ;;  %v11613_v7 = vld [vmem:[#allocation57_spill] sm:$0xff] }
0x1112   :  { %v8169_v14 = vpop.f32.mrf.mxu1  ;;  %v2371_v38 = vadd.f32 %v10944_v12, %v11613_v7 }
0x1113   :  { %8628 = vtanh.f32 %v5072_v9  ;;  %v5075_v34 = vadd.f32 %v8169_v14, %v2162_v0 }
0x1114   :  { %v5063_v33 = vpop.f32.mrf.mxu1 }
0x1115   :  { %8630 = vtanh.f32 %v5075_v34  ;;  %v5074_v37 = vadd.f32 %v5063_v33, %v2157_v29  ;;  %v11614_v34 = vld [vmem:[#allocation23_spill] sm:$0xff] }
0x1116   :  { %v2473_v33 = vadd.f32 %v10944_v12, %v11614_v34  ;;  %v11624_v34 = vld [vmem:[#allocation29_spill] sm:$0xff] }
0x1117   :  { %8632 = vtanh.f32 %v5074_v37 }
0x111e   :  { %v8627_v39 = vpop.eup %8626 }
0x111f   :  { %6199 = vst [vmem:[%s11503_s5 + $0x268] sm:$0xff] %v8627_v39 }
0x1120   :  { %v8629_v41 = vpop.eup %8628 }
0x1121   :  { %6198 = vst [vmem:[%s11503_s5 + $0x260] sm:$0xff] %v8629_v41  ;;  %8202 = vmatprep.mubr.f32.mxu0 %v8629_v41 }
0x1122   :  { %v8631_v58 = vpop.eup %8630  ;;  %8203 = vmatmul.mubr.f32.vlgmr.msra.gmra.mxu0 %v8627_v39  ;;  %v11615_v39 = vld [vmem:[#allocation24_spill] sm:$0xff] }
0x1123   :  { %6201 = vst [vmem:[%s11503_s5 + $0x278] sm:$0xff] %v8631_v58  ;;  %8247 = vmatpush3.msra.mxu0 %v11052_v56  ;;  %v2468_v41 = vadd.f32 %v10944_v12, %v11615_v39 }
0x1124   :  { %v8633_v59 = vpop.eup %8632  ;;  %8248 = vmatprep.subr.mxu0 %v11076_v60 }
0x1125   :  { %6200 = vst [vmem:[%s11503_s5 + $0x270] sm:$0xff] %v8633_v59  ;;  %8205 = vmatprep.mubr.f32.mxu0 %v8633_v59  ;;  %8249 = vmatpush3.msra.mxu0 %v11076_v60 }
0x1126   :  { %8206 = vmatmul.mubr.f32.gmra.mxu0 %v8631_v58  ;;  %8250 = vmatprep.subr.mxu0 %v11086_v1 }
0x1127   :  { %8251 = vmatpush3.msra.mxu0 %v11086_v1 }
0x1128   :  { %8252 = vmatprep.subr.mxu0 %v11093_v22 }
0x1129   :  { %8253 = vmatpush3.msra.mxu0 %v11093_v22 }
0x112a   :  { %8254 = vmatprep.subr.mxu0 %v11100_v18 }
0x112b   :  { %8255 = vmatpush3.msra.mxu0 %v11100_v18 }
0x112c   :  { %8256 = vmatprep.subr.mxu0 %v11107_v20 }
0x112d   :  { %8257 = vmatpush3.msra.mxu0 %v11107_v20 }
0x112e   :  { %8258 = vmatprep.subr.mxu0 %v10613_v40 }
0x112f   :  { %8259 = vmatpush3.msra.mxu0 %v10613_v40  ;;  %v11606_v40 = vld [vmem:[#allocation19_spill] sm:$0xff] }
0x1130   :  { %8260 = vmatprep.subr.mxu0 %v10620_v48 }
0x1131   :  { %8261 = vmatpush3.msra.mxu0 %v10620_v48  ;;  %v2259_v48 = vadd.f32 %v10944_v12, %v11606_v40  ;;  %v11616_v40 = vld [vmem:[#allocation25_spill] sm:$0xff] }
0x1132   :  { %8262 = vmatprep.subr.mxu0 %v10627_v42 }
0x1133   :  { %8263 = vmatpush3.msra.mxu0 %v10627_v42 }
0x1134   :  { %8264 = vmatprep.subr.mxu0 %v10634_v49 }
0x1135   :  { %8265 = vmatpush3.msra.mxu0 %v10634_v49  ;;  %v11607_v49 = vld [vmem:[#allocation20_spill] sm:$0xff] }
0x1136   :  { %8266 = vmatprep.subr.mxu0 %v10641_v50 }
0x1137   :  { %8267 = vmatpush3.msra.mxu0 %v10641_v50  ;;  %v2254_v50 = vadd.f32 %v10944_v12, %v11607_v49 }
0x1138   :  { %8268 = vmatprep.subr.mxu0 %v10648_v51 }
0x1139   :  { %8269 = vmatpush3.msra.mxu0 %v10648_v51 }
0x113a   :  { %8270 = vmatprep.subr.mxu0 %v10655_v27 }
0x113b   :  { %8271 = vmatpush3.msra.mxu0 %v10655_v27 }
0x113c   :  { %8272 = vmatprep.subr.mxu0 %v10662_v44 }
0x113d   :  { %8273 = vmatpush3.msra.mxu0 %v10662_v44  ;;  %v11608_v44 = vld [vmem:[#allocation21_spill] sm:$0xff] }
0x113e   :  { %8274 = vmatprep.subr.mxu0 %v10669_v2  ;;  %v2269_v21 = vadd.f32 %v10944_v12, %v11608_v44 }
0x113f   :  { %8275 = vmatpush3.msra.mxu0 %v10669_v2 }
0x1140   :  { %8276 = vmatprep.subr.mxu0 %v10676_v45 }
0x1141   :  { %8277 = vmatpush3.msra.mxu0 %v10676_v45  ;;  %v2264_v45 = vadd.f32 %v10944_v12, %v11609_v23 }
0x1142   :  { %8322 = vmatprep.subr.mxu0 %v11052_v56 }
0x11e2   :  { %v8204_v42 = vpop.f32.mrf.mxu0 }
0x11e3   :  { %v5175_v51 = vadd.f32 %v8204_v42, %v2259_v48  ;;  %v2483_v48 = vadd.f32 %v10944_v12, %v11616_v40 }
0x11e4   :  { %v5155_v27 = vpop.f32.mrf.mxu0 }
0x11e5   :  { %8634 = vtanh.f32 %v5175_v51  ;;  %v5174_v2 = vadd.f32 %v5155_v27, %v2254_v50  ;;  %v11617_v50 = vld [vmem:[#allocation26_spill] sm:$0xff] }
0x11e6   :  { %v8207_v17 = vpop.f32.mrf.mxu0  ;;  %v2478_v51 = vadd.f32 %v10944_v12, %v11617_v50 }
0x11e7   :  { %8636 = vtanh.f32 %v5174_v2  ;;  %v5177_v10 = vadd.f32 %v8207_v17, %v2269_v21 }
0x11e8   :  { %v5165_v52 = vpop.f32.mrf.mxu0 }
0x11e9   :  { %8638 = vtanh.f32 %v5177_v10  ;;  %v5176_v4 = vadd.f32 %v5165_v52, %v2264_v45  ;;  %v11618_v10 = vld [vmem:[#allocation58_spill] sm:$0xff] }
0x11ea   :  { %v2580_v52 = vadd.f32 %v10944_v12, %v11618_v10  ;;  %v11631_v10 = vld [vmem:[#allocation32_spill] sm:$0xff] }
0x11eb   :  { %8640 = vtanh.f32 %v5176_v4 }
0x11f2   :  { %v8635_v53 = vpop.eup %8634 }
0x11f3   :  { %6203 = vst [vmem:[%s11503_s5 + $0x288] sm:$0xff] %v8635_v53 }
0x11f4   :  { %v8637_v54 = vpop.eup %8636 }
0x11f5   :  { %6202 = vst [vmem:[%s11503_s5 + $0x280] sm:$0xff] %v8637_v54  ;;  %8240 = vmatprep.mubr.f32.mxu1 %v8637_v54 }
0x11f6   :  { %v8639_v55 = vpop.eup %8638  ;;  %8241 = vmatmul.mubr.f32.vlgmr.msra.gmra.mxu1 %v8635_v53  ;;  %v11619_v53 = vld [vmem:[#allocation59_spill] sm:$0xff] }
0x11f7   :  { %6205 = vst [vmem:[%s11503_s5 + $0x298] sm:$0xff] %v8639_v55  ;;  %8285 = vmatpush3.msra.mxu1 %v11052_v56  ;;  %v2575_v54 = vadd.f32 %v10944_v12, %v11619_v53 }
0x11f8   :  { %v8641_v31 = vpop.eup %8640  ;;  %8286 = vmatprep.subr.mxu1 %v11076_v60 }
0x11f9   :  { %6204 = vst [vmem:[%s11503_s5 + $0x290] sm:$0xff] %v8641_v31  ;;  %8243 = vmatprep.mubr.f32.mxu1 %v8641_v31  ;;  %8287 = vmatpush3.msra.mxu1 %v11076_v60 }
0x11fa   :  { %8244 = vmatmul.mubr.f32.gmra.mxu1 %v8639_v55  ;;  %8288 = vmatprep.subr.mxu1 %v11086_v1 }
0x11fb   :  { %8289 = vmatpush3.msra.mxu1 %v11086_v1 }
0x11fc   :  { %8290 = vmatprep.subr.mxu1 %v11093_v22 }
0x11fd   :  { %8291 = vmatpush3.msra.mxu1 %v11093_v22 }
0x11fe   :  { %8292 = vmatprep.subr.mxu1 %v11100_v18 }
0x11ff   :  { %8293 = vmatpush3.msra.mxu1 %v11100_v18 }
0x1200   :  { %8294 = vmatprep.subr.mxu1 %v11107_v20 }
0x1201   :  { %8295 = vmatpush3.msra.mxu1 %v11107_v20 }
0x1202   :  { %8296 = vmatprep.subr.mxu1 %v11166_v3 }
0x1203   :  { %8297 = vmatpush3.msra.mxu1 %v11166_v3 }
0x1204   :  { %8298 = vmatprep.subr.mxu1 %v11173_v8 }
0x1205   :  { %8299 = vmatpush3.msra.mxu1 %v11173_v8 }
0x1206   :  { %8300 = vmatprep.subr.mxu1 %v11180_v63 }
0x1207   :  { %8301 = vmatpush3.msra.mxu1 %v11180_v63 }
0x1208   :  { %8302 = vmatprep.subr.mxu1 %v11187_v35 }
0x1209   :  { %8303 = vmatpush3.msra.mxu1 %v11187_v35 }
0x120a   :  { %8304 = vmatprep.subr.mxu1 %v11194_v62 }
0x120b   :  { %8305 = vmatpush3.msra.mxu1 %v11194_v62 }
0x120c   :  { %8306 = vmatprep.subr.mxu1 %v11201_v61 }
0x120d   :  { %8307 = vmatpush3.msra.mxu1 %v11201_v61 }
0x120e   :  { %8308 = vmatprep.subr.mxu1 %v11208_v57 }
0x120f   :  { %8309 = vmatpush3.msra.mxu1 %v11208_v57 }
0x1210   :  { %8310 = vmatprep.subr.mxu1 %v11215_v15 }
0x1211   :  { %8311 = vmatpush3.msra.mxu1 %v11215_v15 }
0x1212   :  { %8312 = vmatprep.subr.mxu1 %v11222_v25 }
0x1213   :  { %8313 = vmatpush3.msra.mxu1 %v11222_v25 }
0x1214   :  { %8314 = vmatprep.subr.mxu1 %v11229_v26 }
0x1215   :  { %8315 = vmatpush3.msra.mxu1 %v11229_v26 }
0x1216   :  { %8360 = vmatprep.subr.mxu1 %v11052_v56 }
0x12b6   :  { %v8242_v30 = vpop.f32.mrf.mxu1 }
0x12b7   :  { %v5277_v36 = vadd.f32 %v8242_v30, %v2366_v28  ;;  %v2590_v28 = vadd.f32 %v10944_v12, %v11620_v16 }
0x12b8   :  { %v5257_v19 = vpop.f32.mrf.mxu1 }
0x12b9   :  { %8642 = vtanh.f32 %v5277_v36  ;;  %v5276_v43 = vadd.f32 %v5257_v19, %v2361_v32  ;;  %v11621_v32 = vld [vmem:[#allocation61_spill] sm:$0xff] }
0x12ba   :  { %v8245_v5 = vpop.f32.mrf.mxu1  ;;  %v2585_v36 = vadd.f32 %v10944_v12, %v11621_v32 }
0x12bb   :  { %8644 = vtanh.f32 %v5276_v43  ;;  %v5279_v46 = vadd.f32 %v8245_v5, %v2376_v13 }
0x12bc   :  { %v5267_v47 = vpop.f32.mrf.mxu1 }
0x12bd   :  { %8646 = vtanh.f32 %v5279_v46  ;;  %v5278_v0 = vadd.f32 %v5267_v47, %v2371_v38  ;;  %v11622_v46 = vld [vmem:[#allocation27_spill] sm:$0xff] }
0x12be   :  { %v2687_v47 = vadd.f32 %v10944_v12, %v11622_v46  ;;  %v11635_v46 = vld [vmem:[#allocation67_spill] sm:$0xff] }
0x12bf   :  { %8648 = vtanh.f32 %v5278_v0 }
0x12c6   :  { %v8643_v9 = vpop.eup %8642 }
0x12c7   :  { %6207 = vst [vmem:[%s11503_s5 + $0x2a8] sm:$0xff] %v8643_v9 }
0x12c8   :  { %v8645_v14 = vpop.eup %8644 }
0x12c9   :  { %6206 = vst [vmem:[%s11503_s5 + $0x2a0] sm:$0xff] %v8645_v14  ;;  %8278 = vmatprep.mubr.f32.mxu0 %v8645_v14 }
0x12ca   :  { %v8647_v24 = vpop.eup %8646  ;;  %8279 = vmatmul.mubr.f32.vlgmr.msra.gmra.mxu0 %v8643_v9  ;;  %v11623_v9 = vld [vmem:[#allocation28_spill] sm:$0xff] }
0x12cb   :  { %6209 = vst [vmem:[%s11503_s5 + $0x2b8] sm:$0xff] %v8647_v24  ;;  %8323 = vmatpush3.msra.mxu0 %v11052_v56  ;;  %v2682_v14 = vadd.f32 %v10944_v12, %v11623_v9 }
0x12cc   :  { %v8649_v29 = vpop.eup %8648  ;;  %8324 = vmatprep.subr.mxu0 %v11076_v60 }
0x12cd   :  { %6208 = vst [vmem:[%s11503_s5 + $0x2b0] sm:$0xff] %v8649_v29  ;;  %8281 = vmatprep.mubr.f32.mxu0 %v8649_v29  ;;  %8325 = vmatpush3.msra.mxu0 %v11076_v60 }
0x12ce   :  { %8282 = vmatmul.mubr.f32.gmra.mxu0 %v8647_v24  ;;  %8326 = vmatprep.subr.mxu0 %v11086_v1 }
0x12cf   :  { %8327 = vmatpush3.msra.mxu0 %v11086_v1 }
0x12d0   :  { %8328 = vmatprep.subr.mxu0 %v11093_v22 }
0x12d1   :  { %8329 = vmatpush3.msra.mxu0 %v11093_v22 }
0x12d2   :  { %8330 = vmatprep.subr.mxu0 %v11100_v18 }
0x12d3   :  { %8331 = vmatpush3.msra.mxu0 %v11100_v18 }
0x12d4   :  { %8332 = vmatprep.subr.mxu0 %v11107_v20 }
0x12d5   :  { %8333 = vmatpush3.msra.mxu0 %v11107_v20 }
0x12d6   :  { %8334 = vmatprep.subr.mxu0 %v11166_v3 }
0x12d7   :  { %8335 = vmatpush3.msra.mxu0 %v11166_v3 }
0x12d8   :  { %8336 = vmatprep.subr.mxu0 %v11173_v8 }
0x12d9   :  { %8337 = vmatpush3.msra.mxu0 %v11173_v8 }
0x12da   :  { %8338 = vmatprep.subr.mxu0 %v11180_v63 }
0x12db   :  { %8339 = vmatpush3.msra.mxu0 %v11180_v63 }
0x12dc   :  { %8340 = vmatprep.subr.mxu0 %v11187_v35 }
0x12dd   :  { %8341 = vmatpush3.msra.mxu0 %v11187_v35 }
0x12de   :  { %8342 = vmatprep.subr.mxu0 %v11194_v62 }
0x12df   :  { %8343 = vmatpush3.msra.mxu0 %v11194_v62 }
0x12e0   :  { %8344 = vmatprep.subr.mxu0 %v11201_v61 }
0x12e1   :  { %8345 = vmatpush3.msra.mxu0 %v11201_v61 }
0x12e2   :  { %8346 = vmatprep.subr.mxu0 %v11208_v57 }
0x12e3   :  { %8347 = vmatpush3.msra.mxu0 %v11208_v57 }
0x12e4   :  { %8348 = vmatprep.subr.mxu0 %v11215_v15 }
0x12e5   :  { %8349 = vmatpush3.msra.mxu0 %v11215_v15 }
0x12e6   :  { %8350 = vmatprep.subr.mxu0 %v11222_v25 }
0x12e7   :  { %8351 = vmatpush3.msra.mxu0 %v11222_v25 }
0x12e8   :  { %8352 = vmatprep.subr.mxu0 %v11229_v26 }
0x12e9   :  { %8353 = vmatpush3.msra.mxu0 %v11229_v26 }
0x12ea   :  { %8398 = vmatprep.subr.mxu0 %v11052_v56 }
0x138a   :  { %v8280_v37 = vpop.f32.mrf.mxu0 }
0x138b   :  { %v5379_v58 = vadd.f32 %v8280_v37, %v2473_v33  ;;  %v2697_v33 = vadd.f32 %v10944_v12, %v11624_v34 }
0x138c   :  { %v5359_v59 = vpop.f32.mrf.mxu0 }
0x138d   :  { %8650 = vtanh.f32 %v5379_v58  ;;  %v5378_v42 = vadd.f32 %v5359_v59, %v2468_v41  ;;  %v11625_v41 = vld [vmem:[#allocation30_spill] sm:$0xff] }
0x138e   :  { %v8283_v49 = vpop.f32.mrf.mxu0  ;;  %v2692_v58 = vadd.f32 %v10944_v12, %v11625_v41 }
0x138f   :  { %8652 = vtanh.f32 %v5378_v42  ;;  %v5381_v27 = vadd.f32 %v8283_v49, %v2483_v48 }
0x1390   :  { %v5369_v44 = vpop.f32.mrf.mxu0 }
0x1391   :  { %8654 = vtanh.f32 %v5381_v27  ;;  %v5380_v21 = vadd.f32 %v5369_v44, %v2478_v51 }
0x1393   :  { %8656 = vtanh.f32 %v5380_v21 }
0x139a   :  { %v8651_v2 = vpop.eup %8650 }
0x139b   :  { %6211 = vst [vmem:[%s11503_s5 + $0x2c8] sm:$0xff] %v8651_v2 }
0x139c   :  { %v8653_v17 = vpop.eup %8652 }
0x139d   :  { %6210 = vst [vmem:[%s11503_s5 + $0x2c0] sm:$0xff] %v8653_v17  ;;  %8316 = vmatprep.mubr.f32.mxu1 %v8653_v17  ;;  %v11630_v17 = vld [vmem:[#allocation31_spill] sm:$0xff] }
0x139e   :  { %v8655_v23 = vpop.eup %8654  ;;  %8317 = vmatmul.mubr.f32.vlgmr.msra.gmra.mxu1 %v8651_v2 }
0x139f   :  { %6213 = vst [vmem:[%s11503_s5 + $0x2d8] sm:$0xff] %v8655_v23  ;;  %8361 = vmatpush3.msra.mxu1 %v11052_v56 }
0x13a0   :  { %v8657_v45 = vpop.eup %8656  ;;  %8362 = vmatprep.subr.mxu1 %v11076_v60 }
0x13a1   :  { %6212 = vst [vmem:[%s11503_s5 + $0x2d0] sm:$0xff] %v8657_v45  ;;  %8319 = vmatprep.mubr.f32.mxu1 %v8657_v45  ;;  %8363 = vmatpush3.msra.mxu1 %v11076_v60 }
0x13a2   :  { %8320 = vmatmul.mubr.f32.gmra.mxu1 %v8655_v23  ;;  %8364 = vmatprep.subr.mxu1 %v11086_v1  ;;  %v2901_v23 = vadd.f32 %v10944_v12, %v11630_v17 }
0x13a3   :  { %8365 = vmatpush3.msra.mxu1 %v11086_v1 }
0x13a4   :  { %8366 = vmatprep.subr.mxu1 %v11093_v22 }
0x13a5   :  { %8367 = vmatpush3.msra.mxu1 %v11093_v22 }
0x13a6   :  { %8368 = vmatprep.subr.mxu1 %v11100_v18 }
0x13a7   :  { %8369 = vmatpush3.msra.mxu1 %v11100_v18 }
0x13a8   :  { %8370 = vmatprep.subr.mxu1 %v11107_v20 }
0x13a9   :  { %8371 = vmatpush3.msra.mxu1 %v11107_v20 }
0x13aa   :  { %8372 = vmatprep.subr.mxu1 %v11166_v3 }
0x13ab   :  { %8373 = vmatpush3.msra.mxu1 %v11166_v3 }
0x13ac   :  { %8374 = vmatprep.subr.mxu1 %v11173_v8 }
0x13ad   :  { %8375 = vmatpush3.msra.mxu1 %v11173_v8 }
0x13ae   :  { %8376 = vmatprep.subr.mxu1 %v11180_v63 }
0x13af   :  { %8377 = vmatpush3.msra.mxu1 %v11180_v63 }
0x13b0   :  { %8378 = vmatprep.subr.mxu1 %v11187_v35 }
0x13b1   :  { %8379 = vmatpush3.msra.mxu1 %v11187_v35 }
0x13b2   :  { %8380 = vmatprep.subr.mxu1 %v11194_v62 }
0x13b3   :  { %8381 = vmatpush3.msra.mxu1 %v11194_v62 }
0x13b4   :  { %8382 = vmatprep.subr.mxu1 %v11201_v61 }
0x13b5   :  { %8383 = vmatpush3.msra.mxu1 %v11201_v61 }
0x13b6   :  { %8384 = vmatprep.subr.mxu1 %v11208_v57 }
0x13b7   :  { %8385 = vmatpush3.msra.mxu1 %v11208_v57 }
0x13b8   :  { %8386 = vmatprep.subr.mxu1 %v11215_v15 }
0x13b9   :  { %8387 = vmatpush3.msra.mxu1 %v11215_v15 }
0x13ba   :  { %8388 = vmatprep.subr.mxu1 %v11222_v25 }
0x13bb   :  { %8389 = vmatpush3.msra.mxu1 %v11222_v25 }
0x13bc   :  { %8390 = vmatprep.subr.mxu1 %v11229_v26 }
0x13bd   :  { %8391 = vmatpush3.msra.mxu1 %v11229_v26 }
0x13be   :  { %8436 = vmatprep.subr.mxu1 %v11052_v56 }
0x145e   :  { %v8318_v4 = vpop.f32.mrf.mxu1 }
0x145f   :  { %v5481_v55 = vadd.f32 %v8318_v4, %v2580_v52  ;;  %v2896_v52 = vadd.f32 %v10944_v12, %v11631_v10 }
0x1460   :  { %v5461_v31 = vpop.f32.mrf.mxu1 }
0x1461   :  { %8658 = vtanh.f32 %v5481_v55  ;;  %v5480_v30 = vadd.f32 %v5461_v31, %v2575_v54  ;;  %v11632_v54 = vld [vmem:[#allocation33_spill] sm:$0xff] }
0x1462   :  { %v8321_v6 = vpop.f32.mrf.mxu1  ;;  %v2911_v55 = vadd.f32 %v10944_v12, %v11632_v54 }
0x1463   :  { %8660 = vtanh.f32 %v5480_v30  ;;  %v5483_v19 = vadd.f32 %v8321_v6, %v2590_v28  ;;  %v8752_v28 = vld [vmem:[%s11502_s4] ss:$0 sm:$0xff]  ;;  %v11633_v30 = vld [vmem:[#allocation34_spill] sm:$0xff] }
0x1464   :  { %v5471_v11 = vpop.f32.mrf.mxu1  ;;  %v2906_v6 = vadd.f32 %v8752_v28, %v11633_v30 }
0x1465   :  { %8662 = vtanh.f32 %v5483_v19  ;;  %v5482_v13 = vadd.f32 %v5471_v11, %v2585_v36 }
0x1467   :  { %8664 = vtanh.f32 %v5482_v13 }
0x146e   :  { %v8659_v43 = vpop.eup %8658 }
0x146f   :  { %6215 = vst [vmem:[%s11503_s5 + $0x2e8] sm:$0xff] %v8659_v43 }
0x1470   :  { %v8661_v5 = vpop.eup %8660 }
0x1471   :  { %6214 = vst [vmem:[%s11503_s5 + $0x2e0] sm:$0xff] %v8661_v5  ;;  %8354 = vmatprep.mubr.f32.mxu0 %v8661_v5  ;;  %v11634_v5 = vld [vmem:[#allocation66_spill] sm:$0xff] }
0x1472   :  { %v8663_v7 = vpop.eup %8662  ;;  %8355 = vmatmul.mubr.f32.vlgmr.msra.gmra.mxu0 %v8659_v43 }
0x1473   :  { %6217 = vst [vmem:[%s11503_s5 + $0x2f8] sm:$0xff] %v8663_v7  ;;  %8399 = vmatpush3.msra.mxu0 %v11052_v56 }
0x1474   :  { %v8665_v38 = vpop.eup %8664  ;;  %8400 = vmatprep.subr.mxu0 %v11076_v60 }
0x1475   :  { %6216 = vst [vmem:[%s11503_s5 + $0x2f0] sm:$0xff] %v8665_v38  ;;  %8357 = vmatprep.mubr.f32.mxu0 %v8665_v38  ;;  %8401 = vmatpush3.msra.mxu0 %v11076_v60 }
0x1476   :  { %8358 = vmatmul.mubr.f32.gmra.mxu0 %v8663_v7  ;;  %8402 = vmatprep.subr.mxu0 %v11086_v1  ;;  %v3008_v7 = vadd.f32 %v8752_v28, %v11634_v5 }
0x1477   :  { %8403 = vmatpush3.msra.mxu0 %v11086_v1 }
0x1478   :  { %8404 = vmatprep.subr.mxu0 %v11093_v22 }
0x1479   :  { %8405 = vmatpush3.msra.mxu0 %v11093_v22 }
0x147a   :  { %8406 = vmatprep.subr.mxu0 %v11100_v18 }
0x147b   :  { %8407 = vmatpush3.msra.mxu0 %v11100_v18 }
0x147c   :  { %8408 = vmatprep.subr.mxu0 %v11107_v20 }
0x147d   :  { %8409 = vmatpush3.msra.mxu0 %v11107_v20 }
0x147e   :  { %8410 = vmatprep.subr.mxu0 %v11166_v3 }
0x147f   :  { %8411 = vmatpush3.msra.mxu0 %v11166_v3 }
0x1480   :  { %8412 = vmatprep.subr.mxu0 %v11173_v8 }
0x1481   :  { %8413 = vmatpush3.msra.mxu0 %v11173_v8 }
0x1482   :  { %8414 = vmatprep.subr.mxu0 %v11180_v63 }
0x1483   :  { %8415 = vmatpush3.msra.mxu0 %v11180_v63 }
0x1484   :  { %8416 = vmatprep.subr.mxu0 %v11187_v35 }
0x1485   :  { %8417 = vmatpush3.msra.mxu0 %v11187_v35 }
0x1486   :  { %8418 = vmatprep.subr.mxu0 %v11194_v62 }
0x1487   :  { %8419 = vmatpush3.msra.mxu0 %v11194_v62 }
0x1488   :  { %8420 = vmatprep.subr.mxu0 %v11201_v61 }
0x1489   :  { %8421 = vmatpush3.msra.mxu0 %v11201_v61 }
0x148a   :  { %8422 = vmatprep.subr.mxu0 %v11208_v57 }
0x148b   :  { %8423 = vmatpush3.msra.mxu0 %v11208_v57 }
0x148c   :  { %8424 = vmatprep.subr.mxu0 %v11215_v15 }
0x148d   :  { %8425 = vmatpush3.msra.mxu0 %v11215_v15 }
0x148e   :  { %8426 = vmatprep.subr.mxu0 %v11222_v25 }
0x148f   :  { %8427 = vmatpush3.msra.mxu0 %v11222_v25 }
0x1490   :  { %8428 = vmatprep.subr.mxu0 %v11229_v26 }
0x1491   :  { %8429 = vmatpush3.msra.mxu0 %v11229_v26 }
0x1532   :  { %v8356_v0 = vpop.f32.mrf.mxu0 }
0x1533   :  { %v5583_v24 = vadd.f32 %v8356_v0, %v2687_v47  ;;  %v3003_v47 = vadd.f32 %v8752_v28, %v11635_v46 }
0x1534   :  { %v5563_v29 = vpop.f32.mrf.mxu0 }
0x1535   :  { %8666 = vtanh.f32 %v5583_v24  ;;  %v5582_v37 = vadd.f32 %v5563_v29, %v2682_v14  ;;  %v11636_v14 = vld [vmem:[#allocation68_spill] sm:$0xff] }
0x1536   :  { %v8359_v39 = vpop.f32.mrf.mxu0  ;;  %v3018_v24 = vadd.f32 %v8752_v28, %v11636_v14 }
0x1537   :  { %8668 = vtanh.f32 %v5582_v37  ;;  %v5585_v59 = vadd.f32 %v8359_v39, %v2697_v33  ;;  %v11637_v33 = vld [vmem:[#allocation69_spill] sm:$0xff] }
0x1538   :  { %v5573_v40 = vpop.f32.mrf.mxu0  ;;  %v3013_v37 = vadd.f32 %v8752_v28, %v11637_v33 }
0x1539   :  { %8670 = vtanh.f32 %v5585_v59  ;;  %v5584_v48 = vadd.f32 %v5573_v40, %v2692_v58 }
0x153b   :  { %8672 = vtanh.f32 %v5584_v48 }
0x1542   :  { %v8667_v42 = vpop.eup %8666 }
0x1543   :  { %6219 = vst [vmem:[%s11503_s5 + $0x308] sm:$0xff] %v8667_v42 }
0x1544   :  { %v8669_v49 = vpop.eup %8668 }
0x1545   :  { %6218 = vst [vmem:[%s11503_s5 + $0x300] sm:$0xff] %v8669_v49  ;;  %8392 = vmatprep.mubr.f32.mxu1 %v8669_v49 }
0x1546   :  { %v8671_v50 = vpop.eup %8670  ;;  %8393 = vmatmul.mubr.f32.vlgmr.msra.gmra.mxu1 %v8667_v42 }
0x1547   :  { %6221 = vst [vmem:[%s11503_s5 + $0x318] sm:$0xff] %v8671_v50  ;;  %8437 = vmatpush3.msra.mxu1 %v11052_v56  ;;  %v11626_v56 = vld [vmem:[#allocation62_spill] sm:$0xff] }
0x1548   :  { %v8673_v51 = vpop.eup %8672  ;;  %8438 = vmatprep.subr.mxu1 %v11076_v60 }
0x1549   :  { %6220 = vst [vmem:[%s11503_s5 + $0x310] sm:$0xff] %v8673_v51  ;;  %8395 = vmatprep.mubr.f32.mxu1 %v8673_v51  ;;  %8439 = vmatpush3.msra.mxu1 %v11076_v60  ;;  %v2794_v60 = vadd.f32 %v10944_v12, %v11626_v56 }
0x154a   :  { %8396 = vmatmul.mubr.f32.gmra.mxu1 %v8671_v50  ;;  %8440 = vmatprep.subr.mxu1 %v11086_v1 }
0x154b   :  { %8441 = vmatpush3.msra.mxu1 %v11086_v1 }
0x154c   :  { %8442 = vmatprep.subr.mxu1 %v11093_v22 }
0x154d   :  { %8443 = vmatpush3.msra.mxu1 %v11093_v22  ;;  %v11627_v22 = vld [vmem:[#allocation63_spill] sm:$0xff] }
0x154e   :  { %8444 = vmatprep.subr.mxu1 %v11100_v18 }
0x154f   :  { %8445 = vmatpush3.msra.mxu1 %v11100_v18  ;;  %v2789_v18 = vadd.f32 %v10944_v12, %v11627_v22 }
0x1550   :  { %8446 = vmatprep.subr.mxu1 %v11107_v20 }
0x1551   :  { %8447 = vmatpush3.msra.mxu1 %v11107_v20 }
0x1552   :  { %8448 = vmatprep.subr.mxu1 %v11166_v3 }
0x1553   :  { %8449 = vmatpush3.msra.mxu1 %v11166_v3 }
0x1554   :  { %8450 = vmatprep.subr.mxu1 %v11173_v8 }
0x1555   :  { %8451 = vmatpush3.msra.mxu1 %v11173_v8  ;;  %v11628_v8 = vld [vmem:[#allocation64_spill] sm:$0xff] }
0x1556   :  { %8452 = vmatprep.subr.mxu1 %v11180_v63 }
0x1557   :  { %8453 = vmatpush3.msra.mxu1 %v11180_v63  ;;  %v2804_v63 = vadd.f32 %v10944_v12, %v11628_v8 }
0x1558   :  { %8454 = vmatprep.subr.mxu1 %v11187_v35 }
0x1559   :  { %8455 = vmatpush3.msra.mxu1 %v11187_v35 }
0x155a   :  { %8456 = vmatprep.subr.mxu1 %v11194_v62 }
0x155b   :  { %8457 = vmatpush3.msra.mxu1 %v11194_v62 }
0x155c   :  { %8458 = vmatprep.subr.mxu1 %v11201_v61 }
0x155d   :  { %8459 = vmatpush3.msra.mxu1 %v11201_v61  ;;  %v11629_v61 = vld [vmem:[#allocation65_spill] sm:$0xff] }
0x155e   :  { %8460 = vmatprep.subr.mxu1 %v11208_v57 }
0x155f   :  { %8461 = vmatpush3.msra.mxu1 %v11208_v57  ;;  %v2799_v57 = vadd.f32 %v10944_v12, %v11629_v61 }
0x1560   :  { %8462 = vmatprep.subr.mxu1 %v11215_v15 }
0x1561   :  { %8463 = vmatpush3.msra.mxu1 %v11215_v15 }
0x1562   :  { %8464 = vmatprep.subr.mxu1 %v11222_v25 }
0x1563   :  { %8465 = vmatpush3.msra.mxu1 %v11222_v25 }
0x1564   :  { %8466 = vmatprep.subr.mxu1 %v11229_v26 }
0x1565   :  { %8467 = vmatpush3.msra.mxu1 %v11229_v26 }
0x1606   :  { %v8394_v1 = vpop.f32.mrf.mxu1 }
0x1607   :  { %v5685_v20 = vadd.f32 %v8394_v1, %v2794_v60 }
0x1608   :  { %v5665_v3 = vpop.f32.mrf.mxu1 }
0x1609   :  { %8674 = vtanh.f32 %v5685_v20  ;;  %v5684_v35 = vadd.f32 %v5665_v3, %v2789_v18 }
0x160a   :  { %v8397_v62 = vpop.f32.mrf.mxu1 }
0x160b   :  { %8676 = vtanh.f32 %v5684_v35  ;;  %v5687_v15 = vadd.f32 %v8397_v62, %v2804_v63 }
0x160c   :  { %v5675_v25 = vpop.f32.mrf.mxu1 }
0x160d   :  { %8678 = vtanh.f32 %v5687_v15  ;;  %v5686_v26 = vadd.f32 %v5675_v25, %v2799_v57 }
0x160f   :  { %8680 = vtanh.f32 %v5686_v26 }
0x1616   :  { %v8675_v27 = vpop.eup %8674 }
0x1617   :  { %6223 = vst [vmem:[%s11503_s5 + $0x328] sm:$0xff] %v8675_v27 }
0x1618   :  { %v8677_v44 = vpop.eup %8676 }
0x1619   :  { %6222 = vst [vmem:[%s11503_s5 + $0x320] sm:$0xff] %v8677_v44  ;;  %8430 = vmatprep.mubr.f32.mxu0 %v8677_v44 }
0x161a   :  { %v8679_v21 = vpop.eup %8678  ;;  %8431 = vmatmul.mubr.f32.vlgmr.msra.gmra.mxu0 %v8675_v27 }
0x161b   :  { %6225 = vst [vmem:[%s11503_s5 + $0x338] sm:$0xff] %v8679_v21 }
0x161c   :  { %v8681_v2 = vpop.eup %8680 }
0x161d   :  { %6224 = vst [vmem:[%s11503_s5 + $0x330] sm:$0xff] %v8681_v2  ;;  %8433 = vmatprep.mubr.f32.mxu0 %v8681_v2 }
0x161e   :  { %8434 = vmatmul.mubr.f32.gmra.mxu0 %v8679_v21 }
0x16da   :  { %v8432_v45 = vpop.f32.mrf.mxu0 }
0x16db   :  { %v5787_v4 = vadd.f32 %v8432_v45, %v2901_v23 }
0x16dc   :  { %v5767_v53 = vpop.f32.mrf.mxu0 }
0x16dd   :  { %8682 = vtanh.f32 %v5787_v4  ;;  %v5786_v31 = vadd.f32 %v5767_v53, %v2896_v52 }
0x16de   :  { %v8435_v16 = vpop.f32.mrf.mxu0 }
0x16df   :  { %8684 = vtanh.f32 %v5786_v31  ;;  %v5789_v32 = vadd.f32 %v8435_v16, %v2911_v55 }
0x16e0   :  { %v5777_v36 = vpop.f32.mrf.mxu0 }
0x16e1   :  { %8686 = vtanh.f32 %v5789_v32  ;;  %v5788_v19 = vadd.f32 %v5777_v36, %v2906_v6 }
0x16e3   :  { %8688 = vtanh.f32 %v5788_v19 }
0x16ea   :  { %v8683_v11 = vpop.eup %8682 }
0x16eb   :  { %6227 = vst [vmem:[%s11503_s5 + $0x348] sm:$0xff] %v8683_v11 }
0x16ec   :  { %v8685_v12 = vpop.eup %8684 }
0x16ed   :  { %6226 = vst [vmem:[%s11503_s5 + $0x340] sm:$0xff] %v8685_v12  ;;  %8468 = vmatprep.mubr.f32.mxu1 %v8685_v12 }
0x16ee   :  { %v8687_v13 = vpop.eup %8686  ;;  %8469 = vmatmul.mubr.f32.vlgmr.msra.gmra.mxu1 %v8683_v11 }
0x16ef   :  { %6229 = vst [vmem:[%s11503_s5 + $0x358] sm:$0xff] %v8687_v13 }
0x16f0   :  { %v8689_v43 = vpop.eup %8688 }
0x16f1   :  { %6228 = vst [vmem:[%s11503_s5 + $0x350] sm:$0xff] %v8689_v43  ;;  %8471 = vmatprep.mubr.f32.mxu1 %v8689_v43 }
0x16f2   :  { %8472 = vmatmul.mubr.f32.gmra.mxu1 %v8687_v13 }
0x17ae   :  { %v8470_v38 = vpop.f32.mrf.mxu1 }
0x17af   :  { %v5889_v0 = vadd.f32 %v8470_v38, %v3008_v7 }
0x17b0   :  { %v5869_v9 = vpop.f32.mrf.mxu1 }
0x17b1   :  { %8690 = vtanh.f32 %v5889_v0  ;;  %v5888_v29 = vadd.f32 %v5869_v9, %v3003_v47 }
0x17b2   :  { %v8473_v34 = vpop.f32.mrf.mxu1 }
0x17b3   :  { %8692 = vtanh.f32 %v5888_v29  ;;  %v5891_v39 = vadd.f32 %v8473_v34, %v3018_v24 }
0x17b4   :  { %v5879_v41 = vpop.f32.mrf.mxu1 }
0x17b5   :  { %8694 = vtanh.f32 %v5891_v39  ;;  %v5890_v58 = vadd.f32 %v5879_v41, %v3013_v37 }
0x17b7   :  { %8696 = vtanh.f32 %v5890_v58 }
0x17be   :  { %v8691_v59 = vpop.eup %8690 }
0x17bf   :  { %6231 = vst [vmem:[%s11503_s5 + $0x368] sm:$0xff] %v8691_v59 }
0x17c0   :  { %v8693_v40 = vpop.eup %8692 }
0x17c1   :  { %6230 = vst [vmem:[%s11503_s5 + $0x360] sm:$0xff] %v8693_v40 }
0x17c2   :  { %v8695_v48 = vpop.eup %8694 }
0x17c3   :  { %6233 = vst [vmem:[%s11503_s5 + $0x378] sm:$0xff] %v8695_v48 }
0x17c4   :  { %v8697_v42 = vpop.eup %8696 }
0x17c5   :  { %6232 = vst [vmem:[%s11503_s5 + $0x370] sm:$0xff] %v8697_v42 }

</bundles_post_ra>
